<compile_context>
chip_gen: v7x
topology: tpu7x:2x2x1
jax: 0.10.0
libtpu: 0.0.40
codegen_flags: <defaults>
</compile_context>

<pallas_src>
import jax
import jax.numpy as jnp
import numpy as np
from jax.experimental import pallas as pl
from jax.experimental.pallas import tpu as pltpu

MAX_LEN = 8   # L
HIDDEN = 32   # H


def _boundary_seg_kernel(adj_ref, hid_ref, out_ref):
    # adj_ref: (TB, L, L)     span adjacency for TB batch rows
    # hid_ref: (TB, L, H)     boundary hidden states for TB batch rows
    # out_ref: (TB, L*2H)     lane-dense interleaved output slab
    TB, L, H = hid_ref.shape
    f32 = jnp.float32

    pieces = []                                   # [acc_0, s_0, acc_1, s_1, ...]
    for j in range(L):                            # static unroll, L = 8
        adj_j = adj_ref[:, j, :].astype(f32)      # (TB, L), loaded at point of use
        hid_j = hid_ref[:, j, :].astype(f32)      # (TB, H)
        acc = jnp.zeros((TB, H), f32)             # sum_{i>=j} a[j,i] * hid[i]
        rsum = jnp.zeros((TB, 1), f32)            # sum_{i>=j} a[j,i]
        for i in range(j, L):                     # i >= j: triangular mask is static
            w = adj_j[:, i:i + 1]                 # (TB, 1), broadcasts over H lanes
            acc = acc + w * hid_ref[:, i, :].astype(f32)   # VPU broadcast-FMA
            rsum = rsum + w
        pieces.append(acc)                        # first half of column j
        pieces.append(rsum * hid_j)               # second half of column j

    # One unmasked, fully lane-dense (TB, 512) store instead of 16 masked
    # 32-lane partial stores.
    out_ref[...] = jnp.concatenate(pieces, axis=-1).astype(out_ref.dtype)


def _pick_batch_tile(B):
    """Sublane-aligned batch rows per grid step (never the whole large batch).

    Real (lane-padded, f32) VMEM per row: adj (8,8)->(8,128) = 4 KB,
    hid (8,32)->(8,128) = 4 KB, out 512 lanes = 2 KB  =>  ~10 KB/row,
    ~20 KB/row double-buffered.  TB <= 512 keeps the working set around
    10 MiB — inside the scoped-VMEM budget on v5e/v6e and on v7x
    (64 MiB physical / 32 MiB scoped default).

    Aim for >= 8 grid steps when B allows it (>= 4 per TensorCore on v7x
    megacore) so the BlockSpec pipeline hides the DMAs.
    """
    if B <= 8:
        return 8                      # pad tiny batches up to one sublane tile
    tb = (B // 8) // 8 * 8            # ~B/8 rows per step, rounded down to x8
    return max(8, min(512, tb))


def boundary_seg(span_adjacency, bound_hidden):
    """span_adjacency: (B, L, L[, 1]); bound_hidden: (B, L, H) -> (B, L, 2H)."""
    if span_adjacency.ndim == 4:
        span_adjacency = jnp.squeeze(span_adjacency, axis=-1)
    B, L, H = bound_hidden.shape

    TB = _pick_batch_tile(B)
    n_steps = -(-B // TB)             # ceil div
    Bp = n_steps * TB
    if Bp != B:                       # pad to a whole number of TB-row blocks
        pad = Bp - B
        span_adjacency = jnp.pad(span_adjacency, ((0, pad), (0, 0), (0, 0)))
        bound_hidden = jnp.pad(bound_hidden, ((0, pad), (0, 0), (0, 0)))

    # Advisory cost: ~2.6 KFLOP and ~3.3 KB of HBM traffic per f32 batch row.
    flops_per_row = sum((L - j) * (2 * H + 1) for j in range(L)) + L * H
    bytes_per_row = (L * L * span_adjacency.dtype.itemsize
                     + L * H * bound_hidden.dtype.itemsize
                     + L * 2 * H * bound_hidden.dtype.itemsize)
    cost = pl.CostEstimate(flops=Bp * flops_per_row,
                           transcendentals=0,
                           bytes_accessed=Bp * bytes_per_row)

    out_flat = pl.pallas_call(
        _boundary_seg_kernel,
        out_shape=jax.ShapeDtypeStruct((Bp, L * 2 * H), bound_hidden.dtype),
        grid_spec=pltpu.PrefetchScalarGridSpec(
            num_scalar_prefetch=0,
            grid=(n_steps,),
            in_specs=[
                pl.BlockSpec((TB, L, L), lambda b: (b, 0, 0)),
                pl.BlockSpec((TB, L, H), lambda b: (b, 0, 0)),
            ],
            # Lane-dense output block: last dim = L*2H = 512 (multiple of 128).
            out_specs=pl.BlockSpec((TB, L * 2 * H), lambda b: (b, 0)),
        ),
        compiler_params=pltpu.CompilerParams(
            dimension_semantics=("parallel",),
            vmem_limit_bytes=32 * 1024 * 1024,
        ),
        cost_estimate=cost,
    )(span_adjacency, bound_hidden)

    out_flat = out_flat[:B] if Bp != B else out_flat
    # Free reshape: (B, L*2H) and (B, L, 2H) share the same memory layout.
    return out_flat.reshape(B, L, 2 * H)


def _reference(span_adjacency, bound_hidden):
    """Pure-JAX port of the PyTorch loop for verification."""
    if span_adjacency.ndim == 4:
        span_adjacency = jnp.squeeze(span_adjacency, axis=-1)
    B, L, H = bound_hidden.shape
    outs = []
    for j in range(L):
        j_sum = jnp.zeros((B, 2 * H), bound_hidden.dtype)
        for i in range(j, L):
            cat = jnp.concatenate([bound_hidden[:, i], bound_hidden[:, j]], axis=1)
            j_sum = j_sum + cat * span_adjacency[:, j, i][:, None]
        outs.append(j_sum)
    return jnp.stack(outs, axis=1)


if __name__ == "__main__":
    key = jax.random.PRNGKey(0)
    k1, k2 = jax.random.split(key)

    # Small shapes implied by the module: batch=2, seq=MAX_LEN=8, hidden=32.
    B, L, H = 2, MAX_LEN, HIDDEN
    span_adjacency = jax.random.uniform(k1, (B, L, L, 1), dtype=jnp.float32)
    bound_hidden = jax.random.normal(k2, (B, L, H), dtype=jnp.float32)
    out = jax.block_until_ready(boundary_seg(span_adjacency, bound_hidden))
    ref = _reference(span_adjacency, bound_hidden)
    np.testing.assert_allclose(np.asarray(out), np.asarray(ref), rtol=1e-5, atol=1e-5)

    # Multi-step grid path (B=48 -> TB=8, grid=6).
    B2 = 48
    adj2 = jax.random.uniform(k1, (B2, L, L, 1), dtype=jnp.float32)
    hid2 = jax.random.normal(k2, (B2, L, H), dtype=jnp.float32)
    out2 = jax.block_until_ready(boundary_seg(adj2, hid2))
    np.testing.assert_allclose(np.asarray(out2), np.asarray(_reference(adj2, hid2)),
                               rtol=1e-5, atol=1e-5)

    # Ragged batch exercises the pad-and-slice path (B=50 -> TB=8, pad to 56, grid=7).
    B3 = 50
    adj3 = jax.random.uniform(k1, (B3, L, L, 1), dtype=jnp.float32)
    hid3 = jax.random.normal(k2, (B3, L, H), dtype=jnp.float32)
    out3 = jax.block_until_ready(boundary_seg(adj3, hid3))
    np.testing.assert_allclose(np.asarray(out3), np.asarray(_reference(adj3, hid3)),
                               rtol=1e-5, atol=1e-5)

    # TODO(synk): torch.autograd.profiler table printing has no Pallas equivalent; omitted.
    print("KERNEL_OK")
</pallas_src>

<mosaic_0001>
module attributes {stable_mosaic.version = 11 : i64} {
  func.func @_boundary_seg_kernel(%arg0: i32, %arg1: memref<8x8x8xf32, #tpu.memory_space<vmem>>, %arg2: memref<8x8x32xf32, #tpu.memory_space<vmem>>, %arg3: memref<8x512xf32, #tpu.memory_space<vmem>>) attributes {dimension_semantics = [#tpu.dimension_semantics<parallel>], iteration_bounds = array<i64: 1>, scalar_prefetch = 0 : i64, scratch_operands = 0 : i64, tpu.core_type = #tpu.core_type<tc>, window_params = [{transform_indices = @transform_0, window_bounds = array<i64: 8, 8, 8>}, {transform_indices = @transform_1, window_bounds = array<i64: 8, 8, 32>}, {transform_indices = @transform_2, window_bounds = array<i64: 8, 512>}]} {
    %c0 = arith.constant 0 : index
    %c0_0 = arith.constant 0 : index
    %c0_1 = arith.constant 0 : index
    %0 = vector.load %arg1[%c0, %c0_0, %c0_1] : memref<8x8x8xf32, #tpu.memory_space<vmem>>, vector<8x1x8xf32>
    %1 = vector.shape_cast %0 : vector<8x1x8xf32> to vector<8x8xf32>
    %c0_2 = arith.constant 0 : index
    %c0_3 = arith.constant 0 : index
    %c0_4 = arith.constant 0 : index
    %2 = vector.load %arg2[%c0_2, %c0_3, %c0_4] : memref<8x8x32xf32, #tpu.memory_space<vmem>>, vector<8x1x32xf32>
    %3 = vector.shape_cast %2 : vector<8x1x32xf32> to vector<8x32xf32>
    %cst = arith.constant 0.000000e+00 : f32
    %4 = vector.broadcast %cst : f32 to vector<8x32xf32>
    %cst_5 = arith.constant 0.000000e+00 : f32
    %5 = vector.broadcast %cst_5 : f32 to vector<8x1xf32>
    %6 = vector.extract_strided_slice %1 {offsets = [0, 0], sizes = [8, 1], strides = [1, 1]} : vector<8x8xf32> to vector<8x1xf32>
    %c0_6 = arith.constant 0 : index
    %c0_7 = arith.constant 0 : index
    %c0_8 = arith.constant 0 : index
    %7 = vector.load %arg2[%c0_6, %c0_7, %c0_8] : memref<8x8x32xf32, #tpu.memory_space<vmem>>, vector<8x1x32xf32>
    %8 = vector.shape_cast %7 : vector<8x1x32xf32> to vector<8x32xf32>
    %9 = vector.broadcast %6 : vector<8x1xf32> to vector<8x32xf32>
    %10 = arith.mulf %9, %8 : vector<8x32xf32>
    %11 = arith.addf %4, %10 : vector<8x32xf32>
    %12 = arith.addf %5, %6 : vector<8x1xf32>
    %13 = vector.extract_strided_slice %1 {offsets = [0, 1], sizes = [8, 1], strides = [1, 1]} : vector<8x8xf32> to vector<8x1xf32>
    %c0_9 = arith.constant 0 : index
    %c1 = arith.constant 1 : index
    %c0_10 = arith.constant 0 : index
    %14 = vector.load %arg2[%c0_9, %c1, %c0_10] : memref<8x8x32xf32, #tpu.memory_space<vmem>>, vector<8x1x32xf32>
    %15 = vector.shape_cast %14 : vector<8x1x32xf32> to vector<8x32xf32>
    %16 = vector.broadcast %13 : vector<8x1xf32> to vector<8x32xf32>
    %17 = arith.mulf %16, %15 : vector<8x32xf32>
    %18 = arith.addf %11, %17 : vector<8x32xf32>
    %19 = arith.addf %12, %13 : vector<8x1xf32>
    %20 = vector.extract_strided_slice %1 {offsets = [0, 2], sizes = [8, 1], strides = [1, 1]} : vector<8x8xf32> to vector<8x1xf32>
    %c0_11 = arith.constant 0 : index
    %c2 = arith.constant 2 : index
    %c0_12 = arith.constant 0 : index
    %21 = vector.load %arg2[%c0_11, %c2, %c0_12] : memref<8x8x32xf32, #tpu.memory_space<vmem>>, vector<8x1x32xf32>
    %22 = vector.shape_cast %21 : vector<8x1x32xf32> to vector<8x32xf32>
    %23 = vector.broadcast %20 : vector<8x1xf32> to vector<8x32xf32>
    %24 = arith.mulf %23, %22 : vector<8x32xf32>
    %25 = arith.addf %18, %24 : vector<8x32xf32>
    %26 = arith.addf %19, %20 : vector<8x1xf32>
    %27 = vector.extract_strided_slice %1 {offsets = [0, 3], sizes = [8, 1], strides = [1, 1]} : vector<8x8xf32> to vector<8x1xf32>
    %c0_13 = arith.constant 0 : index
    %c3 = arith.constant 3 : index
    %c0_14 = arith.constant 0 : index
    %28 = vector.load %arg2[%c0_13, %c3, %c0_14] : memref<8x8x32xf32, #tpu.memory_space<vmem>>, vector<8x1x32xf32>
    %29 = vector.shape_cast %28 : vector<8x1x32xf32> to vector<8x32xf32>
    %30 = vector.broadcast %27 : vector<8x1xf32> to vector<8x32xf32>
    %31 = arith.mulf %30, %29 : vector<8x32xf32>
    %32 = arith.addf %25, %31 : vector<8x32xf32>
    %33 = arith.addf %26, %27 : vector<8x1xf32>
    %34 = vector.extract_strided_slice %1 {offsets = [0, 4], sizes = [8, 1], strides = [1, 1]} : vector<8x8xf32> to vector<8x1xf32>
    %c0_15 = arith.constant 0 : index
    %c4 = arith.constant 4 : index
    %c0_16 = arith.constant 0 : index
    %35 = vector.load %arg2[%c0_15, %c4, %c0_16] : memref<8x8x32xf32, #tpu.memory_space<vmem>>, vector<8x1x32xf32>
    %36 = vector.shape_cast %35 : vector<8x1x32xf32> to vector<8x32xf32>
    %37 = vector.broadcast %34 : vector<8x1xf32> to vector<8x32xf32>
    %38 = arith.mulf %37, %36 : vector<8x32xf32>
    %39 = arith.addf %32, %38 : vector<8x32xf32>
    %40 = arith.addf %33, %34 : vector<8x1xf32>
    %41 = vector.extract_strided_slice %1 {offsets = [0, 5], sizes = [8, 1], strides = [1, 1]} : vector<8x8xf32> to vector<8x1xf32>
    %c0_17 = arith.constant 0 : index
    %c5 = arith.constant 5 : index
    %c0_18 = arith.constant 0 : index
    %42 = vector.load %arg2[%c0_17, %c5, %c0_18] : memref<8x8x32xf32, #tpu.memory_space<vmem>>, vector<8x1x32xf32>
    %43 = vector.shape_cast %42 : vector<8x1x32xf32> to vector<8x32xf32>
    %44 = vector.broadcast %41 : vector<8x1xf32> to vector<8x32xf32>
    %45 = arith.mulf %44, %43 : vector<8x32xf32>
    %46 = arith.addf %39, %45 : vector<8x32xf32>
    %47 = arith.addf %40, %41 : vector<8x1xf32>
    %48 = vector.extract_strided_slice %1 {offsets = [0, 6], sizes = [8, 1], strides = [1, 1]} : vector<8x8xf32> to vector<8x1xf32>
    %c0_19 = arith.constant 0 : index
    %c6 = arith.constant 6 : index
    %c0_20 = arith.constant 0 : index
    %49 = vector.load %arg2[%c0_19, %c6, %c0_20] : memref<8x8x32xf32, #tpu.memory_space<vmem>>, vector<8x1x32xf32>
    %50 = vector.shape_cast %49 : vector<8x1x32xf32> to vector<8x32xf32>
    %51 = vector.broadcast %48 : vector<8x1xf32> to vector<8x32xf32>
    %52 = arith.mulf %51, %50 : vector<8x32xf32>
    %53 = arith.addf %46, %52 : vector<8x32xf32>
    %54 = arith.addf %47, %48 : vector<8x1xf32>
    %55 = vector.extract_strided_slice %1 {offsets = [0, 7], sizes = [8, 1], strides = [1, 1]} : vector<8x8xf32> to vector<8x1xf32>
    %c0_21 = arith.constant 0 : index
    %c7 = arith.constant 7 : index
    %c0_22 = arith.constant 0 : index
    %56 = vector.load %arg2[%c0_21, %c7, %c0_22] : memref<8x8x32xf32, #tpu.memory_space<vmem>>, vector<8x1x32xf32>
    %57 = vector.shape_cast %56 : vector<8x1x32xf32> to vector<8x32xf32>
    %58 = vector.broadcast %55 : vector<8x1xf32> to vector<8x32xf32>
    %59 = arith.mulf %58, %57 : vector<8x32xf32>
    %60 = arith.addf %53, %59 : vector<8x32xf32>
    %61 = arith.addf %54, %55 : vector<8x1xf32>
    %62 = vector.broadcast %61 : vector<8x1xf32> to vector<8x32xf32>
    %63 = arith.mulf %62, %3 : vector<8x32xf32>
    %c0_23 = arith.constant 0 : index
    %c1_24 = arith.constant 1 : index
    %c0_25 = arith.constant 0 : index
    %64 = vector.load %arg1[%c0_23, %c1_24, %c0_25] : memref<8x8x8xf32, #tpu.memory_space<vmem>>, vector<8x1x8xf32>
    %65 = vector.shape_cast %64 : vector<8x1x8xf32> to vector<8x8xf32>
    %c0_26 = arith.constant 0 : index
    %c1_27 = arith.constant 1 : index
    %c0_28 = arith.constant 0 : index
    %66 = vector.load %arg2[%c0_26, %c1_27, %c0_28] : memref<8x8x32xf32, #tpu.memory_space<vmem>>, vector<8x1x32xf32>
    %67 = vector.shape_cast %66 : vector<8x1x32xf32> to vector<8x32xf32>
    %cst_29 = arith.constant 0.000000e+00 : f32
    %68 = vector.broadcast %cst_29 : f32 to vector<8x32xf32>
    %cst_30 = arith.constant 0.000000e+00 : f32
    %69 = vector.broadcast %cst_30 : f32 to vector<8x1xf32>
    %70 = vector.extract_strided_slice %65 {offsets = [0, 1], sizes = [8, 1], strides = [1, 1]} : vector<8x8xf32> to vector<8x1xf32>
    %c0_31 = arith.constant 0 : index
    %c1_32 = arith.constant 1 : index
    %c0_33 = arith.constant 0 : index
    %71 = vector.load %arg2[%c0_31, %c1_32, %c0_33] : memref<8x8x32xf32, #tpu.memory_space<vmem>>, vector<8x1x32xf32>
    %72 = vector.shape_cast %71 : vector<8x1x32xf32> to vector<8x32xf32>
    %73 = vector.broadcast %70 : vector<8x1xf32> to vector<8x32xf32>
    %74 = arith.mulf %73, %72 : vector<8x32xf32>
    %75 = arith.addf %68, %74 : vector<8x32xf32>
    %76 = arith.addf %69, %70 : vector<8x1xf32>
    %77 = vector.extract_strided_slice %65 {offsets = [0, 2], sizes = [8, 1], strides = [1, 1]} : vector<8x8xf32> to vector<8x1xf32>
    %c0_34 = arith.constant 0 : index
    %c2_35 = arith.constant 2 : index
    %c0_36 = arith.constant 0 : index
    %78 = vector.load %arg2[%c0_34, %c2_35, %c0_36] : memref<8x8x32xf32, #tpu.memory_space<vmem>>, vector<8x1x32xf32>
    %79 = vector.shape_cast %78 : vector<8x1x32xf32> to vector<8x32xf32>
    %80 = vector.broadcast %77 : vector<8x1xf32> to vector<8x32xf32>
    %81 = arith.mulf %80, %79 : vector<8x32xf32>
    %82 = arith.addf %75, %81 : vector<8x32xf32>
    %83 = arith.addf %76, %77 : vector<8x1xf32>
    %84 = vector.extract_strided_slice %65 {offsets = [0, 3], sizes = [8, 1], strides = [1, 1]} : vector<8x8xf32> to vector<8x1xf32>
    %c0_37 = arith.constant 0 : index
    %c3_38 = arith.constant 3 : index
    %c0_39 = arith.constant 0 : index
    %85 = vector.load %arg2[%c0_37, %c3_38, %c0_39] : memref<8x8x32xf32, #tpu.memory_space<vmem>>, vector<8x1x32xf32>
    %86 = vector.shape_cast %85 : vector<8x1x32xf32> to vector<8x32xf32>
    %87 = vector.broadcast %84 : vector<8x1xf32> to vector<8x32xf32>
    %88 = arith.mulf %87, %86 : vector<8x32xf32>
    %89 = arith.addf %82, %88 : vector<8x32xf32>
    %90 = arith.addf %83, %84 : vector<8x1xf32>
    %91 = vector.extract_strided_slice %65 {offsets = [0, 4], sizes = [8, 1], strides = [1, 1]} : vector<8x8xf32> to vector<8x1xf32>
    %c0_40 = arith.constant 0 : index
    %c4_41 = arith.constant 4 : index
    %c0_42 = arith.constant 0 : index
    %92 = vector.load %arg2[%c0_40, %c4_41, %c0_42] : memref<8x8x32xf32, #tpu.memory_space<vmem>>, vector<8x1x32xf32>
    %93 = vector.shape_cast %92 : vector<8x1x32xf32> to vector<8x32xf32>
    %94 = vector.broadcast %91 : vector<8x1xf32> to vector<8x32xf32>
    %95 = arith.mulf %94, %93 : vector<8x32xf32>
    %96 = arith.addf %89, %95 : vector<8x32xf32>
    %97 = arith.addf %90, %91 : vector<8x1xf32>
    %98 = vector.extract_strided_slice %65 {offsets = [0, 5], sizes = [8, 1], strides = [1, 1]} : vector<8x8xf32> to vector<8x1xf32>
    %c0_43 = arith.constant 0 : index
    %c5_44 = arith.constant 5 : index
    %c0_45 = arith.constant 0 : index
    %99 = vector.load %arg2[%c0_43, %c5_44, %c0_45] : memref<8x8x32xf32, #tpu.memory_space<vmem>>, vector<8x1x32xf32>
    %100 = vector.shape_cast %99 : vector<8x1x32xf32> to vector<8x32xf32>
    %101 = vector.broadcast %98 : vector<8x1xf32> to vector<8x32xf32>
    %102 = arith.mulf %101, %100 : vector<8x32xf32>
    %103 = arith.addf %96, %102 : vector<8x32xf32>
    %104 = arith.addf %97, %98 : vector<8x1xf32>
    %105 = vector.extract_strided_slice %65 {offsets = [0, 6], sizes = [8, 1], strides = [1, 1]} : vector<8x8xf32> to vector<8x1xf32>
    %c0_46 = arith.constant 0 : index
    %c6_47 = arith.constant 6 : index
    %c0_48 = arith.constant 0 : index
    %106 = vector.load %arg2[%c0_46, %c6_47, %c0_48] : memref<8x8x32xf32, #tpu.memory_space<vmem>>, vector<8x1x32xf32>
    %107 = vector.shape_cast %106 : vector<8x1x32xf32> to vector<8x32xf32>
    %108 = vector.broadcast %105 : vector<8x1xf32> to vector<8x32xf32>
    %109 = arith.mulf %108, %107 : vector<8x32xf32>
    %110 = arith.addf %103, %109 : vector<8x32xf32>
    %111 = arith.addf %104, %105 : vector<8x1xf32>
    %112 = vector.extract_strided_slice %65 {offsets = [0, 7], sizes = [8, 1], strides = [1, 1]} : vector<8x8xf32> to vector<8x1xf32>
    %c0_49 = arith.constant 0 : index
    %c7_50 = arith.constant 7 : index
    %c0_51 = arith.constant 0 : index
    %113 = vector.load %arg2[%c0_49, %c7_50, %c0_51] : memref<8x8x32xf32, #tpu.memory_space<vmem>>, vector<8x1x32xf32>
    %114 = vector.shape_cast %113 : vector<8x1x32xf32> to vector<8x32xf32>
    %115 = vector.broadcast %112 : vector<8x1xf32> to vector<8x32xf32>
    %116 = arith.mulf %115, %114 : vector<8x32xf32>
    %117 = arith.addf %110, %116 : vector<8x32xf32>
    %118 = arith.addf %111, %112 : vector<8x1xf32>
    %119 = vector.broadcast %118 : vector<8x1xf32> to vector<8x32xf32>
    %120 = arith.mulf %119, %67 : vector<8x32xf32>
    %c0_52 = arith.constant 0 : index
    %c2_53 = arith.constant 2 : index
    %c0_54 = arith.constant 0 : index
    %121 = vector.load %arg1[%c0_52, %c2_53, %c0_54] : memref<8x8x8xf32, #tpu.memory_space<vmem>>, vector<8x1x8xf32>
    %122 = vector.shape_cast %121 : vector<8x1x8xf32> to vector<8x8xf32>
    %c0_55 = arith.constant 0 : index
    %c2_56 = arith.constant 2 : index
    %c0_57 = arith.constant 0 : index
    %123 = vector.load %arg2[%c0_55, %c2_56, %c0_57] : memref<8x8x32xf32, #tpu.memory_space<vmem>>, vector<8x1x32xf32>
    %124 = vector.shape_cast %123 : vector<8x1x32xf32> to vector<8x32xf32>
    %cst_58 = arith.constant 0.000000e+00 : f32
    %125 = vector.broadcast %cst_58 : f32 to vector<8x32xf32>
    %cst_59 = arith.constant 0.000000e+00 : f32
    %126 = vector.broadcast %cst_59 : f32 to vector<8x1xf32>
    %127 = vector.extract_strided_slice %122 {offsets = [0, 2], sizes = [8, 1], strides = [1, 1]} : vector<8x8xf32> to vector<8x1xf32>
    %c0_60 = arith.constant 0 : index
    %c2_61 = arith.constant 2 : index
    %c0_62 = arith.constant 0 : index
    %128 = vector.load %arg2[%c0_60, %c2_61, %c0_62] : memref<8x8x32xf32, #tpu.memory_space<vmem>>, vector<8x1x32xf32>
    %129 = vector.shape_cast %128 : vector<8x1x32xf32> to vector<8x32xf32>
    %130 = vector.broadcast %127 : vector<8x1xf32> to vector<8x32xf32>
    %131 = arith.mulf %130, %129 : vector<8x32xf32>
    %132 = arith.addf %125, %131 : vector<8x32xf32>
    %133 = arith.addf %126, %127 : vector<8x1xf32>
    %134 = vector.extract_strided_slice %122 {offsets = [0, 3], sizes = [8, 1], strides = [1, 1]} : vector<8x8xf32> to vector<8x1xf32>
    %c0_63 = arith.constant 0 : index
    %c3_64 = arith.constant 3 : index
    %c0_65 = arith.constant 0 : index
    %135 = vector.load %arg2[%c0_63, %c3_64, %c0_65] : memref<8x8x32xf32, #tpu.memory_space<vmem>>, vector<8x1x32xf32>
    %136 = vector.shape_cast %135 : vector<8x1x32xf32> to vector<8x32xf32>
    %137 = vector.broadcast %134 : vector<8x1xf32> to vector<8x32xf32>
    %138 = arith.mulf %137, %136 : vector<8x32xf32>
    %139 = arith.addf %132, %138 : vector<8x32xf32>
    %140 = arith.addf %133, %134 : vector<8x1xf32>
    %141 = vector.extract_strided_slice %122 {offsets = [0, 4], sizes = [8, 1], strides = [1, 1]} : vector<8x8xf32> to vector<8x1xf32>
    %c0_66 = arith.constant 0 : index
    %c4_67 = arith.constant 4 : index
    %c0_68 = arith.constant 0 : index
    %142 = vector.load %arg2[%c0_66, %c4_67, %c0_68] : memref<8x8x32xf32, #tpu.memory_space<vmem>>, vector<8x1x32xf32>
    %143 = vector.shape_cast %142 : vector<8x1x32xf32> to vector<8x32xf32>
    %144 = vector.broadcast %141 : vector<8x1xf32> to vector<8x32xf32>
    %145 = arith.mulf %144, %143 : vector<8x32xf32>
    %146 = arith.addf %139, %145 : vector<8x32xf32>
    %147 = arith.addf %140, %141 : vector<8x1xf32>
    %148 = vector.extract_strided_slice %122 {offsets = [0, 5], sizes = [8, 1], strides = [1, 1]} : vector<8x8xf32> to vector<8x1xf32>
    %c0_69 = arith.constant 0 : index
    %c5_70 = arith.constant 5 : index
    %c0_71 = arith.constant 0 : index
    %149 = vector.load %arg2[%c0_69, %c5_70, %c0_71] : memref<8x8x32xf32, #tpu.memory_space<vmem>>, vector<8x1x32xf32>
    %150 = vector.shape_cast %149 : vector<8x1x32xf32> to vector<8x32xf32>
    %151 = vector.broadcast %148 : vector<8x1xf32> to vector<8x32xf32>
    %152 = arith.mulf %151, %150 : vector<8x32xf32>
    %153 = arith.addf %146, %152 : vector<8x32xf32>
    %154 = arith.addf %147, %148 : vector<8x1xf32>
    %155 = vector.extract_strided_slice %122 {offsets = [0, 6], sizes = [8, 1], strides = [1, 1]} : vector<8x8xf32> to vector<8x1xf32>
    %c0_72 = arith.constant 0 : index
    %c6_73 = arith.constant 6 : index
    %c0_74 = arith.constant 0 : index
    %156 = vector.load %arg2[%c0_72, %c6_73, %c0_74] : memref<8x8x32xf32, #tpu.memory_space<vmem>>, vector<8x1x32xf32>
    %157 = vector.shape_cast %156 : vector<8x1x32xf32> to vector<8x32xf32>
    %158 = vector.broadcast %155 : vector<8x1xf32> to vector<8x32xf32>
    %159 = arith.mulf %158, %157 : vector<8x32xf32>
    %160 = arith.addf %153, %159 : vector<8x32xf32>
    %161 = arith.addf %154, %155 : vector<8x1xf32>
    %162 = vector.extract_strided_slice %122 {offsets = [0, 7], sizes = [8, 1], strides = [1, 1]} : vector<8x8xf32> to vector<8x1xf32>
    %c0_75 = arith.constant 0 : index
    %c7_76 = arith.constant 7 : index
    %c0_77 = arith.constant 0 : index
    %163 = vector.load %arg2[%c0_75, %c7_76, %c0_77] : memref<8x8x32xf32, #tpu.memory_space<vmem>>, vector<8x1x32xf32>
    %164 = vector.shape_cast %163 : vector<8x1x32xf32> to vector<8x32xf32>
    %165 = vector.broadcast %162 : vector<8x1xf32> to vector<8x32xf32>
    %166 = arith.mulf %165, %164 : vector<8x32xf32>
    %167 = arith.addf %160, %166 : vector<8x32xf32>
    %168 = arith.addf %161, %162 : vector<8x1xf32>
    %169 = vector.broadcast %168 : vector<8x1xf32> to vector<8x32xf32>
    %170 = arith.mulf %169, %124 : vector<8x32xf32>
    %c0_78 = arith.constant 0 : index
    %c3_79 = arith.constant 3 : index
    %c0_80 = arith.constant 0 : index
    %171 = vector.load %arg1[%c0_78, %c3_79, %c0_80] : memref<8x8x8xf32, #tpu.memory_space<vmem>>, vector<8x1x8xf32>
    %172 = vector.shape_cast %171 : vector<8x1x8xf32> to vector<8x8xf32>
    %c0_81 = arith.constant 0 : index
    %c3_82 = arith.constant 3 : index
    %c0_83 = arith.constant 0 : index
    %173 = vector.load %arg2[%c0_81, %c3_82, %c0_83] : memref<8x8x32xf32, #tpu.memory_space<vmem>>, vector<8x1x32xf32>
    %174 = vector.shape_cast %173 : vector<8x1x32xf32> to vector<8x32xf32>
    %cst_84 = arith.constant 0.000000e+00 : f32
    %175 = vector.broadcast %cst_84 : f32 to vector<8x32xf32>
    %cst_85 = arith.constant 0.000000e+00 : f32
    %176 = vector.broadcast %cst_85 : f32 to vector<8x1xf32>
    %177 = vector.extract_strided_slice %172 {offsets = [0, 3], sizes = [8, 1], strides = [1, 1]} : vector<8x8xf32> to vector<8x1xf32>
    %c0_86 = arith.constant 0 : index
    %c3_87 = arith.constant 3 : index
    %c0_88 = arith.constant 0 : index
    %178 = vector.load %arg2[%c0_86, %c3_87, %c0_88] : memref<8x8x32xf32, #tpu.memory_space<vmem>>, vector<8x1x32xf32>
    %179 = vector.shape_cast %178 : vector<8x1x32xf32> to vector<8x32xf32>
    %180 = vector.broadcast %177 : vector<8x1xf32> to vector<8x32xf32>
    %181 = arith.mulf %180, %179 : vector<8x32xf32>
    %182 = arith.addf %175, %181 : vector<8x32xf32>
    %183 = arith.addf %176, %177 : vector<8x1xf32>
    %184 = vector.extract_strided_slice %172 {offsets = [0, 4], sizes = [8, 1], strides = [1, 1]} : vector<8x8xf32> to vector<8x1xf32>
    %c0_89 = arith.constant 0 : index
    %c4_90 = arith.constant 4 : index
    %c0_91 = arith.constant 0 : index
    %185 = vector.load %arg2[%c0_89, %c4_90, %c0_91] : memref<8x8x32xf32, #tpu.memory_space<vmem>>, vector<8x1x32xf32>
    %186 = vector.shape_cast %185 : vector<8x1x32xf32> to vector<8x32xf32>
    %187 = vector.broadcast %184 : vector<8x1xf32> to vector<8x32xf32>
    %188 = arith.mulf %187, %186 : vector<8x32xf32>
    %189 = arith.addf %182, %188 : vector<8x32xf32>
    %190 = arith.addf %183, %184 : vector<8x1xf32>
    %191 = vector.extract_strided_slice %172 {offsets = [0, 5], sizes = [8, 1], strides = [1, 1]} : vector<8x8xf32> to vector<8x1xf32>
    %c0_92 = arith.constant 0 : index
    %c5_93 = arith.constant 5 : index
    %c0_94 = arith.constant 0 : index
    %192 = vector.load %arg2[%c0_92, %c5_93, %c0_94] : memref<8x8x32xf32, #tpu.memory_space<vmem>>, vector<8x1x32xf32>
    %193 = vector.shape_cast %192 : vector<8x1x32xf32> to vector<8x32xf32>
    %194 = vector.broadcast %191 : vector<8x1xf32> to vector<8x32xf32>
    %195 = arith.mulf %194, %193 : vector<8x32xf32>
    %196 = arith.addf %189, %195 : vector<8x32xf32>
    %197 = arith.addf %190, %191 : vector<8x1xf32>
    %198 = vector.extract_strided_slice %172 {offsets = [0, 6], sizes = [8, 1], strides = [1, 1]} : vector<8x8xf32> to vector<8x1xf32>
    %c0_95 = arith.constant 0 : index
    %c6_96 = arith.constant 6 : index
    %c0_97 = arith.constant 0 : index
    %199 = vector.load %arg2[%c0_95, %c6_96, %c0_97] : memref<8x8x32xf32, #tpu.memory_space<vmem>>, vector<8x1x32xf32>
    %200 = vector.shape_cast %199 : vector<8x1x32xf32> to vector<8x32xf32>
    %201 = vector.broadcast %198 : vector<8x1xf32> to vector<8x32xf32>
    %202 = arith.mulf %201, %200 : vector<8x32xf32>
    %203 = arith.addf %196, %202 : vector<8x32xf32>
    %204 = arith.addf %197, %198 : vector<8x1xf32>
    %205 = vector.extract_strided_slice %172 {offsets = [0, 7], sizes = [8, 1], strides = [1, 1]} : vector<8x8xf32> to vector<8x1xf32>
    %c0_98 = arith.constant 0 : index
    %c7_99 = arith.constant 7 : index
    %c0_100 = arith.constant 0 : index
    %206 = vector.load %arg2[%c0_98, %c7_99, %c0_100] : memref<8x8x32xf32, #tpu.memory_space<vmem>>, vector<8x1x32xf32>
    %207 = vector.shape_cast %206 : vector<8x1x32xf32> to vector<8x32xf32>
    %208 = vector.broadcast %205 : vector<8x1xf32> to vector<8x32xf32>
    %209 = arith.mulf %208, %207 : vector<8x32xf32>
    %210 = arith.addf %203, %209 : vector<8x32xf32>
    %211 = arith.addf %204, %205 : vector<8x1xf32>
    %212 = vector.broadcast %211 : vector<8x1xf32> to vector<8x32xf32>
    %213 = arith.mulf %212, %174 : vector<8x32xf32>
    %c0_101 = arith.constant 0 : index
    %c4_102 = arith.constant 4 : index
    %c0_103 = arith.constant 0 : index
    %214 = vector.load %arg1[%c0_101, %c4_102, %c0_103] : memref<8x8x8xf32, #tpu.memory_space<vmem>>, vector<8x1x8xf32>
    %215 = vector.shape_cast %214 : vector<8x1x8xf32> to vector<8x8xf32>
    %c0_104 = arith.constant 0 : index
    %c4_105 = arith.constant 4 : index
    %c0_106 = arith.constant 0 : index
    %216 = vector.load %arg2[%c0_104, %c4_105, %c0_106] : memref<8x8x32xf32, #tpu.memory_space<vmem>>, vector<8x1x32xf32>
    %217 = vector.shape_cast %216 : vector<8x1x32xf32> to vector<8x32xf32>
    %cst_107 = arith.constant 0.000000e+00 : f32
    %218 = vector.broadcast %cst_107 : f32 to vector<8x32xf32>
    %cst_108 = arith.constant 0.000000e+00 : f32
    %219 = vector.broadcast %cst_108 : f32 to vector<8x1xf32>
    %220 = vector.extract_strided_slice %215 {offsets = [0, 4], sizes = [8, 1], strides = [1, 1]} : vector<8x8xf32> to vector<8x1xf32>
    %c0_109 = arith.constant 0 : index
    %c4_110 = arith.constant 4 : index
    %c0_111 = arith.constant 0 : index
    %221 = vector.load %arg2[%c0_109, %c4_110, %c0_111] : memref<8x8x32xf32, #tpu.memory_space<vmem>>, vector<8x1x32xf32>
    %222 = vector.shape_cast %221 : vector<8x1x32xf32> to vector<8x32xf32>
    %223 = vector.broadcast %220 : vector<8x1xf32> to vector<8x32xf32>
    %224 = arith.mulf %223, %222 : vector<8x32xf32>
    %225 = arith.addf %218, %224 : vector<8x32xf32>
    %226 = arith.addf %219, %220 : vector<8x1xf32>
    %227 = vector.extract_strided_slice %215 {offsets = [0, 5], sizes = [8, 1], strides = [1, 1]} : vector<8x8xf32> to vector<8x1xf32>
    %c0_112 = arith.constant 0 : index
    %c5_113 = arith.constant 5 : index
    %c0_114 = arith.constant 0 : index
    %228 = vector.load %arg2[%c0_112, %c5_113, %c0_114] : memref<8x8x32xf32, #tpu.memory_space<vmem>>, vector<8x1x32xf32>
    %229 = vector.shape_cast %228 : vector<8x1x32xf32> to vector<8x32xf32>
    %230 = vector.broadcast %227 : vector<8x1xf32> to vector<8x32xf32>
    %231 = arith.mulf %230, %229 : vector<8x32xf32>
    %232 = arith.addf %225, %231 : vector<8x32xf32>
    %233 = arith.addf %226, %227 : vector<8x1xf32>
    %234 = vector.extract_strided_slice %215 {offsets = [0, 6], sizes = [8, 1], strides = [1, 1]} : vector<8x8xf32> to vector<8x1xf32>
    %c0_115 = arith.constant 0 : index
    %c6_116 = arith.constant 6 : index
    %c0_117 = arith.constant 0 : index
    %235 = vector.load %arg2[%c0_115, %c6_116, %c0_117] : memref<8x8x32xf32, #tpu.memory_space<vmem>>, vector<8x1x32xf32>
    %236 = vector.shape_cast %235 : vector<8x1x32xf32> to vector<8x32xf32>
    %237 = vector.broadcast %234 : vector<8x1xf32> to vector<8x32xf32>
    %238 = arith.mulf %237, %236 : vector<8x32xf32>
    %239 = arith.addf %232, %238 : vector<8x32xf32>
    %240 = arith.addf %233, %234 : vector<8x1xf32>
    %241 = vector.extract_strided_slice %215 {offsets = [0, 7], sizes = [8, 1], strides = [1, 1]} : vector<8x8xf32> to vector<8x1xf32>
    %c0_118 = arith.constant 0 : index
    %c7_119 = arith.constant 7 : index
    %c0_120 = arith.constant 0 : index
    %242 = vector.load %arg2[%c0_118, %c7_119, %c0_120] : memref<8x8x32xf32, #tpu.memory_space<vmem>>, vector<8x1x32xf32>
    %243 = vector.shape_cast %242 : vector<8x1x32xf32> to vector<8x32xf32>
    %244 = vector.broadcast %241 : vector<8x1xf32> to vector<8x32xf32>
    %245 = arith.mulf %244, %243 : vector<8x32xf32>
    %246 = arith.addf %239, %245 : vector<8x32xf32>
    %247 = arith.addf %240, %241 : vector<8x1xf32>
    %248 = vector.broadcast %247 : vector<8x1xf32> to vector<8x32xf32>
    %249 = arith.mulf %248, %217 : vector<8x32xf32>
    %c0_121 = arith.constant 0 : index
    %c5_122 = arith.constant 5 : index
    %c0_123 = arith.constant 0 : index
    %250 = vector.load %arg1[%c0_121, %c5_122, %c0_123] : memref<8x8x8xf32, #tpu.memory_space<vmem>>, vector<8x1x8xf32>
    %251 = vector.shape_cast %250 : vector<8x1x8xf32> to vector<8x8xf32>
    %c0_124 = arith.constant 0 : index
    %c5_125 = arith.constant 5 : index
    %c0_126 = arith.constant 0 : index
    %252 = vector.load %arg2[%c0_124, %c5_125, %c0_126] : memref<8x8x32xf32, #tpu.memory_space<vmem>>, vector<8x1x32xf32>
    %253 = vector.shape_cast %252 : vector<8x1x32xf32> to vector<8x32xf32>
    %cst_127 = arith.constant 0.000000e+00 : f32
    %254 = vector.broadcast %cst_127 : f32 to vector<8x32xf32>
    %cst_128 = arith.constant 0.000000e+00 : f32
    %255 = vector.broadcast %cst_128 : f32 to vector<8x1xf32>
    %256 = vector.extract_strided_slice %251 {offsets = [0, 5], sizes = [8, 1], strides = [1, 1]} : vector<8x8xf32> to vector<8x1xf32>
    %c0_129 = arith.constant 0 : index
    %c5_130 = arith.constant 5 : index
    %c0_131 = arith.constant 0 : index
    %257 = vector.load %arg2[%c0_129, %c5_130, %c0_131] : memref<8x8x32xf32, #tpu.memory_space<vmem>>, vector<8x1x32xf32>
    %258 = vector.shape_cast %257 : vector<8x1x32xf32> to vector<8x32xf32>
    %259 = vector.broadcast %256 : vector<8x1xf32> to vector<8x32xf32>
    %260 = arith.mulf %259, %258 : vector<8x32xf32>
    %261 = arith.addf %254, %260 : vector<8x32xf32>
    %262 = arith.addf %255, %256 : vector<8x1xf32>
    %263 = vector.extract_strided_slice %251 {offsets = [0, 6], sizes = [8, 1], strides = [1, 1]} : vector<8x8xf32> to vector<8x1xf32>
    %c0_132 = arith.constant 0 : index
    %c6_133 = arith.constant 6 : index
    %c0_134 = arith.constant 0 : index
    %264 = vector.load %arg2[%c0_132, %c6_133, %c0_134] : memref<8x8x32xf32, #tpu.memory_space<vmem>>, vector<8x1x32xf32>
    %265 = vector.shape_cast %264 : vector<8x1x32xf32> to vector<8x32xf32>
    %266 = vector.broadcast %263 : vector<8x1xf32> to vector<8x32xf32>
    %267 = arith.mulf %266, %265 : vector<8x32xf32>
    %268 = arith.addf %261, %267 : vector<8x32xf32>
    %269 = arith.addf %262, %263 : vector<8x1xf32>
    %270 = vector.extract_strided_slice %251 {offsets = [0, 7], sizes = [8, 1], strides = [1, 1]} : vector<8x8xf32> to vector<8x1xf32>
    %c0_135 = arith.constant 0 : index
    %c7_136 = arith.constant 7 : index
    %c0_137 = arith.constant 0 : index
    %271 = vector.load %arg2[%c0_135, %c7_136, %c0_137] : memref<8x8x32xf32, #tpu.memory_space<vmem>>, vector<8x1x32xf32>
    %272 = vector.shape_cast %271 : vector<8x1x32xf32> to vector<8x32xf32>
    %273 = vector.broadcast %270 : vector<8x1xf32> to vector<8x32xf32>
    %274 = arith.mulf %273, %272 : vector<8x32xf32>
    %275 = arith.addf %268, %274 : vector<8x32xf32>
    %276 = arith.addf %269, %270 : vector<8x1xf32>
    %277 = vector.broadcast %276 : vector<8x1xf32> to vector<8x32xf32>
    %278 = arith.mulf %277, %253 : vector<8x32xf32>
    %c0_138 = arith.constant 0 : index
    %c6_139 = arith.constant 6 : index
    %c0_140 = arith.constant 0 : index
    %279 = vector.load %arg1[%c0_138, %c6_139, %c0_140] : memref<8x8x8xf32, #tpu.memory_space<vmem>>, vector<8x1x8xf32>
    %280 = vector.shape_cast %279 : vector<8x1x8xf32> to vector<8x8xf32>
    %c0_141 = arith.constant 0 : index
    %c6_142 = arith.constant 6 : index
    %c0_143 = arith.constant 0 : index
    %281 = vector.load %arg2[%c0_141, %c6_142, %c0_143] : memref<8x8x32xf32, #tpu.memory_space<vmem>>, vector<8x1x32xf32>
    %282 = vector.shape_cast %281 : vector<8x1x32xf32> to vector<8x32xf32>
    %cst_144 = arith.constant 0.000000e+00 : f32
    %283 = vector.broadcast %cst_144 : f32 to vector<8x32xf32>
    %cst_145 = arith.constant 0.000000e+00 : f32
    %284 = vector.broadcast %cst_145 : f32 to vector<8x1xf32>
    %285 = vector.extract_strided_slice %280 {offsets = [0, 6], sizes = [8, 1], strides = [1, 1]} : vector<8x8xf32> to vector<8x1xf32>
    %c0_146 = arith.constant 0 : index
    %c6_147 = arith.constant 6 : index
    %c0_148 = arith.constant 0 : index
    %286 = vector.load %arg2[%c0_146, %c6_147, %c0_148] : memref<8x8x32xf32, #tpu.memory_space<vmem>>, vector<8x1x32xf32>
    %287 = vector.shape_cast %286 : vector<8x1x32xf32> to vector<8x32xf32>
    %288 = vector.broadcast %285 : vector<8x1xf32> to vector<8x32xf32>
    %289 = arith.mulf %288, %287 : vector<8x32xf32>
    %290 = arith.addf %283, %289 : vector<8x32xf32>
    %291 = arith.addf %284, %285 : vector<8x1xf32>
    %292 = vector.extract_strided_slice %280 {offsets = [0, 7], sizes = [8, 1], strides = [1, 1]} : vector<8x8xf32> to vector<8x1xf32>
    %c0_149 = arith.constant 0 : index
    %c7_150 = arith.constant 7 : index
    %c0_151 = arith.constant 0 : index
    %293 = vector.load %arg2[%c0_149, %c7_150, %c0_151] : memref<8x8x32xf32, #tpu.memory_space<vmem>>, vector<8x1x32xf32>
    %294 = vector.shape_cast %293 : vector<8x1x32xf32> to vector<8x32xf32>
    %295 = vector.broadcast %292 : vector<8x1xf32> to vector<8x32xf32>
    %296 = arith.mulf %295, %294 : vector<8x32xf32>
    %297 = arith.addf %290, %296 : vector<8x32xf32>
    %298 = arith.addf %291, %292 : vector<8x1xf32>
    %299 = vector.broadcast %298 : vector<8x1xf32> to vector<8x32xf32>
    %300 = arith.mulf %299, %282 : vector<8x32xf32>
    %c0_152 = arith.constant 0 : index
    %c7_153 = arith.constant 7 : index
    %c0_154 = arith.constant 0 : index
    %301 = vector.load %arg1[%c0_152, %c7_153, %c0_154] : memref<8x8x8xf32, #tpu.memory_space<vmem>>, vector<8x1x8xf32>
    %302 = vector.shape_cast %301 : vector<8x1x8xf32> to vector<8x8xf32>
    %c0_155 = arith.constant 0 : index
    %c7_156 = arith.constant 7 : index
    %c0_157 = arith.constant 0 : index
    %303 = vector.load %arg2[%c0_155, %c7_156, %c0_157] : memref<8x8x32xf32, #tpu.memory_space<vmem>>, vector<8x1x32xf32>
    %304 = vector.shape_cast %303 : vector<8x1x32xf32> to vector<8x32xf32>
    %cst_158 = arith.constant 0.000000e+00 : f32
    %305 = vector.broadcast %cst_158 : f32 to vector<8x32xf32>
    %cst_159 = arith.constant 0.000000e+00 : f32
    %306 = vector.broadcast %cst_159 : f32 to vector<8x1xf32>
    %307 = vector.extract_strided_slice %302 {offsets = [0, 7], sizes = [8, 1], strides = [1, 1]} : vector<8x8xf32> to vector<8x1xf32>
    %c0_160 = arith.constant 0 : index
    %c7_161 = arith.constant 7 : index
    %c0_162 = arith.constant 0 : index
    %308 = vector.load %arg2[%c0_160, %c7_161, %c0_162] : memref<8x8x32xf32, #tpu.memory_space<vmem>>, vector<8x1x32xf32>
    %309 = vector.shape_cast %308 : vector<8x1x32xf32> to vector<8x32xf32>
    %310 = vector.broadcast %307 : vector<8x1xf32> to vector<8x32xf32>
    %311 = arith.mulf %310, %309 : vector<8x32xf32>
    %312 = arith.addf %305, %311 : vector<8x32xf32>
    %313 = arith.addf %306, %307 : vector<8x1xf32>
    %314 = vector.broadcast %313 : vector<8x1xf32> to vector<8x32xf32>
    %315 = arith.mulf %314, %304 : vector<8x32xf32>
    %316 = tpu.concatenate %60, %63, %117, %120, %167, %170, %210, %213, %246, %249, %275, %278, %297, %300, %312, %315 in 1 : vector<8x32xf32>, vector<8x32xf32>, vector<8x32xf32>, vector<8x32xf32>, vector<8x32xf32>, vector<8x32xf32>, vector<8x32xf32>, vector<8x32xf32>, vector<8x32xf32>, vector<8x32xf32>, vector<8x32xf32>, vector<8x32xf32>, vector<8x32xf32>, vector<8x32xf32>, vector<8x32xf32>, vector<8x32xf32> -> vector<8x512xf32>
    %c0_163 = arith.constant 0 : index
    %c0_164 = arith.constant 0 : index
    %317 = vector.load %arg3[%c0_163, %c0_164] : memref<8x512xf32, #tpu.memory_space<vmem>>, vector<8x512xf32>
    tpu.vector_store %arg3[%c0_163, %c0_164], %316 {strides = array<i32>} : memref<8x512xf32, #tpu.memory_space<vmem>>, vector<8x512xf32>,
    return
  }
  func.func @transform_0(%arg0: i32) -> (i32, i32, i32) {
    %c0_i32 = arith.constant 0 : i32
    %c0_i32_0 = arith.constant 0 : i32
    %c0_i32_1 = arith.constant 0 : i32
    return %arg0, %c0_i32, %c0_i32_0 : i32, i32, i32
  }
  func.func @transform_1(%arg0: i32) -> (i32, i32, i32) {
    %c0_i32 = arith.constant 0 : i32
    %c0_i32_0 = arith.constant 0 : i32
    %c0_i32_1 = arith.constant 0 : i32
    return %arg0, %c0_i32, %c0_i32_0 : i32, i32, i32
  }
  func.func @transform_2(%arg0: i32) -> (i32, i32) {
    %c0_i32 = arith.constant 0 : i32
    %c0_i32_0 = arith.constant 0 : i32
    return %arg0, %c0_i32 : i32, i32
  }
}

</mosaic_0001>

<bundles_post_ra>
// kernel: tpu_custom_call.1
= control target key start
LH: loop header
LB: loop body
LE: loop exit
PB: predicated region body
PF: predicated region fallthrough
CT: control target
= control target key end

     0   :  { %7 = vsyncpa [#allocation3], 0  ;;  %s7092_s0 = inlined_call_operand.hbm [shape: f32[8,8,8], index: 0, kind: input, shape index: {}]   ;;  %s7093_s1 = inlined_call_operand.hbm [shape: f32[8,8,32], index: 1, kind: input, shape index: {}]   ;;  %s7094_s2 = inlined_call_operand.hbm [shape: f32[8,512], index: 2, kind: output, shape index: {}]  }
   0x1   :  { %8 = vsyncpa [#allocation6], 0 }
   0x2   :  { %9 = vsyncpa [#allocation4], 0  ;;  %s3975_s9 = smov [#allocation2]   ;;  %s3903_s13 = scalar_lea.hbm %s7092_s0, 1024 }
   0x3   :  { %s15_s10 = sshll.u32 %s3975_s9, 4  ;;  %p3904_p0 = scmp.ne.s32.totalorder %s7092_s0, %s3903_s13  ;;  %s16_s10 = int_to_ptr.vmem [resolvable:$true] %s15_s10 }
   0x4   :  { %p3907_p1 = scmp.lt.u32.totalorder %s3903_s13, %s7092_s0 }
   0x6   :  { %p3909_p2 = pnand %p3907_p1, %p3904_p0 }
   0x8   :  { %3912 = shalt.err (!%p3909_p2)
}
   0x9   :  { %s3913_s18 = scalar_lea.vmem %s16_s10, 1024  ;;  %p3918_p4 = scmp.lt.s32.totalorder %s16_s10, %s16_s10 }
   0xa   :  { %p3914_p3 = scmp.ne.s32.totalorder %s16_s10, %s3913_s18  ;;  %p3919_p5 = scmp.lt.s32.totalorder %s3913_s18, %s3913_s18 }
   0xc   :  { %p3920_p6 = por %p3919_p5, %p3918_p4 }
   0xe   :  { %p3921_p7 = pnand %p3920_p6, %p3914_p3 }
  0x10   :  { %3924 = shalt.err (!%p3921_p7)
}
  0x11   :  { %s3976_s19 = smov 128   ;;  %s3977_s20 = smov 8  }
  0x12   :  { %21 = dma.hbm_to_vmem [thread:$0]  %s7092_s0, 1024, %s16_s10, [#allocation3], %s3976_s19, %s3976_s19, %s3977_s20  }
  0x13   :  { %s3978_s23 = smov [#allocation5]   ;;  %s3925_s27 = scalar_lea.hbm %s7093_s1, 1024 }
  0x14   :  { %s27_s24 = sshll.u32 %s3978_s23, 4  ;;  %p3926_p8 = scmp.ne.s32.totalorder %s7093_s1, %s3925_s27  ;;  %s28_s24 = int_to_ptr.vmem [resolvable:$true] %s27_s24 }
  0x15   :  { %p3929_p9 = scmp.lt.u32.totalorder %s3925_s27, %s7093_s1 }
  0x17   :  { %p3931_p10 = pnand %p3929_p9, %p3926_p8 }
  0x19   :  { %3934 = shalt.err (!%p3931_p10)
}
  0x1a   :  { %s3935_s4 = scalar_lea.vmem %s28_s24, 1024  ;;  %p3940_p12 = scmp.lt.s32.totalorder %s28_s24, %s28_s24 }
  0x1b   :  { %p3936_p11 = scmp.ne.s32.totalorder %s28_s24, %s3935_s4  ;;  %p3941_p13 = scmp.lt.s32.totalorder %s3935_s4, %s3935_s4 }
  0x1d   :  { %p3942_p0 = por %p3941_p13, %p3940_p12 }
  0x1f   :  { %p3943_p1 = pnand %p3942_p0, %p3936_p11 }
  0x21   :  { %3946 = shalt.err (!%p3943_p1)
}
  0x22   :  { %33 = dma.hbm_to_vmem [thread:$0]  %s7093_s1, 1024, %s28_s24, [#allocation6], %s3976_s19, %s3976_s19, %s3977_s20  }
  0x23   :  { %3969 = dma.done.wait [#allocation3], 1024  }
  0x24   :  { %3970 = vsyncadd [#allocation3], 4294966272 }
  0x25   :  { %3971 = dma.done.wait [#allocation6], 1024  }
  0x26   :  { %3972 = vsyncadd [#allocation6], 4294966272  ;;  %v3979_v0 = vmov 0   ;;  %v4039_v1 = vld [vmem:[#allocation2 + $0x10] sm:$0x1]  ;;  %v7107_v9 = vmov 1  }
  0x27   :  { %3762 = vset.pattern.permute.xlu1 %v3979_v0  ;;  %3761 = vset.pattern.permute.xlu0 %v3979_v0  ;;  %v4041_v2 = vld [vmem:[#allocation2] sm:$0x1]  ;;  %v4045_v3 = vld [vmem:[#allocation2 + $0x18] sm:$0x1]  ;;  %v4047_v4 = vld [vmem:[#allocation2 + $0x8] sm:$0x1] }
  0x28   :  { %68 = vperm.xlu1 %3762, %v4039_v1   ;;  %58 = vperm.xlu0 %3761, %v4041_v2   ;;  %v4051_v5 = vld [vmem:[#allocation2 + $0x28] sm:$0x1]  ;;  %v4053_v6 = vld [vmem:[#allocation2 + $0x20] sm:$0x1]  ;;  %v4057_v7 = vld [vmem:[#allocation2 + $0x38] sm:$0x1] }
  0x29   :  { %v4059_v8 = vld [vmem:[#allocation2 + $0x30] sm:$0x1]  ;;  %s3981_s1 = smov 127   ;;  %s3982_s6 = smov 126   ;;  %v7105_v10 = vmov 2   ;;  %v7103_v11 = vmov 3  }
  0x2a   :  { %s3984_s7 = smov 125   ;;  %s3985_s8 = smov 124   ;;  %v7101_v12 = vmov 4   ;;  %v7099_v16 = vmov 5   ;;  %v7097_v25 = vmov 6   ;;  %v7095_v41 = vmov 7  }
  0x2b   :  { %s3987_s9 = smov 123   ;;  %s3988_s10 = smov 122   ;;  %vm3313_vm0 = vcmask 1041409   ;;  %vm3316_vm1 = vcmask 1042434   ;;  %vm3319_vm2 = vcmask 1043459   ;;  %vm3322_vm3 = vcmask 1044484  }
  0x2c   :  { %73 = vperm.xlu1 %3762, %v4045_v3   ;;  %63 = vperm.xlu0 %3761, %v4047_v4   ;;  %s3990_s11 = smov 121   ;;  %vm3325_vm4 = vcmask 1045509   ;;  %vm3328_vm5 = vcmask 1046534   ;;  %vm3331_vm6 = vcmask 1047559   ;;  %s3994_s12 = smov 32   ;;  %vm3705_vm7 = vcmask 523264  }
  0x2d   :  { %s3995_s13 = smov 64   ;;  %s3996_s14 = smov 96   ;;  %vm3703_vm8 = vcmask 261120   ;;  %vm3707_vm9 = vcmask 785408  }
  0x2e   :  { %s3997_s15 = smov [#allocation7]  }
  0x2f   :  { %s3728_s16 = sshll.u32 %s3997_s15, 4  ;;  %s3729_s16 = int_to_ptr.vmem [resolvable:$true] %s3728_s16 }
  0x30   :  { %83 = vperm.xlu1 %3762, %v4051_v5   ;;  %78 = vperm.xlu0 %3761, %v4053_v6   ;;  %s3947_s17 = scalar_lea.vmem %s3729_s16, 512  ;;  %p3952_p3 = scmp.lt.s32.totalorder %s3729_s16, %s3729_s16 }
  0x31   :  { %p3948_p2 = scmp.ne.s32.totalorder %s3729_s16, %s3947_s17  ;;  %p3953_p4 = scmp.lt.s32.totalorder %s3947_s17, %s3947_s17 }
  0x33   :  { %p3954_p5 = por %p3953_p4, %p3952_p3 }
  0x34   :  { %93 = vperm.xlu1 %3762, %v4057_v7   ;;  %88 = vperm.xlu0 %3761, %v4059_v8  }
  0x35   :  { %p3955_p6 = pnand %p3954_p5, %p3948_p2 }
  0x38   :  { %3763 = vset.pattern.permute.xlu1 %v7107_v9  ;;  %178 = vrot.lane.b32.xlu0 %v4047_v4, %s3981_s1 }
  0x39   :  { %133 = vperm.xlu1 %3763, %v4047_v4  }
  0x3c   :  { %182 = vrot.lane.b32.xlu0 %v4045_v3, %s3981_s1 }
  0x3d   :  { %137 = vperm.xlu1 %3763, %v4039_v1  }
  0x40   :  { %186 = vrot.lane.b32.xlu0 %v4051_v5, %s3981_s1 }
  0x41   :  { %145 = vperm.xlu1 %3763, %v4053_v6  }
  0x44   :  { %190 = vrot.lane.b32.xlu0 %v4057_v7, %s3981_s1 }
  0x45   :  { %153 = vperm.xlu1 %3763, %v4059_v8  }
  0x48   :  { %264 = vrot.lane.b32.xlu0 %v4041_v2, %s3982_s6 }
  0x49   :  { %176 = vrot.lane.b32.xlu1 %v4041_v2, %s3981_s1 }
  0x4a   :  { %3764 = vset.pattern.permute.xlu1 %v7105_v10 }
  0x4c   :  { %268 = vrot.lane.b32.xlu0 %v4039_v1, %s3982_s6 }
  0x4d   :  { %180 = vrot.lane.b32.xlu1 %v4039_v1, %s3981_s1 }
  0x50   :  { %272 = vrot.lane.b32.xlu0 %v4053_v6, %s3982_s6 }
  0x51   :  { %184 = vrot.lane.b32.xlu1 %v4053_v6, %s3981_s1 }
  0x54   :  { %276 = vrot.lane.b32.xlu0 %v4059_v8, %s3982_s6 }
  0x55   :  { %188 = vrot.lane.b32.xlu1 %v4059_v8, %s3981_s1 }
  0x58   :  { %354 = vrot.lane.b32.xlu0 %v4047_v4, %s3984_s7 }
  0x59   :  { %217 = vperm.xlu1 %3764, %v4041_v2  }
  0x5c   :  { %358 = vrot.lane.b32.xlu0 %v4045_v3, %s3984_s7 }
  0x5d   :  { %225 = vperm.xlu1 %3764, %v4039_v1  }
  0x60   :  { %362 = vrot.lane.b32.xlu0 %v4051_v5, %s3984_s7 }
  0x61   :  { %229 = vperm.xlu1 %3764, %v4045_v3  }
  0x64   :  { %366 = vrot.lane.b32.xlu0 %v4057_v7, %s3984_s7 }
  0x65   :  { %237 = vperm.xlu1 %3764, %v4051_v5  }
  0x68   :  { %440 = vrot.lane.b32.xlu0 %v4041_v2, %s3985_s8 }
  0x69   :  { %245 = vperm.xlu1 %3764, %v4057_v7  }
  0x6c   :  { %444 = vrot.lane.b32.xlu0 %v4039_v1, %s3985_s8 }
  0x6d   :  { %266 = vrot.lane.b32.xlu1 %v4047_v4, %s3982_s6 }
  0x6e   :  { %3765 = vset.pattern.permute.xlu1 %v7103_v11 }
  0x70   :  { %448 = vrot.lane.b32.xlu0 %v4053_v6, %s3985_s8 }
  0x71   :  { %270 = vrot.lane.b32.xlu1 %v4045_v3, %s3982_s6 }
  0x74   :  { %452 = vrot.lane.b32.xlu0 %v4059_v8, %s3985_s8 }
  0x75   :  { %274 = vrot.lane.b32.xlu1 %v4051_v5, %s3982_s6 }
  0x78   :  { %530 = vrot.lane.b32.xlu0 %v4047_v4, %s3987_s9 }
  0x79   :  { %278 = vrot.lane.b32.xlu1 %v4057_v7, %s3982_s6 }
  0x7c   :  { %534 = vrot.lane.b32.xlu0 %v4045_v3, %s3987_s9 }
  0x7d   :  { %309 = vperm.xlu1 %3765, %v4047_v4  }
  0x80   :  { %538 = vrot.lane.b32.xlu0 %v4051_v5, %s3987_s9 }
  0x81   :  { %313 = vperm.xlu1 %3765, %v4039_v1  }
  0x84   :  { %542 = vrot.lane.b32.xlu0 %v4057_v7, %s3987_s9 }
  0x85   :  { %321 = vperm.xlu1 %3765, %v4053_v6  }
  0x88   :  { %616 = vrot.lane.b32.xlu0 %v4041_v2, %s3988_s10 }
  0x89   :  { %329 = vperm.xlu1 %3765, %v4059_v8  }
  0x8c   :  { %620 = vrot.lane.b32.xlu0 %v4039_v1, %s3988_s10 }
  0x8d   :  { %352 = vrot.lane.b32.xlu1 %v4041_v2, %s3984_s7 }
  0x8e   :  { %3766 = vset.pattern.permute.xlu1 %v7101_v12 }
  0x90   :  { %624 = vrot.lane.b32.xlu0 %v4053_v6, %s3988_s10 }
  0x91   :  { %356 = vrot.lane.b32.xlu1 %v4039_v1, %s3984_s7 }
  0x94   :  { %628 = vrot.lane.b32.xlu0 %v4059_v8, %s3988_s10 }
  0x95   :  { %360 = vrot.lane.b32.xlu1 %v4053_v6, %s3984_s7 }
  0x98   :  { %706 = vrot.lane.b32.xlu0 %v4047_v4, %s3990_s11 }
  0x99   :  { %364 = vrot.lane.b32.xlu1 %v4059_v8, %s3984_s7 }
  0x9c   :  { %710 = vrot.lane.b32.xlu0 %v4045_v3, %s3990_s11 }
  0x9d   :  { %393 = vperm.xlu1 %3766, %v4041_v2  }
  0xa0   :  { %714 = vrot.lane.b32.xlu0 %v4051_v5, %s3990_s11 }
  0xa1   :  { %401 = vperm.xlu1 %3766, %v4039_v1  }
  0xa4   :  { %718 = vrot.lane.b32.xlu0 %v4057_v7, %s3990_s11 }
  0xa5   :  { %405 = vperm.xlu1 %3766, %v4045_v3  }
  0xa7   :  { %v4163_v13 = vpop.permute.xlu1 %68  ;;  %v4207_v27 = vpop.permute.xlu0 %58 }
  0xa8   :  { %7159 = vst [vmem:[#allocation11_spill] sm:$0xff] %v4163_v13  ;;  %7167 = vst [vmem:[#allocation19_spill] sm:$0xff] %v4207_v27 }
  0xa9   :  { %413 = vperm.xlu1 %3766, %v4051_v5  }
  0xab   :  { %v4166_v14 = vpop.permute.xlu1 %73  ;;  %v4213_v29 = vpop.permute.xlu0 %63 }
  0xac   :  { %7160 = vst [vmem:[#allocation12_spill] sm:$0xff] %v4166_v14  ;;  %7169 = vst [vmem:[#allocation21_spill] sm:$0xff] %v4213_v29 }
  0xad   :  { %421 = vperm.xlu1 %3766, %v4057_v7  }
  0xaf   :  { %v4169_v15 = vpop.permute.xlu1 %83  ;;  %v4222_v32 = vpop.permute.xlu0 %78 }
  0xb0   :  { %7161 = vst [vmem:[#allocation13_spill] sm:$0xff] %v4169_v15  ;;  %7172 = vst [vmem:[#allocation24_spill] sm:$0xff] %v4222_v32 }
  0xb1   :  { %442 = vrot.lane.b32.xlu1 %v4047_v4, %s3985_s8 }
  0xb2   :  { %3767 = vset.pattern.permute.xlu1 %v7099_v16 }
  0xb3   :  { %v4174_v17 = vpop.permute.xlu1 %93  ;;  %v4227_v34 = vpop.permute.xlu0 %88 }
  0xb4   :  { %7162 = vst [vmem:[#allocation14_spill] sm:$0xff] %v4174_v17  ;;  %7174 = vst [vmem:[#allocation26_spill] sm:$0xff] %v4227_v34 }
  0xb5   :  { %446 = vrot.lane.b32.xlu1 %v4045_v3, %s3985_s8 }
  0xb7   :  { %v4235_v37 = vpop.permute.xlu0 %178 }
  0xb8   :  { %v4178_v18 = vpop.permute.xlu1 %133 }
  0xb9   :  { %7163 = vst [vmem:[#allocation15_spill] sm:$0xff] %v4178_v18  ;;  %450 = vrot.lane.b32.xlu1 %v4051_v5, %s3985_s8 }
  0xbb   :  { %v4240_v39 = vpop.permute.xlu0 %182 }
  0xbc   :  { %v4182_v19 = vpop.permute.xlu1 %137 }
  0xbd   :  { %7164 = vst [vmem:[#allocation16_spill] sm:$0xff] %v4182_v19  ;;  %454 = vrot.lane.b32.xlu1 %v4057_v7, %s3985_s8 }
  0xbf   :  { %v4251_v43 = vpop.permute.xlu0 %186 }
  0xc0   :  { %v4186_v20 = vpop.permute.xlu1 %145 }
  0xc1   :  { %7165 = vst [vmem:[#allocation17_spill] sm:$0xff] %v4186_v20  ;;  %485 = vperm.xlu1 %3767, %v4047_v4  }
  0xc3   :  { %v4257_v45 = vpop.permute.xlu0 %190 }
  0xc4   :  { %v4189_v21 = vpop.permute.xlu1 %153 }
  0xc5   :  { %7166 = vst [vmem:[#allocation18_spill] sm:$0xff] %v4189_v21  ;;  %489 = vperm.xlu1 %3767, %v4039_v1  }
  0xc7   :  { %v4266_v48 = vpop.permute.xlu0 %264 }
  0xc8   :  { %v4192_v22 = vpop.permute.xlu1 %176 }
  0xc9   :  { %497 = vperm.xlu1 %3767, %v4053_v6  }
  0xcb   :  { %v4271_v50 = vpop.permute.xlu0 %268 }
  0xcc   :  { %v4195_v23 = vpop.permute.xlu1 %180 }
  0xcd   :  { %505 = vperm.xlu1 %3767, %v4059_v8  }
  0xcf   :  { %v4279_v53 = vpop.permute.xlu0 %272 }
  0xd0   :  { %v4198_v24 = vpop.permute.xlu1 %184 }
  0xd1   :  { %528 = vrot.lane.b32.xlu1 %v4041_v2, %s3987_s9 }
  0xd2   :  { %3768 = vset.pattern.permute.xlu1 %v7097_v25 }
  0xd3   :  { %v4286_v55 = vpop.permute.xlu0 %276 }
  0xd4   :  { %v4203_v26 = vpop.permute.xlu1 %188 }
  0xd5   :  { %532 = vrot.lane.b32.xlu1 %v4039_v1, %s3987_s9 }
  0xd7   :  { %v355_v57 = vpop.permute.xlu0 %354 }
  0xd8   :  { %v4209_v28 = vpop.permute.xlu1 %217 }
  0xd9   :  { %7168 = vst [vmem:[#allocation20_spill] sm:$0xff] %v4209_v28  ;;  %536 = vrot.lane.b32.xlu1 %v4053_v6, %s3987_s9 }
  0xdb   :  { %v4300_v60 = vpop.permute.xlu0 %358 }
  0xdc   :  { %v4215_v30 = vpop.permute.xlu1 %225 }
  0xdd   :  { %7170 = vst [vmem:[#allocation22_spill] sm:$0xff] %v4215_v30  ;;  %540 = vrot.lane.b32.xlu1 %v4059_v8, %s3987_s9 }
  0xdf   :  { %v4304_v62 = vpop.permute.xlu0 %362 }
  0xe0   :  { %v4219_v31 = vpop.permute.xlu1 %229 }
  0xe1   :  { %7171 = vst [vmem:[#allocation23_spill] sm:$0xff] %v4219_v31  ;;  %569 = vperm.xlu1 %3768, %v4041_v2  }
  0xe4   :  { %v4224_v33 = vpop.permute.xlu1 %237 }
  0xe5   :  { %7173 = vst [vmem:[#allocation25_spill] sm:$0xff] %v4224_v33  ;;  %577 = vperm.xlu1 %3768, %v4039_v1  }
  0xe8   :  { %v4229_v35 = vpop.permute.xlu1 %245 }
  0xe9   :  { %7175 = vst [vmem:[#allocation27_spill] sm:$0xff] %v4229_v35  ;;  %581 = vperm.xlu1 %3768, %v4045_v3  }
  0xec   :  { %v4232_v36 = vpop.permute.xlu1 %266 }
  0xed   :  { %589 = vperm.xlu1 %3768, %v4051_v5  }
  0xf0   :  { %v4237_v38 = vpop.permute.xlu1 %270 }
  0xf1   :  { %597 = vperm.xlu1 %3768, %v4057_v7  }
  0xf4   :  { %v4242_v40 = vpop.permute.xlu1 %274 }
  0xf5   :  { %618 = vrot.lane.b32.xlu1 %v4047_v4, %s3988_s10 }
  0xf6   :  { %3769 = vset.pattern.permute.xlu1 %v7095_v41  ;;  %v4310_v41 = vpop.permute.xlu0 %366 }
  0xf8   :  { %v4247_v42 = vpop.permute.xlu1 %278 }
  0xf9   :  { %622 = vrot.lane.b32.xlu1 %v4045_v3, %s3988_s10 }
  0xfa   :  { %v441_v16 = vpop.permute.xlu0 %440 }
  0xfc   :  { %v4253_v44 = vpop.permute.xlu1 %309 }
  0xfd   :  { %7176 = vst [vmem:[#allocation28_spill] sm:$0xff] %v4253_v44  ;;  %626 = vrot.lane.b32.xlu1 %v4051_v5, %s3988_s10 }
  0xfe   :  { %v445_v11 = vpop.permute.xlu0 %444 }
 0x100   :  { %v4259_v46 = vpop.permute.xlu1 %313 }
 0x101   :  { %7177 = vst [vmem:[#allocation29_spill] sm:$0xff] %v4259_v46  ;;  %630 = vrot.lane.b32.xlu1 %v4057_v7, %s3988_s10 }
 0x104   :  { %v4263_v47 = vpop.permute.xlu1 %321 }
 0x105   :  { %7178 = vst [vmem:[#allocation30_spill] sm:$0xff] %v4263_v47  ;;  %661 = vperm.xlu1 %3769, %v4047_v4  }
 0x108   :  { %v4268_v49 = vpop.permute.xlu1 %329 }
 0x109   :  { %7179 = vst [vmem:[#allocation31_spill] sm:$0xff] %v4268_v49  ;;  %665 = vperm.xlu1 %3769, %v4039_v1  }
 0x10c   :  { %v4273_v51 = vpop.permute.xlu1 %352 }
 0x10d   :  { %673 = vperm.xlu1 %3769, %v4053_v6  }
 0x110   :  { %v4276_v52 = vpop.permute.xlu1 %356 }
 0x111   :  { %681 = vperm.xlu1 %3769, %v4059_v8  }
 0x114   :  { %v4281_v54 = vpop.permute.xlu1 %360 }
 0x115   :  { %704 = vrot.lane.b32.xlu1 %v4041_v2, %s3990_s11 }
 0x116   :  { %3770 = vset.pattern.permute.xlu1 %v3979_v0 }
 0x118   :  { %v4288_v56 = vpop.permute.xlu1 %364 }
 0x119   :  { %708 = vrot.lane.b32.xlu1 %v4039_v1, %s3990_s11 }
 0x11c   :  { %v4292_v58 = vpop.permute.xlu1 %393 }
 0x11d   :  { %7180 = vst [vmem:[#allocation32_spill] sm:$0xff] %v4292_v58  ;;  %712 = vrot.lane.b32.xlu1 %v4053_v6, %s3990_s11  ;;  %v4318_v58 = vpop.permute.xlu0 %448 }
 0x120   :  { %v4296_v59 = vpop.permute.xlu1 %401 }
 0x121   :  { %7181 = vst [vmem:[#allocation33_spill] sm:$0xff] %v4296_v59  ;;  %716 = vrot.lane.b32.xlu1 %v4059_v8, %s3990_s11  ;;  %v4322_v49 = vpop.permute.xlu0 %452 }
 0x124   :  { %v4302_v61 = vpop.permute.xlu1 %405 }
 0x125   :  { %7182 = vst [vmem:[#allocation34_spill] sm:$0xff] %v4302_v61 }
 0x128   :  { %v4306_v63 = vpop.permute.xlu1 %413 }
 0x129   :  { %7183 = vst [vmem:[#allocation35_spill] sm:$0xff] %v4306_v63 }
 0x12c   :  { %v4308_v0 = vpop.permute.xlu1 %421 }
 0x12d   :  { %7184 = vst [vmem:[#allocation36_spill] sm:$0xff] %v4308_v0  ;;  %v531_v0 = vpop.permute.xlu0 %530 }
 0x130   :  { %v443_v25 = vpop.permute.xlu1 %442 }
 0x131   :  { %v4330_v35 = vpop.permute.xlu0 %534 }
 0x134   :  { %v4312_v12 = vpop.permute.xlu1 %446 }
 0x135   :  { %v4332_v31 = vpop.permute.xlu0 %538 }
 0x138   :  { %v4314_v10 = vpop.permute.xlu1 %450 }
 0x139   :  { %v4334_v17 = vpop.permute.xlu0 %542 }
 0x13a   :  { %7189 = vst [vmem:[#allocation41_spill] sm:$0xff] %v4334_v17 }
 0x13c   :  { %v4316_v9 = vpop.permute.xlu1 %454 }
 0x140   :  { %v4320_v61 = vpop.permute.xlu1 %485 }
 0x141   :  { %7185 = vst [vmem:[#allocation37_spill] sm:$0xff] %v4320_v61  ;;  %v617_v61 = vpop.permute.xlu0 %616 }
 0x144   :  { %v4324_v63 = vpop.permute.xlu1 %489 }
 0x145   :  { %7186 = vst [vmem:[#allocation38_spill] sm:$0xff] %v4324_v63  ;;  %v621_v63 = vpop.permute.xlu0 %620 }
 0x148   :  { %v4326_v47 = vpop.permute.xlu1 %497 }
 0x149   :  { %7187 = vst [vmem:[#allocation39_spill] sm:$0xff] %v4326_v47  ;;  %v625_v21 = vpop.permute.xlu0 %624 }
 0x14c   :  { %v4328_v44 = vpop.permute.xlu1 %505 }
 0x14d   :  { %7188 = vst [vmem:[#allocation40_spill] sm:$0xff] %v4328_v44  ;;  %v201_v44 = vadd.f32 %v4235_v37, %v4047_v4  ;;  %v4349_v30 = vpop.permute.xlu0 %628 }
 0x14f   :  { %v289_v27 = vadd.f32 %v4232_v36, %v201_v44  ;;  %v200_v36 = vadd.f32 %v4192_v22, %v4041_v2  ;;  %v205_v22 = vadd.f32 %v4251_v43, %v4051_v5 }
 0x150   :  { %v529_v33 = vpop.permute.xlu1 %528 }
 0x151   :  { %v377_v34 = vadd.f32 %v355_v57, %v289_v27  ;;  %v707_v13 = vpop.permute.xlu0 %706  ;;  %v202_v27 = vadd.f32 %v4195_v23, %v4039_v1 }
 0x153   :  { %v465_v32 = vadd.f32 %v443_v25, %v377_v34  ;;  %v288_v25 = vadd.f32 %v4266_v48, %v200_v36 }
 0x154   :  { %v533_v28 = vpop.permute.xlu1 %532 }
 0x158   :  { %v537_v59 = vpop.permute.xlu1 %536 }
 0x15c   :  { %v4336_v15 = vpop.permute.xlu1 %540 }
 0x160   :  { %v4338_v14 = vpop.permute.xlu1 %569 }
 0x161   :  { %7190 = vst [vmem:[#allocation42_spill] sm:$0xff] %v4338_v14  ;;  %v553_v14 = vadd.f32 %v531_v0, %v465_v32 }
 0x164   :  { %v4340_v46 = vpop.permute.xlu1 %577 }
 0x165   :  { %7191 = vst [vmem:[#allocation43_spill] sm:$0xff] %v4340_v46 }
 0x168   :  { %v4344_v47 = vpop.permute.xlu1 %581 }
 0x169   :  { %7192 = vst [vmem:[#allocation44_spill] sm:$0xff] %v4344_v47 }
 0x16c   :  { %v4347_v20 = vpop.permute.xlu1 %589 }
 0x16d   :  { %7193 = vst [vmem:[#allocation45_spill] sm:$0xff] %v4347_v20 }
 0x170   :  { %v4351_v18 = vpop.permute.xlu1 %597 }
 0x171   :  { %7194 = vst [vmem:[#allocation46_spill] sm:$0xff] %v4351_v18 }
 0x174   :  { %v619_v29 = vpop.permute.xlu1 %618 }
 0x175   :  { %v641_v46 = vadd.f32 %v619_v29, %v553_v14  ;;  %v203_v14 = vadd.f32 %v4240_v39, %v4045_v3  ;;  %v204_v29 = vadd.f32 %v4198_v24, %v4053_v6  ;;  %v206_v39 = vadd.f32 %v4203_v26, %v4059_v8 }
 0x176   :  { %v207_v6 = vadd.f32 %v4257_v45, %v4057_v7 }
 0x177   :  { %v729_v19 = vadd.f32 %v707_v13, %v641_v46  ;;  %v376_v13 = vadd.f32 %v4273_v51, %v288_v25  ;;  %v291_v46 = vadd.f32 %v4237_v38, %v203_v14  ;;  %v292_v48 = vadd.f32 %v4279_v53, %v204_v29 }
 0x178   :  { %v623_v17 = vpop.permute.xlu1 %622  ;;  %v294_v38 = vadd.f32 %v4286_v55, %v206_v39 }
 0x179   :  { %743 = vperm.xlu0 %3761, %v729_v19   ;;  %v290_v19 = vadd.f32 %v4271_v50, %v202_v27  ;;  %v464_v1 = vadd.f32 %v441_v16, %v376_v13  ;;  %v293_v50 = vadd.f32 %v4242_v40, %v205_v22  ;;  %v379_v24 = vadd.f32 %v4300_v60, %v291_v46  ;;  %v711_v60 = vpop.permute.xlu0 %710  ;;  %v4416_v46 = vld [vmem:[#allocation2 + $0x31] sm:$0x1] }
 0x17a   :  { %v380_v16 = vadd.f32 %v4281_v54, %v292_v48  ;;  %v382_v45 = vadd.f32 %v4288_v56, %v294_v38  ;;  %v7203_v48 = vmov 4  }
 0x17b   :  { %v378_v23 = vadd.f32 %v4276_v52, %v290_v19  ;;  %v552_v51 = vadd.f32 %v529_v33, %v464_v1  ;;  %v467_v52 = vadd.f32 %v4312_v12, %v379_v24  ;;  %v381_v8 = vadd.f32 %v4304_v62, %v293_v50  ;;  %v7199_v19 = vld [vmem:[#allocation41_spill] sm:$0xff]  ;;  %v4425_v1 = vld [vmem:[#allocation2 + $0x29] sm:$0x1] }
 0x17c   :  { %v627_v4 = vpop.permute.xlu1 %626  ;;  %v295_v33 = vadd.f32 %v4247_v42, %v207_v6  ;;  %v468_v40 = vadd.f32 %v4318_v58, %v380_v16 }
 0x17d   :  { %v466_v43 = vadd.f32 %v445_v11, %v378_v23  ;;  %v640_v53 = vadd.f32 %v617_v61, %v552_v51  ;;  %v555_v11 = vadd.f32 %v4330_v35, %v467_v52  ;;  %v469_v54 = vadd.f32 %v4314_v10, %v381_v8  ;;  %v715_v35 = vpop.permute.xlu0 %714 }
 0x17e   :  { %v556_v25 = vadd.f32 %v537_v59, %v468_v40  ;;  %v470_v61 = vadd.f32 %v4322_v49, %v382_v45  ;;  %v7202_v23 = vmov 3   ;;  %v7205_v51 = vmov 5  }
 0x17f   :  { %v554_v0 = vadd.f32 %v533_v28, %v466_v43  ;;  %v383_v28 = vadd.f32 %v4310_v41, %v295_v33  ;;  %v643_v62 = vadd.f32 %v623_v17, %v555_v11  ;;  %v557_v58 = vadd.f32 %v4332_v31, %v469_v54 }
 0x180   :  { %v631_v37 = vpop.permute.xlu1 %630  ;;  %v644_v27 = vadd.f32 %v625_v21, %v556_v25  ;;  %v558_v14 = vadd.f32 %v4336_v15, %v470_v61  ;;  %v7200_v21 = vmov 1  }
 0x181   :  { %v642_v55 = vadd.f32 %v621_v63, %v554_v0  ;;  %v471_v56 = vadd.f32 %v4316_v9, %v383_v28  ;;  %v731_v63 = vadd.f32 %v711_v60, %v643_v62  ;;  %v645_v59 = vadd.f32 %v627_v4, %v557_v58  ;;  %v719_v9 = vpop.permute.xlu0 %718  ;;  %v4401_v4 = vld [vmem:[#allocation2 + $0x9] sm:$0x1] }
 0x182   :  { %v646_v41 = vadd.f32 %v4349_v30, %v558_v14  ;;  %v4406_v30 = vld [vmem:[#allocation2 + $0x11] sm:$0x1] }
 0x183   :  { %v559_v29 = vadd.f32 %v7199_v19, %v471_v56  ;;  %v733_v49 = vadd.f32 %v715_v35, %v645_v59  ;;  %v7229_v56 = vmov 7  }
 0x184   :  { %v4355_v44 = vpop.permute.xlu1 %661 }
 0x185   :  { %7195 = vst [vmem:[#allocation47_spill] sm:$0xff] %v4355_v44  ;;  %v647_v31 = vadd.f32 %v631_v37, %v559_v29  ;;  %v4410_v37 = vld [vmem:[#allocation2 + $0x21] sm:$0x1] }
 0x187   :  { %v735_v15 = vadd.f32 %v719_v9, %v647_v31 }
 0x188   :  { %v4360_v34 = vpop.permute.xlu1 %665 }
 0x189   :  { %7196 = vst [vmem:[#allocation48_spill] sm:$0xff] %v4360_v34 }
 0x18c   :  { %v4370_v32 = vpop.permute.xlu1 %673 }
 0x18d   :  { %7197 = vst [vmem:[#allocation49_spill] sm:$0xff] %v4370_v32 }
 0x190   :  { %v4378_v57 = vpop.permute.xlu1 %681 }
 0x191   :  { %7198 = vst [vmem:[#allocation50_spill] sm:$0xff] %v4378_v57 }
 0x194   :  { %v705_v26 = vpop.permute.xlu1 %704 }
 0x195   :  { %v728_v36 = vadd.f32 %v705_v26, %v640_v53  ;;  %v7216_v26 = vmov 6  }
 0x197   :  { %738 = vperm.xlu1 %3770, %v728_v36  }
 0x198   :  { %v709_v12 = vpop.permute.xlu1 %708 }
 0x199   :  { %v730_v42 = vadd.f32 %v709_v12, %v642_v55 }
 0x19b   :  { %748 = vperm.xlu1 %3770, %v730_v42  }
 0x19c   :  { %v713_v10 = vpop.permute.xlu1 %712 }
 0x19d   :  { %v732_v13 = vadd.f32 %v713_v10, %v644_v27 }
 0x19f   :  { %758 = vperm.xlu0 %3761, %v732_v13   ;;  %753 = vperm.xlu1 %3770, %v731_v63  }
 0x1a0   :  { %v717_v17 = vpop.permute.xlu1 %716 }
 0x1a1   :  { %v734_v22 = vadd.f32 %v717_v17, %v646_v41 }
 0x1a3   :  { %768 = vperm.xlu0 %3761, %v734_v22   ;;  %763 = vperm.xlu1 %3770, %v733_v49  }
 0x1a7   :  { %3771 = vset.pattern.permute.xlu0 %v7200_v21  ;;  %773 = vperm.xlu1 %3770, %v735_v15  }
 0x1a8   :  { %129 = vperm.xlu0 %3771, %v4041_v2   ;;  %v4414_v2 = vld [vmem:[#allocation2 + $0x1] sm:$0x1] }
 0x1ab   :  { %3772 = vset.pattern.permute.xlu1 %v7200_v21 }
 0x1ac   :  { %141 = vperm.xlu0 %3771, %v4045_v3   ;;  %799 = vperm.xlu1 %3772, %v4401_v4   ;;  %v4420_v3 = vld [vmem:[#allocation2 + $0x19] sm:$0x1] }
 0x1b0   :  { %149 = vperm.xlu0 %3771, %v4051_v5   ;;  %804 = vperm.xlu1 %3772, %v4406_v30   ;;  %v7201_v5 = vmov 2  }
 0x1b4   :  { %157 = vperm.xlu0 %3771, %v4057_v7   ;;  %814 = vperm.xlu1 %3772, %v4410_v37   ;;  %v4429_v7 = vld [vmem:[#allocation2 + $0x39] sm:$0x1] }
 0x1b8   :  { %794 = vperm.xlu0 %3771, %v4414_v2   ;;  %824 = vperm.xlu1 %3772, %v4416_v46  }
 0x1bc   :  { %809 = vperm.xlu0 %3771, %v4420_v3   ;;  %3773 = vset.pattern.permute.xlu1 %v7201_v5 }
 0x1bd   :  { %857 = vperm.xlu1 %3773, %v4414_v2  }
 0x1c0   :  { %819 = vperm.xlu0 %3771, %v4425_v1  }
 0x1c1   :  { %865 = vperm.xlu1 %3773, %v4406_v30  }
 0x1c4   :  { %829 = vperm.xlu0 %3771, %v4429_v7  }
 0x1c5   :  { %869 = vperm.xlu1 %3773, %v4420_v3  }
 0x1c8   :  { %904 = vrot.lane.b32.xlu0 %v4414_v2, %s3981_s1 }
 0x1c9   :  { %877 = vperm.xlu1 %3773, %v4425_v1  }
 0x1cc   :  { %908 = vrot.lane.b32.xlu0 %v4406_v30, %s3981_s1 }
 0x1cd   :  { %885 = vperm.xlu1 %3773, %v4429_v7  }
 0x1d0   :  { %912 = vrot.lane.b32.xlu0 %v4410_v37, %s3981_s1 }
 0x1d1   :  { %906 = vrot.lane.b32.xlu1 %v4401_v4, %s3981_s1 }
 0x1d2   :  { %3774 = vset.pattern.permute.xlu1 %v7202_v23 }
 0x1d4   :  { %916 = vrot.lane.b32.xlu0 %v4416_v46, %s3981_s1 }
 0x1d5   :  { %910 = vrot.lane.b32.xlu1 %v4420_v3, %s3981_s1 }
 0x1d8   :  { %986 = vrot.lane.b32.xlu0 %v4401_v4, %s3982_s6 }
 0x1d9   :  { %914 = vrot.lane.b32.xlu1 %v4425_v1, %s3981_s1 }
 0x1dc   :  { %990 = vrot.lane.b32.xlu0 %v4420_v3, %s3982_s6 }
 0x1dd   :  { %918 = vrot.lane.b32.xlu1 %v4429_v7, %s3981_s1 }
 0x1e0   :  { %994 = vrot.lane.b32.xlu0 %v4425_v1, %s3982_s6 }
 0x1e1   :  { %941 = vperm.xlu1 %3774, %v4401_v4  }
 0x1e4   :  { %998 = vrot.lane.b32.xlu0 %v4429_v7, %s3982_s6 }
 0x1e5   :  { %945 = vperm.xlu1 %3774, %v4406_v30  }
 0x1e8   :  { %1064 = vrot.lane.b32.xlu0 %v4414_v2, %s3984_s7 }
 0x1e9   :  { %953 = vperm.xlu1 %3774, %v4410_v37  }
 0x1ec   :  { %1068 = vrot.lane.b32.xlu0 %v4406_v30, %s3984_s7 }
 0x1ed   :  { %961 = vperm.xlu1 %3774, %v4416_v46  }
 0x1f0   :  { %1072 = vrot.lane.b32.xlu0 %v4410_v37, %s3984_s7 }
 0x1f1   :  { %984 = vrot.lane.b32.xlu1 %v4414_v2, %s3982_s6 }
 0x1f2   :  { %3775 = vset.pattern.permute.xlu1 %v7203_v48 }
 0x1f4   :  { %1076 = vrot.lane.b32.xlu0 %v4416_v46, %s3984_s7 }
 0x1f5   :  { %988 = vrot.lane.b32.xlu1 %v4406_v30, %s3982_s6 }
 0x1f8   :  { %1146 = vrot.lane.b32.xlu0 %v4401_v4, %s3985_s8  ;;  %v4530_v16 = vpop.permute.xlu0 %743 }
 0x1f9   :  { %992 = vrot.lane.b32.xlu1 %v4410_v37, %s3982_s6  ;;  %7210 = vst [vmem:[#allocation55_spill] sm:$0xff] %v4530_v16 }
 0x1fc   :  { %1150 = vrot.lane.b32.xlu0 %v4420_v3, %s3985_s8 }
 0x1fd   :  { %996 = vrot.lane.b32.xlu1 %v4416_v46, %s3982_s6 }
 0x200   :  { %1154 = vrot.lane.b32.xlu0 %v4425_v1, %s3985_s8 }
 0x201   :  { %1017 = vperm.xlu1 %3775, %v4414_v2  }
 0x204   :  { %1158 = vrot.lane.b32.xlu0 %v4429_v7, %s3985_s8 }
 0x205   :  { %1025 = vperm.xlu1 %3775, %v4406_v30  }
 0x208   :  { %1224 = vrot.lane.b32.xlu0 %v4414_v2, %s3987_s9 }
 0x209   :  { %1029 = vperm.xlu1 %3775, %v4420_v3  }
 0x20c   :  { %1228 = vrot.lane.b32.xlu0 %v4406_v30, %s3987_s9 }
 0x20d   :  { %1037 = vperm.xlu1 %3775, %v4425_v1  }
 0x210   :  { %1232 = vrot.lane.b32.xlu0 %v4410_v37, %s3987_s9 }
 0x211   :  { %1045 = vperm.xlu1 %3775, %v4429_v7  }
 0x214   :  { %1236 = vrot.lane.b32.xlu0 %v4416_v46, %s3987_s9 }
 0x215   :  { %1066 = vrot.lane.b32.xlu1 %v4401_v4, %s3984_s7 }
 0x216   :  { %v4504_v39 = vpop.permute.xlu1 %738  ;;  %3776 = vset.pattern.permute.xlu1 %v7205_v51 }
 0x217   :  { %7204 = vst [vmem:[#allocation41_spill] sm:$0xff] %v4504_v39 }
 0x218   :  { %1306 = vrot.lane.b32.xlu0 %v4401_v4, %s3988_s10 }
 0x219   :  { %1070 = vrot.lane.b32.xlu1 %v4420_v3, %s3984_s7 }
 0x21a   :  { %v4511_v50 = vpop.permute.xlu1 %748 }
 0x21b   :  { %7206 = vst [vmem:[#allocation51_spill] sm:$0xff] %v4511_v50 }
 0x21c   :  { %1310 = vrot.lane.b32.xlu0 %v4420_v3, %s3988_s10 }
 0x21d   :  { %1074 = vrot.lane.b32.xlu1 %v4425_v1, %s3984_s7 }
 0x21e   :  { %v4517_v6 = vpop.permute.xlu1 %753  ;;  %v4535_v52 = vpop.permute.xlu0 %758 }
 0x21f   :  { %7207 = vst [vmem:[#allocation52_spill] sm:$0xff] %v4517_v6  ;;  %7212 = vst [vmem:[#allocation57_spill] sm:$0xff] %v4535_v52 }
 0x220   :  { %1314 = vrot.lane.b32.xlu0 %v4425_v1, %s3988_s10 }
 0x221   :  { %1078 = vrot.lane.b32.xlu1 %v4429_v7, %s3984_s7 }
 0x222   :  { %v4523_v24 = vpop.permute.xlu1 %763  ;;  %v4541_v0 = vpop.permute.xlu0 %768 }
 0x223   :  { %7208 = vst [vmem:[#allocation53_spill] sm:$0xff] %v4523_v24  ;;  %7214 = vst [vmem:[#allocation59_spill] sm:$0xff] %v4541_v0 }
 0x224   :  { %1318 = vrot.lane.b32.xlu0 %v4429_v7, %s3988_s10 }
 0x225   :  { %1101 = vperm.xlu1 %3776, %v4401_v4  }
 0x226   :  { %v4528_v43 = vpop.permute.xlu1 %773 }
 0x227   :  { %7209 = vst [vmem:[#allocation54_spill] sm:$0xff] %v4528_v43  ;;  %v4550_v40 = vpop.permute.xlu0 %129 }
 0x228   :  { %7218 = vst [vmem:[#allocation62_spill] sm:$0xff] %v4550_v40 }
 0x229   :  { %1105 = vperm.xlu1 %3776, %v4406_v30  }
 0x22b   :  { %v4533_v38 = vpop.permute.xlu1 %799  ;;  %v4558_v36 = vpop.permute.xlu0 %141 }
 0x22c   :  { %7211 = vst [vmem:[#allocation56_spill] sm:$0xff] %v4533_v38  ;;  %7220 = vst [vmem:[#allocation64_spill] sm:$0xff] %v4558_v36 }
 0x22d   :  { %1113 = vperm.xlu1 %3776, %v4410_v37  }
 0x22f   :  { %v4538_v53 = vpop.permute.xlu1 %804  ;;  %v4564_v11 = vpop.permute.xlu0 %149 }
 0x230   :  { %7213 = vst [vmem:[#allocation58_spill] sm:$0xff] %v4538_v53  ;;  %7222 = vst [vmem:[#allocation66_spill] sm:$0xff] %v4564_v11 }
 0x231   :  { %1121 = vperm.xlu1 %3776, %v4416_v46  }
 0x233   :  { %v4543_v8 = vpop.permute.xlu1 %814  ;;  %v4572_v25 = vpop.permute.xlu0 %157 }
 0x234   :  { %7215 = vst [vmem:[#allocation60_spill] sm:$0xff] %v4543_v8  ;;  %7225 = vst [vmem:[#allocation69_spill] sm:$0xff] %v4572_v25 }
 0x235   :  { %1144 = vrot.lane.b32.xlu1 %v4414_v2, %s3985_s8 }
 0x236   :  { %3777 = vset.pattern.permute.xlu1 %v7216_v26 }
 0x237   :  { %v4548_v33 = vpop.permute.xlu1 %824  ;;  %v4577_v28 = vpop.permute.xlu0 %794 }
 0x238   :  { %7217 = vst [vmem:[#allocation61_spill] sm:$0xff] %v4548_v33  ;;  %7227 = vst [vmem:[#allocation71_spill] sm:$0xff] %v4577_v28 }
 0x239   :  { %1148 = vrot.lane.b32.xlu1 %v4406_v30, %s3985_s8 }
 0x23b   :  { %v4585_v42 = vpop.permute.xlu0 %809 }
 0x23c   :  { %v4554_v45 = vpop.permute.xlu1 %857  ;;  %7228 = vst [vmem:[#allocation72_spill] sm:$0xff] %v4585_v42 }
 0x23d   :  { %7219 = vst [vmem:[#allocation63_spill] sm:$0xff] %v4554_v45  ;;  %1152 = vrot.lane.b32.xlu1 %v4410_v37, %s3985_s8 }
 0x23f   :  { %v4592_v27 = vpop.permute.xlu0 %819 }
 0x240   :  { %v4560_v60 = vpop.permute.xlu1 %865  ;;  %7230 = vst [vmem:[#allocation73_spill] sm:$0xff] %v4592_v27 }
 0x241   :  { %7221 = vst [vmem:[#allocation65_spill] sm:$0xff] %v4560_v60  ;;  %1156 = vrot.lane.b32.xlu1 %v4416_v46, %s3985_s8 }
 0x243   :  { %v4602_v10 = vpop.permute.xlu0 %829 }
 0x244   :  { %v4566_v54 = vpop.permute.xlu1 %869  ;;  %7232 = vst [vmem:[#allocation75_spill] sm:$0xff] %v4602_v10 }
 0x245   :  { %7223 = vst [vmem:[#allocation67_spill] sm:$0xff] %v4566_v54  ;;  %1177 = vperm.xlu1 %3777, %v4414_v2  }
 0x247   :  { %v4608_v59 = vpop.permute.xlu0 %904 }
 0x248   :  { %v4569_v55 = vpop.permute.xlu1 %877 }
 0x249   :  { %7224 = vst [vmem:[#allocation68_spill] sm:$0xff] %v4569_v55  ;;  %1185 = vperm.xlu1 %3777, %v4406_v30  }
 0x24b   :  { %v4616_v29 = vpop.permute.xlu0 %908 }
 0x24c   :  { %v4574_v12 = vpop.permute.xlu1 %885 }
 0x24d   :  { %7226 = vst [vmem:[#allocation70_spill] sm:$0xff] %v4574_v12  ;;  %1189 = vperm.xlu1 %3777, %v4420_v3  }
 0x24f   :  { %v4621_v17 = vpop.permute.xlu0 %912 }
 0x250   :  { %v4579_v61 = vpop.permute.xlu1 %906 }
 0x251   :  { %1197 = vperm.xlu1 %3777, %v4425_v1  }
 0x253   :  { %v4630_v22 = vpop.permute.xlu0 %916 }
 0x254   :  { %v4582_v62 = vpop.permute.xlu1 %910 }
 0x255   :  { %1205 = vperm.xlu1 %3777, %v4429_v7  }
 0x257   :  { %v987_v15 = vpop.permute.xlu0 %986 }
 0x258   :  { %v4587_v58 = vpop.permute.xlu1 %914 }
 0x259   :  { %1226 = vrot.lane.b32.xlu1 %v4401_v4, %s3987_s9 }
 0x25a   :  { %3778 = vset.pattern.permute.xlu1 %v7229_v56 }
 0x25c   :  { %v4594_v14 = vpop.permute.xlu1 %918 }
 0x25d   :  { %1230 = vrot.lane.b32.xlu1 %v4420_v3, %s3987_s9 }
 0x260   :  { %v4598_v35 = vpop.permute.xlu1 %941 }
 0x261   :  { %7231 = vst [vmem:[#allocation74_spill] sm:$0xff] %v4598_v35  ;;  %1234 = vrot.lane.b32.xlu1 %v4425_v1, %s3987_s9  ;;  %v991_v35 = vpop.permute.xlu0 %990 }
 0x264   :  { %v4604_v63 = vpop.permute.xlu1 %945 }
 0x265   :  { %7233 = vst [vmem:[#allocation76_spill] sm:$0xff] %v4604_v63  ;;  %1238 = vrot.lane.b32.xlu1 %v4429_v7, %s3987_s9 }
 0x268   :  { %v4610_v13 = vpop.permute.xlu1 %953 }
 0x269   :  { %7234 = vst [vmem:[#allocation77_spill] sm:$0xff] %v4610_v13  ;;  %1261 = vperm.xlu1 %3778, %v4401_v4  }
 0x26c   :  { %v4613_v19 = vpop.permute.xlu1 %961 }
 0x26d   :  { %7235 = vst [vmem:[#allocation78_spill] sm:$0xff] %v4613_v19  ;;  %1265 = vperm.xlu1 %3778, %v4406_v30  }
 0x270   :  { %v4618_v41 = vpop.permute.xlu1 %984 }
 0x271   :  { %1273 = vperm.xlu1 %3778, %v4410_v37  }
 0x274   :  { %v4623_v49 = vpop.permute.xlu1 %988 }
 0x275   :  { %1281 = vperm.xlu1 %3778, %v4416_v46  }
 0x278   :  { %v4626_v31 = vpop.permute.xlu1 %992 }
 0x279   :  { %1304 = vrot.lane.b32.xlu1 %v4414_v2, %s3988_s10 }
 0x27a   :  { %3779 = vset.pattern.permute.xlu1 %v7200_v21  ;;  %v4647_v21 = vpop.permute.xlu0 %994 }
 0x27c   :  { %v4633_v9 = vpop.permute.xlu1 %996 }
 0x27d   :  { %1308 = vrot.lane.b32.xlu1 %v4406_v30, %s3988_s10 }
 0x27e   :  { %v4653_v12 = vpop.permute.xlu0 %998 }
 0x280   :  { %v4637_v19 = vpop.permute.xlu1 %1017 }
 0x281   :  { %7236 = vst [vmem:[#allocation79_spill] sm:$0xff] %v4637_v19  ;;  %1312 = vrot.lane.b32.xlu1 %v4410_v37, %s3988_s10 }
 0x282   :  { %v1065_v10 = vpop.permute.xlu0 %1064 }
 0x284   :  { %v4641_v13 = vpop.permute.xlu1 %1025 }
 0x285   :  { %7237 = vst [vmem:[#allocation80_spill] sm:$0xff] %v4641_v13  ;;  %1316 = vrot.lane.b32.xlu1 %v4416_v46, %s3988_s10 }
 0x286   :  { %v1069_v54 = vpop.permute.xlu0 %1068 }
 0x288   :  { %v4645_v33 = vpop.permute.xlu1 %1029 }
 0x289   :  { %7238 = vst [vmem:[#allocation81_spill] sm:$0xff] %v4645_v33 }
 0x28a   :  { %v1073_v42 = vpop.permute.xlu0 %1072 }
 0x28c   :  { %v4649_v8 = vpop.permute.xlu1 %1037 }
 0x28d   :  { %7239 = vst [vmem:[#allocation82_spill] sm:$0xff] %v4649_v8 }
 0x28e   :  { %v4661_v33 = vpop.permute.xlu0 %1076 }
 0x290   :  { %v4651_v38 = vpop.permute.xlu1 %1045 }
 0x291   :  { %7240 = vst [vmem:[#allocation83_spill] sm:$0xff] %v4651_v38 }
 0x292   :  { %v1147_v8 = vpop.permute.xlu0 %1146 }
 0x294   :  { %v1067_v19 = vpop.permute.xlu1 %1066 }
 0x296   :  { %v1151_v32 = vpop.permute.xlu0 %1150 }
 0x298   :  { %v1071_v55 = vpop.permute.xlu1 %1070 }
 0x29a   :  { %v4669_v63 = vpop.permute.xlu0 %1154 }
 0x29c   :  { %v4655_v27 = vpop.permute.xlu1 %1074 }
 0x29e   :  { %v4671_v20 = vpop.permute.xlu0 %1158 }
 0x2a0   :  { %v4657_v45 = vpop.permute.xlu1 %1078 }
 0x2a2   :  { %v1225_v11 = vpop.permute.xlu0 %1224 }
 0x2a4   :  { %v4659_v28 = vpop.permute.xlu1 %1101 }
 0x2a5   :  { %7241 = vst [vmem:[#allocation84_spill] sm:$0xff] %v4659_v28 }
 0x2a6   :  { %v1229_v36 = vpop.permute.xlu0 %1228 }
 0x2a8   :  { %v4663_v13 = vpop.permute.xlu1 %1105 }
 0x2a9   :  { %7242 = vst [vmem:[#allocation85_spill] sm:$0xff] %v4663_v13 }
 0x2ac   :  { %v4665_v57 = vpop.permute.xlu1 %1113 }
 0x2ad   :  { %7243 = vst [vmem:[#allocation86_spill] sm:$0xff] %v4665_v57  ;;  %v1233_v57 = vpop.permute.xlu0 %1232 }
 0x2b0   :  { %v4667_v38 = vpop.permute.xlu1 %1121 }
 0x2b1   :  { %7244 = vst [vmem:[#allocation87_spill] sm:$0xff] %v4667_v38  ;;  %v929_v38 = vadd.f32 %v4579_v61, %v4401_v4  ;;  %v1237_v0 = vpop.permute.xlu0 %1236  ;;  %v928_v61 = vadd.f32 %v4608_v59, %v4414_v2  ;;  %v934_v59 = vadd.f32 %v4630_v22, %v4416_v46  ;;  %v935_v22 = vadd.f32 %v4594_v14, %v4429_v7 }
 0x2b3   :  { %v1009_v47 = vadd.f32 %v987_v15, %v929_v38 }
 0x2b4   :  { %v1145_v44 = vpop.permute.xlu1 %1144 }
 0x2b5   :  { %v1089_v43 = vadd.f32 %v1067_v19, %v1009_v47  ;;  %v1307_v39 = vpop.permute.xlu0 %1306  ;;  %v930_v47 = vadd.f32 %v4616_v29, %v4406_v30 }
 0x2b7   :  { %v1169_v24 = vadd.f32 %v1147_v8, %v1089_v43  ;;  %v1008_v43 = vadd.f32 %v4618_v41, %v928_v61  ;;  %v933_v41 = vadd.f32 %v4587_v58, %v4425_v1 }
 0x2b8   :  { %v1149_v53 = vpop.permute.xlu1 %1148 }
 0x2b9   :  { %v1013_v61 = vadd.f32 %v4647_v21, %v933_v41 }
 0x2bc   :  { %v1153_v18 = vpop.permute.xlu1 %1152 }
 0x2c0   :  { %v1157_v25 = vpop.permute.xlu1 %1156 }
 0x2c4   :  { %v4673_v28 = vpop.permute.xlu1 %1177 }
 0x2c5   :  { %7245 = vst [vmem:[#allocation88_spill] sm:$0xff] %v4673_v28 }
 0x2c8   :  { %v4675_v60 = vpop.permute.xlu1 %1185 }
 0x2c9   :  { %7246 = vst [vmem:[#allocation89_spill] sm:$0xff] %v4675_v60 }
 0x2cc   :  { %v4677_v13 = vpop.permute.xlu1 %1189 }
 0x2cd   :  { %7247 = vst [vmem:[#allocation90_spill] sm:$0xff] %v4677_v13 }
 0x2d0   :  { %v4681_v40 = vpop.permute.xlu1 %1197 }
 0x2d1   :  { %7248 = vst [vmem:[#allocation91_spill] sm:$0xff] %v4681_v40 }
 0x2d4   :  { %v4683_v34 = vpop.permute.xlu1 %1205 }
 0x2d5   :  { %7249 = vst [vmem:[#allocation92_spill] sm:$0xff] %v4683_v34 }
 0x2d8   :  { %v1227_v52 = vpop.permute.xlu1 %1226 }
 0x2d9   :  { %v1249_v28 = vadd.f32 %v1227_v52, %v1169_v24  ;;  %v1010_v24 = vadd.f32 %v4623_v49, %v930_v47  ;;  %v931_v52 = vadd.f32 %v4582_v62, %v4420_v3 }
 0x2db   :  { %v1329_v6 = vadd.f32 %v1307_v39, %v1249_v28  ;;  %v932_v39 = vadd.f32 %v4621_v17, %v4410_v37  ;;  %v1011_v30 = vadd.f32 %v991_v35, %v931_v52  ;;  %v1090_v19 = vadd.f32 %v1069_v54, %v1010_v24  ;;  %v1311_v35 = vpop.permute.xlu0 %1310 }
 0x2dc   :  { %v1231_v16 = vpop.permute.xlu1 %1230 }
 0x2dd   :  { %1343 = vperm.xlu0 %3771, %v1329_v6   ;;  %v1088_v6 = vadd.f32 %v1065_v10, %v1008_v43  ;;  %v1012_v29 = vadd.f32 %v4626_v31, %v932_v39  ;;  %v1091_v17 = vadd.f32 %v1071_v55, %v1011_v30  ;;  %v1170_v15 = vadd.f32 %v1149_v53, %v1090_v19  ;;  %v4739_v30 = vld [vmem:[#allocation2 + $0x32] sm:$0x1]  ;;  %v4743_v19 = vld [vmem:[#allocation2 + $0x2] sm:$0x1] }
 0x2de   :  { %v1093_v31 = vadd.f32 %v4655_v27, %v1013_v61  ;;  %v1015_v53 = vadd.f32 %v4653_v12, %v935_v22 }
 0x2df   :  { %v1168_v8 = vadd.f32 %v1145_v44, %v1088_v6  ;;  %v1092_v62 = vadd.f32 %v1073_v42, %v1012_v29  ;;  %v1014_v44 = vadd.f32 %v4633_v9, %v934_v59  ;;  %v1171_v54 = vadd.f32 %v1151_v32, %v1091_v17  ;;  %v1315_v32 = vpop.permute.xlu0 %1314 }
 0x2e0   :  { %v1235_v60 = vpop.permute.xlu1 %1234  ;;  %v1250_v43 = vadd.f32 %v1229_v36, %v1170_v15  ;;  %v1173_v9 = vadd.f32 %v4669_v63, %v1093_v31  ;;  %v1095_v21 = vadd.f32 %v4657_v45, %v1015_v53  ;;  %v4719_v45 = vld [vmem:[#allocation2 + $0x8] sm:$0x1] }
 0x2e1   :  { %v1248_v10 = vadd.f32 %v1225_v11, %v1168_v8  ;;  %v1172_v39 = vadd.f32 %v1153_v18, %v1092_v62  ;;  %v1094_v11 = vadd.f32 %v4661_v33, %v1014_v44  ;;  %v1251_v58 = vadd.f32 %v1231_v16, %v1171_v54 }
 0x2e2   :  { %v1253_v36 = vadd.f32 %v1235_v60, %v1173_v9  ;;  %v1175_v52 = vadd.f32 %v4671_v20, %v1095_v21  ;;  %v4722_v60 = vld [vmem:[#allocation2 + $0xa] sm:$0x1]  ;;  %v4725_v20 = vld [vmem:[#allocation2 + $0x20] sm:$0x1] }
 0x2e3   :  { %v1252_v6 = vadd.f32 %v1233_v57, %v1172_v39  ;;  %v1174_v14 = vadd.f32 %v1157_v25, %v1094_v11  ;;  %v1331_v27 = vadd.f32 %v1311_v35, %v1251_v58  ;;  %v1319_v63 = vpop.permute.xlu0 %1318  ;;  %v4731_v25 = vld [vmem:[#allocation2 + $0x30] sm:$0x1] }
 0x2e4   :  { %v1239_v13 = vpop.permute.xlu1 %1238  ;;  %v1333_v16 = vadd.f32 %v1315_v32, %v1253_v36 }
 0x2e5   :  { %v1254_v8 = vadd.f32 %v1237_v0, %v1174_v14  ;;  %v1255_v12 = vadd.f32 %v1239_v13, %v1175_v52  ;;  %v4729_v0 = vld [vmem:[#allocation2 + $0x12] sm:$0x1]  ;;  %v4735_v13 = vld [vmem:[#allocation2 + $0x22] sm:$0x1] }
 0x2e7   :  { %v1335_v57 = vadd.f32 %v1319_v63, %v1255_v12 }
 0x2e8   :  { %v4685_v50 = vpop.permute.xlu1 %1261 }
 0x2e9   :  { %7250 = vst [vmem:[#allocation93_spill] sm:$0xff] %v4685_v50 }
 0x2ec   :  { %v4689_v40 = vpop.permute.xlu1 %1265 }
 0x2ed   :  { %7251 = vst [vmem:[#allocation94_spill] sm:$0xff] %v4689_v40 }
 0x2f0   :  { %v4694_v38 = vpop.permute.xlu1 %1273 }
 0x2f1   :  { %7252 = vst [vmem:[#allocation95_spill] sm:$0xff] %v4694_v38 }
 0x2f4   :  { %v4701_v28 = vpop.permute.xlu1 %1281 }
 0x2f5   :  { %7253 = vst [vmem:[#allocation96_spill] sm:$0xff] %v4701_v28 }
 0x2f8   :  { %v1305_v49 = vpop.permute.xlu1 %1304 }
 0x2f9   :  { %v1328_v47 = vadd.f32 %v1305_v49, %v1248_v10 }
 0x2fb   :  { %1338 = vperm.xlu1 %3779, %v1328_v47  }
 0x2fc   :  { %v1309_v55 = vpop.permute.xlu1 %1308 }
 0x2fd   :  { %v1330_v42 = vadd.f32 %v1309_v55, %v1250_v43 }
 0x2ff   :  { %1348 = vperm.xlu1 %3779, %v1330_v42  }
 0x300   :  { %v1313_v24 = vpop.permute.xlu1 %1312 }
 0x301   :  { %v1332_v18 = vadd.f32 %v1313_v24, %v1252_v6 }
 0x303   :  { %1358 = vperm.xlu0 %3771, %v1332_v18   ;;  %1353 = vperm.xlu1 %3779, %v1331_v27  }
 0x304   :  { %v1317_v33 = vpop.permute.xlu1 %1316 }
 0x305   :  { %v1334_v59 = vadd.f32 %v1317_v33, %v1254_v8 }
 0x307   :  { %1368 = vperm.xlu0 %3771, %v1334_v59   ;;  %1363 = vperm.xlu1 %3779, %v1333_v16  }
 0x30b   :  { %3780 = vset.pattern.permute.xlu0 %v7201_v5  ;;  %1373 = vperm.xlu1 %3779, %v1335_v57  }
 0x30c   :  { %221 = vperm.xlu0 %3780, %v4719_v45  }
 0x30f   :  { %3781 = vset.pattern.permute.xlu1 %v7201_v5 }
 0x310   :  { %233 = vperm.xlu0 %3780, %v4725_v20   ;;  %1399 = vperm.xlu1 %3781, %v4722_v60  }
 0x314   :  { %241 = vperm.xlu0 %3780, %v4731_v25   ;;  %1404 = vperm.xlu1 %3781, %v4729_v0  }
 0x318   :  { %861 = vperm.xlu0 %3780, %v4401_v4   ;;  %1414 = vperm.xlu1 %3781, %v4735_v13   ;;  %v4750_v4 = vld [vmem:[#allocation2 + $0x1a] sm:$0x1] }
 0x31c   :  { %873 = vperm.xlu0 %3780, %v4410_v37   ;;  %1424 = vperm.xlu1 %3781, %v4739_v30   ;;  %v4754_v37 = vld [vmem:[#allocation2 + $0x2a] sm:$0x1] }
 0x320   :  { %881 = vperm.xlu0 %3780, %v4416_v46   ;;  %3782 = vset.pattern.permute.xlu1 %v7202_v23  ;;  %v4758_v46 = vld [vmem:[#allocation2 + $0x3a] sm:$0x1] }
 0x321   :  { %1457 = vperm.xlu1 %3782, %v4743_v19  }
 0x324   :  { %1394 = vperm.xlu0 %3780, %v4743_v19  }
 0x325   :  { %1465 = vperm.xlu1 %3782, %v4729_v0  }
 0x328   :  { %1409 = vperm.xlu0 %3780, %v4750_v4  }
 0x329   :  { %1469 = vperm.xlu1 %3782, %v4750_v4  }
 0x32c   :  { %1419 = vperm.xlu0 %3780, %v4754_v37  }
 0x32d   :  { %1477 = vperm.xlu1 %3782, %v4754_v37  }
 0x330   :  { %1429 = vperm.xlu0 %3780, %v4758_v46  }
 0x331   :  { %1485 = vperm.xlu1 %3782, %v4758_v46  }
 0x334   :  { %1504 = vrot.lane.b32.xlu0 %v4743_v19, %s3981_s1 }
 0x335   :  { %1506 = vrot.lane.b32.xlu1 %v4722_v60, %s3981_s1 }
 0x336   :  { %3783 = vset.pattern.permute.xlu1 %v7203_v48 }
 0x338   :  { %1508 = vrot.lane.b32.xlu0 %v4729_v0, %s3981_s1 }
 0x339   :  { %1510 = vrot.lane.b32.xlu1 %v4750_v4, %s3981_s1 }
 0x33c   :  { %1512 = vrot.lane.b32.xlu0 %v4735_v13, %s3981_s1 }
 0x33d   :  { %1514 = vrot.lane.b32.xlu1 %v4754_v37, %s3981_s1 }
 0x340   :  { %1516 = vrot.lane.b32.xlu0 %v4739_v30, %s3981_s1 }
 0x341   :  { %1518 = vrot.lane.b32.xlu1 %v4758_v46, %s3981_s1 }
 0x344   :  { %1586 = vrot.lane.b32.xlu0 %v4722_v60, %s3982_s6 }
 0x345   :  { %1541 = vperm.xlu1 %3783, %v4722_v60  }
 0x348   :  { %1590 = vrot.lane.b32.xlu0 %v4750_v4, %s3982_s6 }
 0x349   :  { %1545 = vperm.xlu1 %3783, %v4729_v0  }
 0x34c   :  { %1594 = vrot.lane.b32.xlu0 %v4754_v37, %s3982_s6 }
 0x34d   :  { %1553 = vperm.xlu1 %3783, %v4735_v13  }
 0x350   :  { %1598 = vrot.lane.b32.xlu0 %v4758_v46, %s3982_s6 }
 0x351   :  { %1561 = vperm.xlu1 %3783, %v4739_v30  }
 0x354   :  { %1664 = vrot.lane.b32.xlu0 %v4743_v19, %s3984_s7 }
 0x355   :  { %1584 = vrot.lane.b32.xlu1 %v4743_v19, %s3982_s6 }
 0x356   :  { %3784 = vset.pattern.permute.xlu1 %v7205_v51 }
 0x358   :  { %1668 = vrot.lane.b32.xlu0 %v4729_v0, %s3984_s7 }
 0x359   :  { %1588 = vrot.lane.b32.xlu1 %v4729_v0, %s3982_s6 }
 0x35c   :  { %1672 = vrot.lane.b32.xlu0 %v4735_v13, %s3984_s7  ;;  %v4834_v41 = vpop.permute.xlu0 %1343 }
 0x35d   :  { %1592 = vrot.lane.b32.xlu1 %v4735_v13, %s3982_s6  ;;  %7255 = vst [vmem:[#allocation98_spill] sm:$0xff] %v4834_v41 }
 0x360   :  { %1676 = vrot.lane.b32.xlu0 %v4739_v30, %s3984_s7 }
 0x361   :  { %1596 = vrot.lane.b32.xlu1 %v4739_v30, %s3982_s6 }
 0x364   :  { %1746 = vrot.lane.b32.xlu0 %v4722_v60, %s3985_s8 }
 0x365   :  { %1617 = vperm.xlu1 %3784, %v4743_v19  }
 0x368   :  { %1750 = vrot.lane.b32.xlu0 %v4750_v4, %s3985_s8 }
 0x369   :  { %1625 = vperm.xlu1 %3784, %v4729_v0  }
 0x36c   :  { %1754 = vrot.lane.b32.xlu0 %v4754_v37, %s3985_s8 }
 0x36d   :  { %1629 = vperm.xlu1 %3784, %v4750_v4  }
 0x370   :  { %1758 = vrot.lane.b32.xlu0 %v4758_v46, %s3985_s8 }
 0x371   :  { %1637 = vperm.xlu1 %3784, %v4754_v37  }
 0x374   :  { %1824 = vrot.lane.b32.xlu0 %v4743_v19, %s3987_s9 }
 0x375   :  { %1645 = vperm.xlu1 %3784, %v4758_v46  }
 0x378   :  { %1828 = vrot.lane.b32.xlu0 %v4729_v0, %s3987_s9 }
 0x379   :  { %1666 = vrot.lane.b32.xlu1 %v4722_v60, %s3984_s7 }
 0x37a   :  { %v4827_v29 = vpop.permute.xlu1 %1338  ;;  %3785 = vset.pattern.permute.xlu1 %v7216_v26 }
 0x37b   :  { %7254 = vst [vmem:[#allocation97_spill] sm:$0xff] %v4827_v29 }
 0x37c   :  { %1832 = vrot.lane.b32.xlu0 %v4735_v13, %s3987_s9 }
 0x37d   :  { %1670 = vrot.lane.b32.xlu1 %v4750_v4, %s3984_s7 }
 0x37e   :  { %v4836_v17 = vpop.permute.xlu1 %1348 }
 0x37f   :  { %7256 = vst [vmem:[#allocation99_spill] sm:$0xff] %v4836_v17 }
 0x380   :  { %1836 = vrot.lane.b32.xlu0 %v4739_v30, %s3987_s9 }
 0x381   :  { %1674 = vrot.lane.b32.xlu1 %v4754_v37, %s3984_s7 }
 0x382   :  { %v4842_v10 = vpop.permute.xlu1 %1353  ;;  %v4844_v15 = vpop.permute.xlu0 %1358 }
 0x383   :  { %7257 = vst [vmem:[#allocation100_spill] sm:$0xff] %v4842_v10  ;;  %7258 = vst [vmem:[#allocation101_spill] sm:$0xff] %v4844_v15 }
 0x385   :  { %1678 = vrot.lane.b32.xlu1 %v4758_v46, %s3984_s7 }
 0x386   :  { %v4848_v49 = vpop.permute.xlu1 %1363  ;;  %v4850_v61 = vpop.permute.xlu0 %1368 }
 0x387   :  { %7259 = vst [vmem:[#allocation102_spill] sm:$0xff] %v4848_v49  ;;  %7260 = vst [vmem:[#allocation103_spill] sm:$0xff] %v4850_v61 }
 0x389   :  { %1701 = vperm.xlu1 %3785, %v4722_v60  }
 0x38a   :  { %v4853_v62 = vpop.permute.xlu1 %1373 }
 0x38b   :  { %7261 = vst [vmem:[#allocation104_spill] sm:$0xff] %v4853_v62  ;;  %v4855_v44 = vpop.permute.xlu0 %221 }
 0x38c   :  { %7262 = vst [vmem:[#allocation105_spill] sm:$0xff] %v4855_v44 }
 0x38d   :  { %1705 = vperm.xlu1 %3785, %v4729_v0  }
 0x38f   :  { %v4858_v47 = vpop.permute.xlu1 %1399  ;;  %v4860_v22 = vpop.permute.xlu0 %233 }
 0x390   :  { %7263 = vst [vmem:[#allocation106_spill] sm:$0xff] %v4858_v47  ;;  %7264 = vst [vmem:[#allocation107_spill] sm:$0xff] %v4860_v22 }
 0x391   :  { %1713 = vperm.xlu1 %3785, %v4735_v13  }
 0x393   :  { %v4863_v35 = vpop.permute.xlu1 %1404  ;;  %v4865_v54 = vpop.permute.xlu0 %241 }
 0x394   :  { %7265 = vst [vmem:[#allocation108_spill] sm:$0xff] %v4863_v35  ;;  %7266 = vst [vmem:[#allocation109_spill] sm:$0xff] %v4865_v54 }
 0x395   :  { %1721 = vperm.xlu1 %3785, %v4739_v30  }
 0x397   :  { %v4868_v31 = vpop.permute.xlu1 %1414  ;;  %v4870_v43 = vpop.permute.xlu0 %861 }
 0x398   :  { %7267 = vst [vmem:[#allocation110_spill] sm:$0xff] %v4868_v31  ;;  %7268 = vst [vmem:[#allocation111_spill] sm:$0xff] %v4870_v43 }
 0x399   :  { %1744 = vrot.lane.b32.xlu1 %v4743_v19, %s3985_s8 }
 0x39a   :  { %3786 = vset.pattern.permute.xlu1 %v7229_v56 }
 0x39b   :  { %v4875_v39 = vpop.permute.xlu1 %1424  ;;  %v4877_v55 = vpop.permute.xlu0 %873 }
 0x39c   :  { %7269 = vst [vmem:[#allocation112_spill] sm:$0xff] %v4875_v39  ;;  %7270 = vst [vmem:[#allocation113_spill] sm:$0xff] %v4877_v55 }
 0x39d   :  { %1748 = vrot.lane.b32.xlu1 %v4729_v0, %s3985_s8 }
 0x39f   :  { %v4881_v53 = vpop.permute.xlu0 %881 }
 0x3a0   :  { %7271 = vst [vmem:[#allocation114_spill] sm:$0xff] %v4881_v53  ;;  %v4883_v11 = vpop.permute.xlu1 %1457 }
 0x3a1   :  { %7272 = vst [vmem:[#allocation115_spill] sm:$0xff] %v4883_v11  ;;  %1752 = vrot.lane.b32.xlu1 %v4735_v13, %s3985_s8 }
 0x3a3   :  { %v4891_v42 = vpop.permute.xlu0 %1394 }
 0x3a4   :  { %v4887_v58 = vpop.permute.xlu1 %1465  ;;  %7274 = vst [vmem:[#allocation117_spill] sm:$0xff] %v4891_v42 }
 0x3a5   :  { %7273 = vst [vmem:[#allocation116_spill] sm:$0xff] %v4887_v58  ;;  %1756 = vrot.lane.b32.xlu1 %v4739_v30, %s3985_s8 }
 0x3a7   :  { %v4896_v21 = vpop.permute.xlu0 %1409 }
 0x3a8   :  { %v4893_v9 = vpop.permute.xlu1 %1469  ;;  %7276 = vst [vmem:[#allocation119_spill] sm:$0xff] %v4896_v21 }
 0x3a9   :  { %7275 = vst [vmem:[#allocation118_spill] sm:$0xff] %v4893_v9  ;;  %1777 = vperm.xlu1 %3786, %v4743_v19  }
 0x3ab   :  { %v4904_v32 = vpop.permute.xlu0 %1419 }
 0x3ac   :  { %v4898_v6 = vpop.permute.xlu1 %1477  ;;  %7279 = vst [vmem:[#allocation122_spill] sm:$0xff] %v4904_v32 }
 0x3ad   :  { %7277 = vst [vmem:[#allocation120_spill] sm:$0xff] %v4898_v6  ;;  %1785 = vperm.xlu1 %3786, %v4729_v0  }
 0x3af   :  { %v4909_v27 = vpop.permute.xlu0 %1429 }
 0x3b0   :  { %v4901_v14 = vpop.permute.xlu1 %1485  ;;  %7280 = vst [vmem:[#allocation123_spill] sm:$0xff] %v4909_v27 }
 0x3b1   :  { %7278 = vst [vmem:[#allocation121_spill] sm:$0xff] %v4901_v14  ;;  %1789 = vperm.xlu1 %3786, %v4750_v4  }
 0x3b3   :  { %v1505_v52 = vpop.permute.xlu0 %1504 }
 0x3b4   :  { %v4906_v24 = vpop.permute.xlu1 %1506 }
 0x3b5   :  { %1797 = vperm.xlu1 %3786, %v4754_v37  }
 0x3b7   :  { %v1509_v33 = vpop.permute.xlu0 %1508 }
 0x3b8   :  { %v4911_v36 = vpop.permute.xlu1 %1510 }
 0x3b9   :  { %1805 = vperm.xlu1 %3786, %v4758_v46  }
 0x3bb   :  { %v1513_v59 = vpop.permute.xlu0 %1512 }
 0x3bc   :  { %v4914_v18 = vpop.permute.xlu1 %1514 }
 0x3bd   :  { %1826 = vrot.lane.b32.xlu1 %v4722_v60, %s3987_s9 }
 0x3be   :  { %3787 = vset.pattern.permute.xlu1 %v7201_v5 }
 0x3bf   :  { %v1517_v5 = vpop.permute.xlu0 %1516 }
 0x3c0   :  { %v4919_v8 = vpop.permute.xlu1 %1518 }
 0x3c1   :  { %1830 = vrot.lane.b32.xlu1 %v4750_v4, %s3987_s9 }
 0x3c3   :  { %v1587_v27 = vpop.permute.xlu0 %1586 }
 0x3c4   :  { %v4923_v16 = vpop.permute.xlu1 %1541 }
 0x3c5   :  { %7281 = vst [vmem:[#allocation124_spill] sm:$0xff] %v4923_v16  ;;  %1834 = vrot.lane.b32.xlu1 %v4754_v37, %s3987_s9 }
 0x3c7   :  { %v1591_v61 = vpop.permute.xlu0 %1590 }
 0x3c8   :  { %v4927_v12 = vpop.permute.xlu1 %1545 }
 0x3c9   :  { %7282 = vst [vmem:[#allocation125_spill] sm:$0xff] %v4927_v12  ;;  %1838 = vrot.lane.b32.xlu1 %v4758_v46, %s3987_s9 }
 0x3cb   :  { %v1595_v29 = vpop.permute.xlu0 %1594 }
 0x3cc   :  { %v4931_v63 = vpop.permute.xlu1 %1553 }
 0x3cd   :  { %7283 = vst [vmem:[#allocation126_spill] sm:$0xff] %v4931_v63 }
 0x3cf   :  { %v4937_v17 = vpop.permute.xlu0 %1598 }
 0x3d0   :  { %v4933_v57 = vpop.permute.xlu1 %1561 }
 0x3d1   :  { %7284 = vst [vmem:[#allocation127_spill] sm:$0xff] %v4933_v57 }
 0x3d3   :  { %v1665_v16 = vpop.permute.xlu0 %1664 }
 0x3d4   :  { %v1585_v14 = vpop.permute.xlu1 %1584 }
 0x3d7   :  { %v1669_v11 = vpop.permute.xlu0 %1668 }
 0x3d8   :  { %v1589_v62 = vpop.permute.xlu1 %1588 }
 0x3db   :  { %v1673_v31 = vpop.permute.xlu0 %1672 }
 0x3dc   :  { %v1593_v49 = vpop.permute.xlu1 %1592 }
 0x3df   :  { %v1677_v9 = vpop.permute.xlu0 %1676 }
 0x3e0   :  { %v1597_v15 = vpop.permute.xlu1 %1596 }
 0x3e3   :  { %v1747_v42 = vpop.permute.xlu0 %1746 }
 0x3e4   :  { %v4935_v10 = vpop.permute.xlu1 %1617 }
 0x3e5   :  { %7285 = vst [vmem:[#allocation128_spill] sm:$0xff] %v4935_v10 }
 0x3e7   :  { %v1751_v10 = vpop.permute.xlu0 %1750 }
 0x3e8   :  { %v4939_v41 = vpop.permute.xlu1 %1625 }
 0x3e9   :  { %7286 = vst [vmem:[#allocation129_spill] sm:$0xff] %v4939_v41 }
 0x3eb   :  { %v1755_v41 = vpop.permute.xlu0 %1754 }
 0x3ec   :  { %v4941_v39 = vpop.permute.xlu1 %1629 }
 0x3ed   :  { %7287 = vst [vmem:[#allocation130_spill] sm:$0xff] %v4941_v39  ;;  %v1528_v39 = vadd.f32 %v1505_v52, %v4743_v19 }
 0x3ef   :  { %v1759_v50 = vpop.permute.xlu0 %1758 }
 0x3f0   :  { %v4943_v63 = vpop.permute.xlu1 %1637 }
 0x3f1   :  { %7288 = vst [vmem:[#allocation131_spill] sm:$0xff] %v4943_v63  ;;  %v1608_v63 = vadd.f32 %v1585_v14, %v1528_v39  ;;  %v1529_v39 = vadd.f32 %v4906_v24, %v4722_v60  ;;  %v1530_v14 = vadd.f32 %v1509_v33, %v4729_v0  ;;  %v1534_v24 = vadd.f32 %v1517_v5, %v4739_v30 }
 0x3f3   :  { %v1688_v34 = vadd.f32 %v1665_v16, %v1608_v63  ;;  %v1825_v55 = vpop.permute.xlu0 %1824  ;;  %v1609_v63 = vadd.f32 %v1587_v27, %v1529_v39 }
 0x3f4   :  { %v4945_v57 = vpop.permute.xlu1 %1645 }
 0x3f5   :  { %7289 = vst [vmem:[#allocation132_spill] sm:$0xff] %v4945_v57 }
 0x3f8   :  { %v1667_v6 = vpop.permute.xlu1 %1666 }
 0x3fc   :  { %v1671_v32 = vpop.permute.xlu1 %1670 }
 0x400   :  { %v1675_v21 = vpop.permute.xlu1 %1674 }
 0x404   :  { %v1679_v47 = vpop.permute.xlu1 %1678 }
 0x408   :  { %v4947_v28 = vpop.permute.xlu1 %1701 }
 0x409   :  { %7290 = vst [vmem:[#allocation133_spill] sm:$0xff] %v4947_v28 }
 0x40c   :  { %v4949_v38 = vpop.permute.xlu1 %1705 }
 0x40d   :  { %7291 = vst [vmem:[#allocation134_spill] sm:$0xff] %v4949_v38 }
 0x410   :  { %v4952_v53 = vpop.permute.xlu1 %1713 }
 0x411   :  { %7292 = vst [vmem:[#allocation135_spill] sm:$0xff] %v4952_v53 }
 0x414   :  { %v4954_v57 = vpop.permute.xlu1 %1721 }
 0x415   :  { %7293 = vst [vmem:[#allocation136_spill] sm:$0xff] %v4954_v57  ;;  %v1829_v57 = vpop.permute.xlu0 %1828 }
 0x418   :  { %v1745_v12 = vpop.permute.xlu1 %1744 }
 0x419   :  { %v1768_v43 = vadd.f32 %v1745_v12, %v1688_v34  ;;  %v1531_v34 = vadd.f32 %v4911_v36, %v4750_v4 }
 0x41b   :  { %v1848_v35 = vadd.f32 %v1825_v55, %v1768_v43  ;;  %v1610_v43 = vadd.f32 %v1589_v62, %v1530_v14  ;;  %v1689_v55 = vadd.f32 %v1667_v6, %v1609_v63  ;;  %v1535_v62 = vadd.f32 %v4919_v8, %v4758_v46 }
 0x41c   :  { %v1749_v54 = vpop.permute.xlu1 %1748 }
 0x41d   :  { %1858 = vperm.xlu0 %3780, %v1848_v35   ;;  %v1532_v35 = vadd.f32 %v1513_v59, %v4735_v13  ;;  %v1690_v0 = vadd.f32 %v1669_v11, %v1610_v43  ;;  %v1614_v59 = vadd.f32 %v1597_v15, %v1534_v24  ;;  %v1615_v5 = vadd.f32 %v4937_v17, %v1535_v62  ;;  %v4978_v17 = vld [vmem:[#allocation2 + $0x3] sm:$0x1] }
 0x41f   :  { %v1612_v33 = vadd.f32 %v1593_v49, %v1532_v35  ;;  %v1770_v36 = vadd.f32 %v1749_v54, %v1690_v0  ;;  %v5015_v35 = vld [vmem:[#allocation2 + $0x23] sm:$0x1] }
 0x420   :  { %v1753_v22 = vpop.permute.xlu1 %1752 }
 0x421   :  { %v1692_v6 = vadd.f32 %v1673_v31, %v1612_v33  ;;  %v1850_v11 = vadd.f32 %v1829_v57, %v1770_v36  ;;  %v5000_v57 = vld [vmem:[#allocation2 + $0x38] sm:$0x1] }
 0x423   :  { %v1772_v49 = vadd.f32 %v1753_v22, %v1692_v6  ;;  %v4994_v22 = vld [vmem:[#allocation2 + $0x28] sm:$0x1] }
 0x424   :  { %v1757_v28 = vpop.permute.xlu1 %1756 }
 0x428   :  { %v4956_v44 = vpop.permute.xlu1 %1777 }
 0x429   :  { %7294 = vst [vmem:[#allocation137_spill] sm:$0xff] %v4956_v44  ;;  %v1611_v44 = vadd.f32 %v1591_v61, %v1531_v34  ;;  %v5008_v34 = vld [vmem:[#allocation2 + $0xb] sm:$0x1] }
 0x42b   :  { %v1691_v27 = vadd.f32 %v1671_v32, %v1611_v44  ;;  %v1694_v44 = vadd.f32 %v1677_v9, %v1614_v59  ;;  %v4998_v9 = vld [vmem:[#allocation2 + $0x2b] sm:$0x1] }
 0x42c   :  { %v4958_v38 = vpop.permute.xlu1 %1785 }
 0x42d   :  { %7295 = vst [vmem:[#allocation138_spill] sm:$0xff] %v4958_v38  ;;  %v1771_v61 = vadd.f32 %v1751_v10, %v1691_v27  ;;  %v1774_v8 = vadd.f32 %v1757_v28, %v1694_v44  ;;  %v4988_v28 = vld [vmem:[#allocation2 + $0x18] sm:$0x1] }
 0x430   :  { %v4960_v52 = vpop.permute.xlu1 %1789 }
 0x431   :  { %7296 = vst [vmem:[#allocation139_spill] sm:$0xff] %v4960_v52  ;;  %v1533_v52 = vadd.f32 %v4914_v18, %v4754_v37  ;;  %v1833_v18 = vpop.permute.xlu0 %1832 }
 0x433   :  { %v1613_v53 = vadd.f32 %v1595_v29, %v1533_v52  ;;  %v1695_v29 = vadd.f32 %v1679_v47, %v1615_v5  ;;  %v1852_v52 = vadd.f32 %v1833_v18, %v1772_v49  ;;  %v4992_v47 = vld [vmem:[#allocation2 + $0x1b] sm:$0x1] }
 0x434   :  { %v4965_v16 = vpop.permute.xlu1 %1797 }
 0x435   :  { %7297 = vst [vmem:[#allocation140_spill] sm:$0xff] %v4965_v16  ;;  %v1769_v16 = vadd.f32 %v1747_v42, %v1689_v55  ;;  %v1693_v14 = vadd.f32 %v1675_v21, %v1613_v53  ;;  %v1837_v15 = vpop.permute.xlu0 %1836  ;;  %v1775_v10 = vadd.f32 %v1759_v50, %v1695_v29  ;;  %v4986_v50 = vld [vmem:[#allocation2 + $0x13] sm:$0x1] }
 0x436   :  { %v1854_v53 = vadd.f32 %v1837_v15, %v1774_v8 }
 0x437   :  { %v1773_v32 = vadd.f32 %v1755_v41, %v1693_v14  ;;  %v4982_v41 = vld [vmem:[#allocation2] sm:$0x1] }
 0x438   :  { %v4970_v12 = vpop.permute.xlu1 %1805 }
 0x439   :  { %7298 = vst [vmem:[#allocation141_spill] sm:$0xff] %v4970_v12 }
 0x43c   :  { %v1827_v39 = vpop.permute.xlu1 %1826 }
 0x43d   :  { %v1849_v38 = vadd.f32 %v1827_v39, %v1769_v16  ;;  %v5004_v16 = vld [vmem:[#allocation2 + $0x3b] sm:$0x1] }
 0x43f   :  { %1863 = vperm.xlu1 %3787, %v1849_v38  }
 0x440   :  { %v1831_v63 = vpop.permute.xlu1 %1830 }
 0x441   :  { %v1851_v42 = vadd.f32 %v1831_v63, %v1771_v61 }
 0x443   :  { %1873 = vperm.xlu0 %3780, %v1851_v42   ;;  %1868 = vperm.xlu1 %3787, %v1850_v11  }
 0x444   :  { %v1835_v54 = vpop.permute.xlu1 %1834 }
 0x445   :  { %v1853_v31 = vadd.f32 %v1835_v54, %v1773_v32 }
 0x447   :  { %1883 = vperm.xlu0 %3780, %v1853_v31   ;;  %1878 = vperm.xlu1 %3787, %v1852_v52  }
 0x448   :  { %v1839_v38 = vpop.permute.xlu1 %1838 }
 0x449   :  { %v1855_v21 = vadd.f32 %v1839_v38, %v1775_v10 }
 0x44b   :  { %1893 = vperm.xlu0 %3780, %v1855_v21   ;;  %1888 = vperm.xlu1 %3787, %v1854_v53  }
 0x44f   :  { %3788 = vset.pattern.permute.xlu0 %v7202_v23  ;;  %3789 = vset.pattern.permute.xlu1 %v7202_v23 }
 0x450   :  { %305 = vperm.xlu0 %3788, %v4982_v41   ;;  %1914 = vperm.xlu1 %3789, %v4978_v17  }
 0x454   :  { %317 = vperm.xlu0 %3788, %v4988_v28   ;;  %1924 = vperm.xlu1 %3789, %v4986_v50  }
 0x458   :  { %325 = vperm.xlu0 %3788, %v4994_v22   ;;  %1929 = vperm.xlu1 %3789, %v4992_v47  }
 0x45c   :  { %333 = vperm.xlu0 %3788, %v5000_v57   ;;  %1939 = vperm.xlu1 %3789, %v4998_v9  }
 0x460   :  { %937 = vperm.xlu0 %3788, %v4414_v2   ;;  %1949 = vperm.xlu1 %3789, %v5004_v16   ;;  %v5019_v2 = vld [vmem:[#allocation2 + $0x33] sm:$0x1] }
 0x464   :  { %949 = vperm.xlu0 %3788, %v4420_v3   ;;  %3790 = vset.pattern.permute.xlu1 %v7203_v48 }
 0x465   :  { %1981 = vperm.xlu1 %3790, %v5008_v34  }
 0x468   :  { %957 = vperm.xlu0 %3788, %v4425_v1  }
 0x469   :  { %1985 = vperm.xlu1 %3790, %v4986_v50  }
 0x46c   :  { %965 = vperm.xlu0 %3788, %v4429_v7  }
 0x46d   :  { %1993 = vperm.xlu1 %3790, %v5015_v35  }
 0x470   :  { %1461 = vperm.xlu0 %3788, %v4722_v60  }
 0x471   :  { %2001 = vperm.xlu1 %3790, %v5019_v2  }
 0x474   :  { %1473 = vperm.xlu0 %3788, %v4735_v13  }
 0x475   :  { %2024 = vrot.lane.b32.xlu1 %v4978_v17, %s3981_s1 }
 0x476   :  { %3791 = vset.pattern.permute.xlu1 %v7205_v51 }
 0x478   :  { %1481 = vperm.xlu0 %3788, %v4739_v30  }
 0x479   :  { %2028 = vrot.lane.b32.xlu1 %v4986_v50, %s3981_s1 }
 0x47c   :  { %1919 = vperm.xlu0 %3788, %v5008_v34  }
 0x47d   :  { %2032 = vrot.lane.b32.xlu1 %v5015_v35, %s3981_s1 }
 0x480   :  { %1934 = vperm.xlu0 %3788, %v5015_v35  }
 0x481   :  { %2036 = vrot.lane.b32.xlu1 %v5019_v2, %s3981_s1 }
 0x484   :  { %1944 = vperm.xlu0 %3788, %v5019_v2  }
 0x485   :  { %2057 = vperm.xlu1 %3791, %v4978_v17  }
 0x488   :  { %2026 = vrot.lane.b32.xlu0 %v5008_v34, %s3981_s1 }
 0x489   :  { %2065 = vperm.xlu1 %3791, %v4986_v50  }
 0x48c   :  { %2030 = vrot.lane.b32.xlu0 %v4992_v47, %s3981_s1 }
 0x48d   :  { %2069 = vperm.xlu1 %3791, %v4992_v47  }
 0x490   :  { %2034 = vrot.lane.b32.xlu0 %v4998_v9, %s3981_s1 }
 0x491   :  { %2077 = vperm.xlu1 %3791, %v4998_v9  }
 0x494   :  { %2038 = vrot.lane.b32.xlu0 %v5004_v16, %s3981_s1 }
 0x495   :  { %2085 = vperm.xlu1 %3791, %v5004_v16  }
 0x498   :  { %2104 = vrot.lane.b32.xlu0 %v4978_v17, %s3982_s6 }
 0x499   :  { %2106 = vrot.lane.b32.xlu1 %v5008_v34, %s3982_s6 }
 0x49a   :  { %3792 = vset.pattern.permute.xlu1 %v7216_v26 }
 0x49c   :  { %2108 = vrot.lane.b32.xlu0 %v4986_v50, %s3982_s6  ;;  %v5088_v3 = vpop.permute.xlu0 %1858 }
 0x49d   :  { %2110 = vrot.lane.b32.xlu1 %v4992_v47, %s3982_s6 }
 0x4a0   :  { %2112 = vrot.lane.b32.xlu0 %v5015_v35, %s3982_s6 }
 0x4a1   :  { %2114 = vrot.lane.b32.xlu1 %v4998_v9, %s3982_s6 }
 0x4a4   :  { %2116 = vrot.lane.b32.xlu0 %v5019_v2, %s3982_s6 }
 0x4a5   :  { %2118 = vrot.lane.b32.xlu1 %v5004_v16, %s3982_s6 }
 0x4a8   :  { %2186 = vrot.lane.b32.xlu0 %v5008_v34, %s3984_s7 }
 0x4a9   :  { %2141 = vperm.xlu1 %3792, %v5008_v34  }
 0x4ac   :  { %2190 = vrot.lane.b32.xlu0 %v4992_v47, %s3984_s7 }
 0x4ad   :  { %2145 = vperm.xlu1 %3792, %v4986_v50  }
 0x4b0   :  { %2194 = vrot.lane.b32.xlu0 %v4998_v9, %s3984_s7 }
 0x4b1   :  { %2153 = vperm.xlu1 %3792, %v5015_v35  }
 0x4b4   :  { %2198 = vrot.lane.b32.xlu0 %v5004_v16, %s3984_s7 }
 0x4b5   :  { %2161 = vperm.xlu1 %3792, %v5019_v2  }
 0x4b8   :  { %2264 = vrot.lane.b32.xlu0 %v4978_v17, %s3985_s8 }
 0x4b9   :  { %2184 = vrot.lane.b32.xlu1 %v4978_v17, %s3984_s7 }
 0x4ba   :  { %3793 = vset.pattern.permute.xlu1 %v7229_v56 }
 0x4bc   :  { %2268 = vrot.lane.b32.xlu0 %v4986_v50, %s3985_s8 }
 0x4bd   :  { %2188 = vrot.lane.b32.xlu1 %v4986_v50, %s3984_s7 }
 0x4be   :  { %v5090_v1 = vpop.permute.xlu1 %1863 }
 0x4c0   :  { %2272 = vrot.lane.b32.xlu0 %v5015_v35, %s3985_s8 }
 0x4c1   :  { %2192 = vrot.lane.b32.xlu1 %v5015_v35, %s3984_s7 }
 0x4c2   :  { %v5096_v7 = vpop.permute.xlu1 %1868  ;;  %v5098_v60 = vpop.permute.xlu0 %1873 }
 0x4c4   :  { %2276 = vrot.lane.b32.xlu0 %v5019_v2, %s3985_s8 }
 0x4c5   :  { %2196 = vrot.lane.b32.xlu1 %v5019_v2, %s3984_s7 }
 0x4c6   :  { %v5104_v13 = vpop.permute.xlu1 %1878  ;;  %v5106_v30 = vpop.permute.xlu0 %1883 }
 0x4c7   :  { %7299 = vst [vmem:[#allocation142_spill] sm:$0xff] %v5106_v30 }
 0x4c9   :  { %2217 = vperm.xlu1 %3793, %v4978_v17  }
 0x4ca   :  { %v5109_v43 = vpop.permute.xlu1 %1888  ;;  %v5111_v55 = vpop.permute.xlu0 %1893 }
 0x4cb   :  { %7300 = vst [vmem:[#allocation143_spill] sm:$0xff] %v5109_v43  ;;  %7301 = vst [vmem:[#allocation144_spill] sm:$0xff] %v5111_v55 }
 0x4cd   :  { %2225 = vperm.xlu1 %3793, %v4986_v50  }
 0x4cf   :  { %v5114_v24 = vpop.permute.xlu1 %1914  ;;  %v5116_v0 = vpop.permute.xlu0 %305 }
 0x4d0   :  { %7302 = vst [vmem:[#allocation145_spill] sm:$0xff] %v5114_v24  ;;  %7303 = vst [vmem:[#allocation146_spill] sm:$0xff] %v5116_v0 }
 0x4d1   :  { %2229 = vperm.xlu1 %3793, %v4992_v47  }
 0x4d3   :  { %v5119_v33 = vpop.permute.xlu1 %1924  ;;  %v5121_v27 = vpop.permute.xlu0 %317 }
 0x4d4   :  { %7304 = vst [vmem:[#allocation147_spill] sm:$0xff] %v5119_v33  ;;  %7305 = vst [vmem:[#allocation148_spill] sm:$0xff] %v5121_v27 }
 0x4d5   :  { %2237 = vperm.xlu1 %3793, %v4998_v9  }
 0x4d7   :  { %v5124_v39 = vpop.permute.xlu1 %1929  ;;  %v5126_v36 = vpop.permute.xlu0 %325 }
 0x4d8   :  { %7306 = vst [vmem:[#allocation149_spill] sm:$0xff] %v5124_v39  ;;  %7307 = vst [vmem:[#allocation150_spill] sm:$0xff] %v5126_v36 }
 0x4d9   :  { %2245 = vperm.xlu1 %3793, %v5004_v16  }
 0x4db   :  { %v5129_v62 = vpop.permute.xlu1 %1939  ;;  %v5131_v6 = vpop.permute.xlu0 %333 }
 0x4dc   :  { %7308 = vst [vmem:[#allocation151_spill] sm:$0xff] %v5129_v62  ;;  %7309 = vst [vmem:[#allocation152_spill] sm:$0xff] %v5131_v6 }
 0x4dd   :  { %2266 = vrot.lane.b32.xlu1 %v5008_v34, %s3985_s8 }
 0x4de   :  { %3794 = vset.pattern.permute.xlu1 %v7202_v23 }
 0x4df   :  { %v5136_v59 = vpop.permute.xlu1 %1949  ;;  %v5138_v61 = vpop.permute.xlu0 %937 }
 0x4e0   :  { %7310 = vst [vmem:[#allocation153_spill] sm:$0xff] %v5136_v59  ;;  %7311 = vst [vmem:[#allocation154_spill] sm:$0xff] %v5138_v61 }
 0x4e1   :  { %2270 = vrot.lane.b32.xlu1 %v4992_v47, %s3985_s8 }
 0x4e3   :  { %v5142_v14 = vpop.permute.xlu0 %949 }
 0x4e4   :  { %7312 = vst [vmem:[#allocation155_spill] sm:$0xff] %v5142_v14  ;;  %v5144_v18 = vpop.permute.xlu1 %1981 }
 0x4e5   :  { %7313 = vst [vmem:[#allocation156_spill] sm:$0xff] %v5144_v18  ;;  %2274 = vrot.lane.b32.xlu1 %v4998_v9, %s3985_s8 }
 0x4e7   :  { %v5148_v63 = vpop.permute.xlu0 %957 }
 0x4e8   :  { %7314 = vst [vmem:[#allocation157_spill] sm:$0xff] %v5148_v63  ;;  %v5150_v5 = vpop.permute.xlu1 %1985 }
 0x4e9   :  { %7315 = vst [vmem:[#allocation158_spill] sm:$0xff] %v5150_v5  ;;  %2278 = vrot.lane.b32.xlu1 %v5004_v16, %s3985_s8 }
 0x4eb   :  { %v5154_v23 = vpop.permute.xlu0 %965 }
 0x4ec   :  { %7316 = vst [vmem:[#allocation159_spill] sm:$0xff] %v5154_v23  ;;  %v5156_v11 = vpop.permute.xlu1 %1993 }
 0x4ed   :  { %7317 = vst [vmem:[#allocation160_spill] sm:$0xff] %v5156_v11 }
 0x4ef   :  { %v5158_v49 = vpop.permute.xlu0 %1461 }
 0x4f0   :  { %7318 = vst [vmem:[#allocation161_spill] sm:$0xff] %v5158_v49  ;;  %v5160_v42 = vpop.permute.xlu1 %2001 }
 0x4f1   :  { %7319 = vst [vmem:[#allocation162_spill] sm:$0xff] %v5160_v42 }
 0x4f3   :  { %v5162_v44 = vpop.permute.xlu0 %1473 }
 0x4f4   :  { %7320 = vst [vmem:[#allocation163_spill] sm:$0xff] %v5162_v44  ;;  %v2025_v32 = vpop.permute.xlu1 %2024 }
 0x4f7   :  { %v5164_v29 = vpop.permute.xlu0 %1481 }
 0x4f8   :  { %7321 = vst [vmem:[#allocation164_spill] sm:$0xff] %v5164_v29  ;;  %v2029_v54 = vpop.permute.xlu1 %2028 }
 0x4fb   :  { %v5166_v52 = vpop.permute.xlu0 %1919 }
 0x4fc   :  { %7322 = vst [vmem:[#allocation165_spill] sm:$0xff] %v5166_v52  ;;  %v2033_v8 = vpop.permute.xlu1 %2032 }
 0x4ff   :  { %v5168_v31 = vpop.permute.xlu0 %1934 }
 0x500   :  { %7323 = vst [vmem:[#allocation166_spill] sm:$0xff] %v5168_v31  ;;  %v2037_v15 = vpop.permute.xlu1 %2036 }
 0x503   :  { %v5170_v10 = vpop.permute.xlu0 %1944 }
 0x504   :  { %7324 = vst [vmem:[#allocation167_spill] sm:$0xff] %v5170_v10  ;;  %v5172_v38 = vpop.permute.xlu1 %2057 }
 0x505   :  { %7325 = vst [vmem:[#allocation168_spill] sm:$0xff] %v5172_v38 }
 0x507   :  { %v2027_v53 = vpop.permute.xlu0 %2026 }
 0x508   :  { %v5174_v21 = vpop.permute.xlu1 %2065 }
 0x509   :  { %7326 = vst [vmem:[#allocation169_spill] sm:$0xff] %v5174_v21 }
 0x50b   :  { %v2031_v12 = vpop.permute.xlu0 %2030 }
 0x50c   :  { %v5176_v42 = vpop.permute.xlu1 %2069 }
 0x50d   :  { %7327 = vst [vmem:[#allocation170_spill] sm:$0xff] %v5176_v42 }
 0x50f   :  { %v2035_v11 = vpop.permute.xlu0 %2034 }
 0x510   :  { %v5178_v18 = vpop.permute.xlu1 %2077 }
 0x511   :  { %7328 = vst [vmem:[#allocation171_spill] sm:$0xff] %v5178_v18 }
 0x513   :  { %v2039_v59 = vpop.permute.xlu0 %2038 }
 0x514   :  { %v5180_v5 = vpop.permute.xlu1 %2085 }
 0x515   :  { %7329 = vst [vmem:[#allocation172_spill] sm:$0xff] %v5180_v5  ;;  %v2048_v5 = vadd.f32 %v2025_v32, %v4978_v17 }
 0x517   :  { %v2105_v52 = vpop.permute.xlu0 %2104 }
 0x518   :  { %v2107_v62 = vpop.permute.xlu1 %2106  ;;  %v2128_v14 = vadd.f32 %v2105_v52, %v2048_v5  ;;  %v2050_v5 = vadd.f32 %v2029_v54, %v4986_v50  ;;  %v2052_v52 = vadd.f32 %v2033_v8, %v5015_v35  ;;  %v2055_v50 = vadd.f32 %v2039_v59, %v5004_v16 }
 0x51b   :  { %v2109_v31 = vpop.permute.xlu0 %2108 }
 0x51c   :  { %v2111_v39 = vpop.permute.xlu1 %2110 }
 0x51f   :  { %v2113_v29 = vpop.permute.xlu0 %2112 }
 0x520   :  { %v2115_v10 = vpop.permute.xlu1 %2114  ;;  %v2132_v30 = vadd.f32 %v2113_v29, %v2052_v52 }
 0x523   :  { %v2117_v44 = vpop.permute.xlu0 %2116 }
 0x524   :  { %v2119_v38 = vpop.permute.xlu1 %2118 }
 0x527   :  { %v2187_v33 = vpop.permute.xlu0 %2186 }
 0x528   :  { %v5182_v49 = vpop.permute.xlu1 %2141 }
 0x529   :  { %7330 = vst [vmem:[#allocation173_spill] sm:$0xff] %v5182_v49 }
 0x52b   :  { %v2191_v21 = vpop.permute.xlu0 %2190 }
 0x52c   :  { %v5184_v23 = vpop.permute.xlu1 %2145 }
 0x52d   :  { %7331 = vst [vmem:[#allocation174_spill] sm:$0xff] %v5184_v23 }
 0x52f   :  { %v2195_v42 = vpop.permute.xlu0 %2194 }
 0x530   :  { %v5186_v24 = vpop.permute.xlu1 %2153 }
 0x531   :  { %7332 = vst [vmem:[#allocation175_spill] sm:$0xff] %v5186_v24 }
 0x533   :  { %v2199_v18 = vpop.permute.xlu0 %2198 }
 0x534   :  { %v5188_v63 = vpop.permute.xlu1 %2161 }
 0x535   :  { %7333 = vst [vmem:[#allocation176_spill] sm:$0xff] %v5188_v63  ;;  %v2049_v63 = vadd.f32 %v2027_v53, %v5008_v34 }
 0x537   :  { %v2265_v6 = vpop.permute.xlu0 %2264 }
 0x538   :  { %v2185_v61 = vpop.permute.xlu1 %2184 }
 0x539   :  { %v2208_v36 = vadd.f32 %v2185_v61, %v2128_v14  ;;  %v2130_v61 = vadd.f32 %v2109_v31, %v2050_v5 }
 0x53b   :  { %v2288_v27 = vadd.f32 %v2265_v6, %v2208_v36  ;;  %v2051_v36 = vadd.f32 %v2031_v12, %v4992_v47  ;;  %v2129_v6 = vadd.f32 %v2107_v62, %v2049_v63 }
 0x53c   :  { %v2189_v0 = vpop.permute.xlu1 %2188 }
 0x53d   :  { %2298 = vperm.xlu0 %3788, %v2288_v27   ;;  %v2269_v27 = vpop.permute.xlu0 %2268  ;;  %v2209_v14 = vadd.f32 %v2187_v33, %v2129_v6  ;;  %v2210_v43 = vadd.f32 %v2189_v0, %v2130_v61  ;;  %v2135_v0 = vadd.f32 %v2119_v38, %v2055_v50 }
 0x53f   :  { %v2290_v54 = vadd.f32 %v2269_v27, %v2210_v43  ;;  %v2215_v29 = vadd.f32 %v2199_v18, %v2135_v0  ;;  %v5218_v43 = vld [vmem:[#allocation2 + $0x1c] sm:$0x1]  ;;  %v5222_v18 = vld [vmem:[#allocation2 + $0x2c] sm:$0x1] }
 0x540   :  { %v2193_v58 = vpop.permute.xlu1 %2192 }
 0x541   :  { %v2273_v12 = vpop.permute.xlu0 %2272  ;;  %v2212_v33 = vadd.f32 %v2193_v58, %v2132_v30  ;;  %v5208_v58 = vld [vmem:[#allocation2 + $0x4] sm:$0x1]  ;;  %v5214_v30 = vld [vmem:[#allocation2 + $0x14] sm:$0x1] }
 0x544   :  { %v2197_v49 = vpop.permute.xlu1 %2196 }
 0x548   :  { %v5191_v40 = vpop.permute.xlu1 %2217 }
 0x549   :  { %7334 = vst [vmem:[#allocation177_spill] sm:$0xff] %v5191_v40 }
 0x54c   :  { %v5193_v23 = vpop.permute.xlu1 %2225 }
 0x54d   :  { %7335 = vst [vmem:[#allocation178_spill] sm:$0xff] %v5193_v23  ;;  %v2053_v23 = vadd.f32 %v2035_v11, %v4998_v9 }
 0x54f   :  { %v2133_v63 = vadd.f32 %v2115_v10, %v2053_v23  ;;  %v5224_v23 = vld [vmem:[#allocation2 + $0x9] sm:$0x1] }
 0x550   :  { %v5195_v55 = vpop.permute.xlu1 %2229 }
 0x551   :  { %7336 = vst [vmem:[#allocation179_spill] sm:$0xff] %v5195_v55  ;;  %v2131_v55 = vadd.f32 %v2111_v39, %v2051_v36  ;;  %v2213_v5 = vadd.f32 %v2195_v42, %v2133_v63  ;;  %v5243_v42 = vld [vmem:[#allocation2 + $0x24] sm:$0x1] }
 0x553   :  { %v2211_v53 = vadd.f32 %v2191_v21, %v2131_v55 }
 0x554   :  { %v5197_v24 = vpop.permute.xlu1 %2237 }
 0x555   :  { %7337 = vst [vmem:[#allocation180_spill] sm:$0xff] %v5197_v24 }
 0x558   :  { %v5200_v32 = vpop.permute.xlu1 %2245 }
 0x559   :  { %7338 = vst [vmem:[#allocation181_spill] sm:$0xff] %v5200_v32  ;;  %v2054_v32 = vadd.f32 %v2037_v15, %v5019_v2 }
 0x55b   :  { %v2134_v8 = vadd.f32 %v2117_v44, %v2054_v32  ;;  %v5247_v44 = vld [vmem:[#allocation2 + $0x34] sm:$0x1] }
 0x55c   :  { %v2267_v40 = vpop.permute.xlu1 %2266 }
 0x55d   :  { %v2289_v24 = vadd.f32 %v2267_v40, %v2209_v14  ;;  %v2292_v40 = vadd.f32 %v2273_v12, %v2212_v33  ;;  %v2214_v11 = vadd.f32 %v2197_v49, %v2134_v8  ;;  %v5230_v49 = vld [vmem:[#allocation2 + $0x21] sm:$0x1] }
 0x55f   :  { %2303 = vperm.xlu1 %3794, %v2289_v24   ;;  %v2277_v24 = vpop.permute.xlu0 %2276 }
 0x560   :  { %v2271_v62 = vpop.permute.xlu1 %2270  ;;  %v2294_v15 = vadd.f32 %v2277_v24, %v2214_v11 }
 0x561   :  { %v2291_v31 = vadd.f32 %v2271_v62, %v2211_v53 }
 0x563   :  { %2313 = vperm.xlu0 %3788, %v2291_v31   ;;  %2308 = vperm.xlu1 %3794, %v2290_v54  }
 0x564   :  { %v2275_v39 = vpop.permute.xlu1 %2274 }
 0x565   :  { %v2293_v55 = vadd.f32 %v2275_v39, %v2213_v5 }
 0x567   :  { %2323 = vperm.xlu0 %3788, %v2293_v55   ;;  %2318 = vperm.xlu1 %3794, %v2292_v40  }
 0x568   :  { %v2279_v59 = vpop.permute.xlu1 %2278 }
 0x569   :  { %v2295_v21 = vadd.f32 %v2279_v59, %v2215_v29 }
 0x56b   :  { %2333 = vperm.xlu0 %3788, %v2295_v21   ;;  %2328 = vperm.xlu1 %3794, %v2294_v15  }
 0x56f   :  { %3795 = vset.pattern.permute.xlu0 %v7203_v48  ;;  %3796 = vset.pattern.permute.xlu1 %v7203_v48 }
 0x570   :  { %397 = vperm.xlu0 %3795, %v4719_v45   ;;  %2354 = vperm.xlu1 %3796, %v5208_v58   ;;  %v5228_v45 = vld [vmem:[#allocation2 + $0x3c] sm:$0x1] }
 0x574   :  { %409 = vperm.xlu0 %3795, %v4725_v20   ;;  %2364 = vperm.xlu1 %3796, %v5214_v30   ;;  %v5234_v20 = vld [vmem:[#allocation2 + $0xc] sm:$0x1] }
 0x578   :  { %417 = vperm.xlu0 %3795, %v4731_v25   ;;  %2369 = vperm.xlu1 %3796, %v5218_v43   ;;  %v5236_v25 = vld [vmem:[#allocation2 + $0x31] sm:$0x1] }
 0x57c   :  { %1021 = vperm.xlu0 %3795, %v5224_v23   ;;  %2379 = vperm.xlu1 %3796, %v5222_v18  }
 0x580   :  { %1033 = vperm.xlu0 %3795, %v5230_v49   ;;  %2389 = vperm.xlu1 %3796, %v5228_v45  }
 0x584   :  { %1041 = vperm.xlu0 %3795, %v5236_v25   ;;  %3797 = vset.pattern.permute.xlu1 %v7205_v51 }
 0x585   :  { %2421 = vperm.xlu1 %3797, %v5234_v20  }
 0x588   :  { %1537 = vperm.xlu0 %3795, %v4743_v19  }
 0x589   :  { %2425 = vperm.xlu1 %3797, %v5214_v30  }
 0x58c   :  { %1549 = vperm.xlu0 %3795, %v4750_v4  }
 0x58d   :  { %2433 = vperm.xlu1 %3797, %v5243_v42  }
 0x590   :  { %1557 = vperm.xlu0 %3795, %v4754_v37  }
 0x591   :  { %2441 = vperm.xlu1 %3797, %v5247_v44  }
 0x594   :  { %1565 = vperm.xlu0 %3795, %v4758_v46  }
 0x595   :  { %2464 = vrot.lane.b32.xlu1 %v5208_v58, %s3981_s1 }
 0x596   :  { %3798 = vset.pattern.permute.xlu1 %v7216_v26 }
 0x598   :  { %1977 = vperm.xlu0 %3795, %v4978_v17  }
 0x599   :  { %2468 = vrot.lane.b32.xlu1 %v5214_v30, %s3981_s1 }
 0x59c   :  { %1989 = vperm.xlu0 %3795, %v4992_v47  }
 0x59d   :  { %2472 = vrot.lane.b32.xlu1 %v5243_v42, %s3981_s1 }
 0x5a0   :  { %1997 = vperm.xlu0 %3795, %v4998_v9  }
 0x5a1   :  { %2476 = vrot.lane.b32.xlu1 %v5247_v44, %s3981_s1 }
 0x5a4   :  { %2005 = vperm.xlu0 %3795, %v5004_v16  }
 0x5a5   :  { %2497 = vperm.xlu1 %3798, %v5208_v58  }
 0x5a8   :  { %2359 = vperm.xlu0 %3795, %v5234_v20  }
 0x5a9   :  { %2505 = vperm.xlu1 %3798, %v5214_v30  }
 0x5ac   :  { %2374 = vperm.xlu0 %3795, %v5243_v42  }
 0x5ad   :  { %2509 = vperm.xlu1 %3798, %v5218_v43  }
 0x5b0   :  { %2384 = vperm.xlu0 %3795, %v5247_v44  }
 0x5b1   :  { %2517 = vperm.xlu1 %3798, %v5222_v18  }
 0x5b4   :  { %2466 = vrot.lane.b32.xlu0 %v5234_v20, %s3981_s1 }
 0x5b5   :  { %2525 = vperm.xlu1 %3798, %v5228_v45  }
 0x5b8   :  { %2470 = vrot.lane.b32.xlu0 %v5218_v43, %s3981_s1 }
 0x5b9   :  { %2546 = vrot.lane.b32.xlu1 %v5234_v20, %s3982_s6 }
 0x5ba   :  { %3799 = vset.pattern.permute.xlu1 %v7229_v56 }
 0x5bc   :  { %2474 = vrot.lane.b32.xlu0 %v5222_v18, %s3981_s1  ;;  %v5313_v19 = vpop.permute.xlu0 %2298 }
 0x5bd   :  { %2550 = vrot.lane.b32.xlu1 %v5218_v43, %s3982_s6  ;;  %7339 = vst [vmem:[#allocation182_spill] sm:$0xff] %v5313_v19 }
 0x5c0   :  { %2478 = vrot.lane.b32.xlu0 %v5228_v45, %s3981_s1 }
 0x5c1   :  { %2554 = vrot.lane.b32.xlu1 %v5222_v18, %s3982_s6 }
 0x5c4   :  { %2544 = vrot.lane.b32.xlu0 %v5208_v58, %s3982_s6 }
 0x5c5   :  { %2558 = vrot.lane.b32.xlu1 %v5228_v45, %s3982_s6 }
 0x5c8   :  { %2548 = vrot.lane.b32.xlu0 %v5214_v30, %s3982_s6 }
 0x5c9   :  { %2581 = vperm.xlu1 %3799, %v5234_v20  }
 0x5cc   :  { %2552 = vrot.lane.b32.xlu0 %v5243_v42, %s3982_s6 }
 0x5cd   :  { %2585 = vperm.xlu1 %3799, %v5214_v30  }
 0x5d0   :  { %2556 = vrot.lane.b32.xlu0 %v5247_v44, %s3982_s6 }
 0x5d1   :  { %2593 = vperm.xlu1 %3799, %v5243_v42  }
 0x5d4   :  { %2626 = vrot.lane.b32.xlu0 %v5234_v20, %s3984_s7 }
 0x5d5   :  { %2601 = vperm.xlu1 %3799, %v5247_v44  }
 0x5d8   :  { %2630 = vrot.lane.b32.xlu0 %v5218_v43, %s3984_s7 }
 0x5d9   :  { %2624 = vrot.lane.b32.xlu1 %v5208_v58, %s3984_s7 }
 0x5da   :  { %3800 = vset.pattern.permute.xlu1 %v7203_v48 }
 0x5dc   :  { %2634 = vrot.lane.b32.xlu0 %v5222_v18, %s3984_s7 }
 0x5dd   :  { %2628 = vrot.lane.b32.xlu1 %v5214_v30, %s3984_s7 }
 0x5de   :  { %v5315_v4 = vpop.permute.xlu1 %2303 }
 0x5df   :  { %7340 = vst [vmem:[#allocation183_spill] sm:$0xff] %v5315_v4 }
 0x5e0   :  { %2638 = vrot.lane.b32.xlu0 %v5228_v45, %s3984_s7 }
 0x5e1   :  { %2632 = vrot.lane.b32.xlu1 %v5243_v42, %s3984_s7 }
 0x5e2   :  { %v5321_v37 = vpop.permute.xlu1 %2308  ;;  %v5323_v46 = vpop.permute.xlu0 %2313 }
 0x5e3   :  { %7341 = vst [vmem:[#allocation184_spill] sm:$0xff] %v5321_v37  ;;  %7342 = vst [vmem:[#allocation185_spill] sm:$0xff] %v5323_v46 }
 0x5e5   :  { %2636 = vrot.lane.b32.xlu1 %v5247_v44, %s3984_s7 }
 0x5e6   :  { %v5327_v48 = vpop.permute.xlu1 %2318  ;;  %v5329_v17 = vpop.permute.xlu0 %2323 }
 0x5e7   :  { %7343 = vst [vmem:[#allocation186_spill] sm:$0xff] %v5327_v48  ;;  %7344 = vst [vmem:[#allocation187_spill] sm:$0xff] %v5329_v17 }
 0x5ea   :  { %v5331_v47 = vpop.permute.xlu1 %2328  ;;  %v5333_v9 = vpop.permute.xlu0 %2333 }
 0x5eb   :  { %7345 = vst [vmem:[#allocation188_spill] sm:$0xff] %v5331_v47  ;;  %7346 = vst [vmem:[#allocation189_spill] sm:$0xff] %v5333_v9 }
 0x5ef   :  { %v5335_v16 = vpop.permute.xlu1 %2354  ;;  %v5337_v10 = vpop.permute.xlu0 %397 }
 0x5f0   :  { %7347 = vst [vmem:[#allocation190_spill] sm:$0xff] %v5335_v16  ;;  %7348 = vst [vmem:[#allocation191_spill] sm:$0xff] %v5337_v10 }
 0x5f3   :  { %v5339_v38 = vpop.permute.xlu1 %2364  ;;  %v5341_v32 = vpop.permute.xlu0 %409 }
 0x5f4   :  { %7349 = vst [vmem:[#allocation192_spill] sm:$0xff] %v5339_v38  ;;  %7350 = vst [vmem:[#allocation193_spill] sm:$0xff] %v5341_v32  ;;  %v5867_v32 = vld [vmem:[#allocation5 + $0x14] sm:$0x1] }
 0x5f7   :  { %v5343_v36 = vpop.permute.xlu1 %2369  ;;  %v5345_v6 = vpop.permute.xlu0 %417 }
 0x5f8   :  { %7351 = vst [vmem:[#allocation194_spill] sm:$0xff] %v5343_v36  ;;  %7352 = vst [vmem:[#allocation195_spill] sm:$0xff] %v5345_v6 }
 0x5fb   :  { %v5347_v27 = vpop.permute.xlu1 %2379  ;;  %v5349_v61 = vpop.permute.xlu0 %1021 }
 0x5fc   :  { %7353 = vst [vmem:[#allocation196_spill] sm:$0xff] %v5347_v27  ;;  %7354 = vst [vmem:[#allocation197_spill] sm:$0xff] %v5349_v61  ;;  %v7474_v61 = vld [vmem:[#allocation24_spill] sm:$0xff] }
 0x5ff   :  { %v5351_v14 = vpop.permute.xlu1 %2389  ;;  %v5353_v52 = vpop.permute.xlu0 %1033 }
 0x600   :  { %7355 = vst [vmem:[#allocation198_spill] sm:$0xff] %v5351_v14  ;;  %7356 = vst [vmem:[#allocation199_spill] sm:$0xff] %v5353_v52  ;;  %v7473_v52 = vld [vmem:[#allocation22_spill] sm:$0xff] }
 0x603   :  { %v5355_v53 = vpop.permute.xlu0 %1041 }
 0x604   :  { %7357 = vst [vmem:[#allocation200_spill] sm:$0xff] %v5355_v53  ;;  %v5357_v50 = vpop.permute.xlu1 %2421 }
 0x605   :  { %7358 = vst [vmem:[#allocation201_spill] sm:$0xff] %v5357_v50 }
 0x607   :  { %v5359_v12 = vpop.permute.xlu0 %1537 }
 0x608   :  { %7359 = vst [vmem:[#allocation202_spill] sm:$0xff] %v5359_v12  ;;  %v5361_v62 = vpop.permute.xlu1 %2425 }
 0x609   :  { %7360 = vst [vmem:[#allocation203_spill] sm:$0xff] %v5361_v62 }
 0x60b   :  { %v5363_v63 = vpop.permute.xlu0 %1549 }
 0x60c   :  { %7361 = vst [vmem:[#allocation204_spill] sm:$0xff] %v5363_v63  ;;  %v5365_v54 = vpop.permute.xlu1 %2433 }
 0x60d   :  { %7362 = vst [vmem:[#allocation205_spill] sm:$0xff] %v5365_v54 }
 0x60f   :  { %v5367_v33 = vpop.permute.xlu0 %1557 }
 0x610   :  { %7363 = vst [vmem:[#allocation206_spill] sm:$0xff] %v5367_v33  ;;  %v5369_v31 = vpop.permute.xlu1 %2441 }
 0x611   :  { %7364 = vst [vmem:[#allocation207_spill] sm:$0xff] %v5369_v31 }
 0x613   :  { %v5371_v8 = vpop.permute.xlu0 %1565 }
 0x614   :  { %7365 = vst [vmem:[#allocation208_spill] sm:$0xff] %v5371_v8  ;;  %v2465_v5 = vpop.permute.xlu1 %2464 }
 0x617   :  { %v5373_v39 = vpop.permute.xlu0 %1977 }
 0x618   :  { %7366 = vst [vmem:[#allocation209_spill] sm:$0xff] %v5373_v39  ;;  %v2469_v0 = vpop.permute.xlu1 %2468 }
 0x61b   :  { %v5375_v40 = vpop.permute.xlu0 %1989 }
 0x61c   :  { %7367 = vst [vmem:[#allocation210_spill] sm:$0xff] %v5375_v40  ;;  %v2473_v11 = vpop.permute.xlu1 %2472  ;;  %v2488_v40 = vadd.f32 %v2465_v5, %v5208_v58 }
 0x61f   :  { %v5377_v55 = vpop.permute.xlu0 %1997 }
 0x620   :  { %7368 = vst [vmem:[#allocation211_spill] sm:$0xff] %v5377_v55  ;;  %v2477_v24 = vpop.permute.xlu1 %2476 }
 0x623   :  { %v5379_v29 = vpop.permute.xlu0 %2005 }
 0x624   :  { %7369 = vst [vmem:[#allocation212_spill] sm:$0xff] %v5379_v29  ;;  %v5381_v59 = vpop.permute.xlu1 %2497 }
 0x625   :  { %7370 = vst [vmem:[#allocation213_spill] sm:$0xff] %v5381_v59 }
 0x627   :  { %v5383_v15 = vpop.permute.xlu0 %2359 }
 0x628   :  { %7371 = vst [vmem:[#allocation214_spill] sm:$0xff] %v5383_v15  ;;  %v5385_v21 = vpop.permute.xlu1 %2505 }
 0x629   :  { %7372 = vst [vmem:[#allocation215_spill] sm:$0xff] %v5385_v21 }
 0x62b   :  { %v5387_v9 = vpop.permute.xlu0 %2374 }
 0x62c   :  { %7373 = vst [vmem:[#allocation216_spill] sm:$0xff] %v5387_v9  ;;  %v5389_v8 = vpop.permute.xlu1 %2509 }
 0x62d   :  { %7374 = vst [vmem:[#allocation217_spill] sm:$0xff] %v5389_v8 }
 0x62f   :  { %v5391_v47 = vpop.permute.xlu0 %2384 }
 0x630   :  { %7375 = vst [vmem:[#allocation218_spill] sm:$0xff] %v5391_v47  ;;  %v5393_v17 = vpop.permute.xlu1 %2517 }
 0x631   :  { %7376 = vst [vmem:[#allocation219_spill] sm:$0xff] %v5393_v17 }
 0x633   :  { %v2467_v48 = vpop.permute.xlu0 %2466 }
 0x634   :  { %v5395_v19 = vpop.permute.xlu1 %2525  ;;  %v2489_v47 = vadd.f32 %v2467_v48, %v5234_v20 }
 0x635   :  { %7377 = vst [vmem:[#allocation220_spill] sm:$0xff] %v5395_v19 }
 0x637   :  { %v2471_v46 = vpop.permute.xlu0 %2470 }
 0x638   :  { %v2547_v37 = vpop.permute.xlu1 %2546 }
 0x639   :  { %v2569_v19 = vadd.f32 %v2547_v37, %v2489_v47  ;;  %v2492_v37 = vadd.f32 %v2473_v11, %v5243_v42 }
 0x63b   :  { %v2475_v4 = vpop.permute.xlu0 %2474 }
 0x63c   :  { %v2551_v14 = vpop.permute.xlu1 %2550 }
 0x63f   :  { %v2479_v31 = vpop.permute.xlu0 %2478 }
 0x640   :  { %v2555_v59 = vpop.permute.xlu1 %2554 }
 0x643   :  { %v2545_v15 = vpop.permute.xlu0 %2544 }
 0x644   :  { %v2559_v54 = vpop.permute.xlu1 %2558  ;;  %v2568_v33 = vadd.f32 %v2545_v15, %v2488_v40  ;;  %v2494_v40 = vadd.f32 %v2477_v24, %v5247_v44  ;;  %v5453_v24 = vld [vmem:[#allocation2 + $0xa] sm:$0x1]  ;;  %v5459_v15 = vld [vmem:[#allocation2 + $0x22] sm:$0x1] }
 0x647   :  { %v2549_v21 = vpop.permute.xlu0 %2548 }
 0x648   :  { %v5397_v29 = vpop.permute.xlu1 %2581 }
 0x649   :  { %7378 = vst [vmem:[#allocation221_spill] sm:$0xff] %v5397_v29  ;;  %v2490_v29 = vadd.f32 %v2469_v0, %v5214_v30 }
 0x64b   :  { %v2553_v9 = vpop.permute.xlu0 %2552  ;;  %v2570_v48 = vadd.f32 %v2549_v21, %v2490_v29  ;;  %v5463_v21 = vld [vmem:[#allocation2 + $0x32] sm:$0x1] }
 0x64c   :  { %v5399_v8 = vpop.permute.xlu1 %2585 }
 0x64d   :  { %7379 = vst [vmem:[#allocation222_spill] sm:$0xff] %v5399_v8  ;;  %v2491_v8 = vadd.f32 %v2471_v46, %v5218_v43 }
 0x64f   :  { %v2557_v17 = vpop.permute.xlu0 %2556 }
 0x650   :  { %v5402_v55 = vpop.permute.xlu1 %2593  ;;  %v2574_v0 = vadd.f32 %v2557_v17, %v2494_v40  ;;  %v5420_v17 = vld [vmem:[#allocation2 + $0x15] sm:$0x1] }
 0x651   :  { %7380 = vst [vmem:[#allocation223_spill] sm:$0xff] %v5402_v55 }
 0x653   :  { %v2627_v62 = vpop.permute.xlu0 %2626 }
 0x654   :  { %v2649_v50 = vadd.f32 %v2627_v62, %v2569_v19  ;;  %v5404_v39 = vpop.permute.xlu1 %2601  ;;  %v2493_v19 = vadd.f32 %v2475_v4, %v5222_v18  ;;  %v2571_v62 = vadd.f32 %v2551_v14, %v2491_v8  ;;  %v5424_v14 = vld [vmem:[#allocation2 + $0x25] sm:$0x1]  ;;  %v5447_v8 = vld [vmem:[#allocation2 + $0x39] sm:$0x1] }
 0x655   :  { %7381 = vst [vmem:[#allocation224_spill] sm:$0xff] %v5404_v39  ;;  %v2572_v39 = vadd.f32 %v2553_v9, %v2492_v37 }
 0x656   :  { %2663 = vperm.xlu0 %3795, %v2649_v50   ;;  %v2573_v46 = vadd.f32 %v2555_v59, %v2493_v19  ;;  %v5457_v59 = vld [vmem:[#allocation2 + $0x3d] sm:$0x1] }
 0x657   :  { %v2631_v38 = vpop.permute.xlu0 %2630 }
 0x658   :  { %v2625_v27 = vpop.permute.xlu1 %2624  ;;  %v2651_v30 = vadd.f32 %v2631_v38, %v2571_v62  ;;  %v5415_v38 = vld [vmem:[#allocation2 + $0xd] sm:$0x1] }
 0x659   :  { %v2648_v36 = vadd.f32 %v2625_v27, %v2568_v33  ;;  %v2495_v33 = vadd.f32 %v2479_v31, %v5228_v45  ;;  %v5436_v31 = vld [vmem:[#allocation2 + $0x19] sm:$0x1] }
 0x65b   :  { %2658 = vperm.xlu1 %3800, %v2648_v36   ;;  %v2635_v50 = vpop.permute.xlu0 %2634  ;;  %v2575_v4 = vadd.f32 %v2559_v54, %v2495_v33  ;;  %v5430_v54 = vld [vmem:[#allocation2 + $0x1] sm:$0x1] }
 0x65c   :  { %v2629_v12 = vpop.permute.xlu1 %2628  ;;  %v2653_v11 = vadd.f32 %v2635_v50, %v2573_v46 }
 0x65d   :  { %v2650_v47 = vadd.f32 %v2629_v12, %v2570_v48 }
 0x65f   :  { %2668 = vperm.xlu1 %3800, %v2650_v47   ;;  %v2639_v29 = vpop.permute.xlu0 %2638 }
 0x660   :  { %v2633_v5 = vpop.permute.xlu1 %2632  ;;  %v2655_v9 = vadd.f32 %v2639_v29, %v2575_v4 }
 0x661   :  { %v2652_v27 = vadd.f32 %v2633_v5, %v2572_v39  ;;  %v5451_v39 = vld [vmem:[#allocation2 + $0x2d] sm:$0x1] }
 0x663   :  { %2678 = vperm.xlu0 %3795, %v2652_v27   ;;  %2673 = vperm.xlu1 %3800, %v2651_v30  }
 0x664   :  { %v2637_v36 = vpop.permute.xlu1 %2636 }
 0x665   :  { %v2654_v12 = vadd.f32 %v2637_v36, %v2574_v0 }
 0x667   :  { %2688 = vperm.xlu0 %3795, %v2654_v12   ;;  %2683 = vperm.xlu1 %3800, %v2653_v11  }
 0x66b   :  { %3801 = vset.pattern.permute.xlu0 %v7205_v51  ;;  %2693 = vperm.xlu1 %3800, %v2655_v9  }
 0x66c   :  { %481 = vperm.xlu0 %3801, %v4982_v41   ;;  %v5428_v41 = vld [vmem:[#allocation2 + $0x35] sm:$0x1] }
 0x66f   :  { %3802 = vset.pattern.permute.xlu1 %v7205_v51 }
 0x670   :  { %493 = vperm.xlu0 %3801, %v4988_v28   ;;  %2719 = vperm.xlu1 %3802, %v5415_v38   ;;  %v5434_v28 = vld [vmem:[#allocation2 + $0x5] sm:$0x1] }
 0x674   :  { %501 = vperm.xlu0 %3801, %v4994_v22   ;;  %2724 = vperm.xlu1 %3802, %v5420_v17   ;;  %v5441_v22 = vld [vmem:[#allocation2 + $0x29] sm:$0x1] }
 0x678   :  { %509 = vperm.xlu0 %3801, %v5000_v57   ;;  %2734 = vperm.xlu1 %3802, %v5424_v14   ;;  %v5445_v57 = vld [vmem:[#allocation2 + $0x1d] sm:$0x1] }
 0x67c   :  { %1097 = vperm.xlu0 %3801, %v5430_v54   ;;  %2744 = vperm.xlu1 %3802, %v5428_v41  }
 0x680   :  { %1109 = vperm.xlu0 %3801, %v5436_v31   ;;  %3803 = vset.pattern.permute.xlu1 %v7216_v26 }
 0x681   :  { %2777 = vperm.xlu1 %3803, %v5434_v28  }
 0x684   :  { %1117 = vperm.xlu0 %3801, %v5441_v22  }
 0x685   :  { %2785 = vperm.xlu1 %3803, %v5420_v17  }
 0x688   :  { %1125 = vperm.xlu0 %3801, %v5447_v8  }
 0x689   :  { %2789 = vperm.xlu1 %3803, %v5445_v57  }
 0x68c   :  { %1621 = vperm.xlu0 %3801, %v5453_v24  }
 0x68d   :  { %2797 = vperm.xlu1 %3803, %v5451_v39  }
 0x690   :  { %1633 = vperm.xlu0 %3801, %v5459_v15  }
 0x691   :  { %2805 = vperm.xlu1 %3803, %v5457_v59  }
 0x694   :  { %1641 = vperm.xlu0 %3801, %v5463_v21  }
 0x695   :  { %2826 = vrot.lane.b32.xlu1 %v5415_v38, %s3981_s1 }
 0x696   :  { %3804 = vset.pattern.permute.xlu1 %v7229_v56 }
 0x698   :  { %2061 = vperm.xlu0 %3801, %v5008_v34  }
 0x699   :  { %2830 = vrot.lane.b32.xlu1 %v5445_v57, %s3981_s1 }
 0x69c   :  { %2073 = vperm.xlu0 %3801, %v5015_v35  }
 0x69d   :  { %2834 = vrot.lane.b32.xlu1 %v5451_v39, %s3981_s1 }
 0x6a0   :  { %2081 = vperm.xlu0 %3801, %v5019_v2  }
 0x6a1   :  { %2838 = vrot.lane.b32.xlu1 %v5457_v59, %s3981_s1 }
 0x6a4   :  { %2417 = vperm.xlu0 %3801, %v5208_v58  }
 0x6a5   :  { %2861 = vperm.xlu1 %3804, %v5415_v38  }
 0x6a8   :  { %2429 = vperm.xlu0 %3801, %v5218_v43  }
 0x6a9   :  { %2865 = vperm.xlu1 %3804, %v5420_v17  }
 0x6ac   :  { %2437 = vperm.xlu0 %3801, %v5222_v18  }
 0x6ad   :  { %2873 = vperm.xlu1 %3804, %v5424_v14  }
 0x6b0   :  { %2445 = vperm.xlu0 %3801, %v5228_v45  }
 0x6b1   :  { %2881 = vperm.xlu1 %3804, %v5428_v41  }
 0x6b4   :  { %2714 = vperm.xlu0 %3801, %v5434_v28  }
 0x6b5   :  { %2904 = vrot.lane.b32.xlu1 %v5434_v28, %s3982_s6 }
 0x6b6   :  { %3805 = vset.pattern.permute.xlu1 %v7205_v51 }
 0x6b8   :  { %2729 = vperm.xlu0 %3801, %v5445_v57  }
 0x6b9   :  { %2908 = vrot.lane.b32.xlu1 %v5420_v17, %s3982_s6 }
 0x6bc   :  { %2739 = vperm.xlu0 %3801, %v5451_v39  }
 0x6bd   :  { %2912 = vrot.lane.b32.xlu1 %v5424_v14, %s3982_s6 }
 0x6c0   :  { %2749 = vperm.xlu0 %3801, %v5457_v59  }
 0x6c1   :  { %2916 = vrot.lane.b32.xlu1 %v5428_v41, %s3982_s6 }
 0x6c4   :  { %2824 = vrot.lane.b32.xlu0 %v5434_v28, %s3981_s1 }
 0x6c8   :  { %2828 = vrot.lane.b32.xlu0 %v5420_v17, %s3981_s1 }
 0x6cc   :  { %2832 = vrot.lane.b32.xlu0 %v5424_v14, %s3981_s1 }
 0x6d0   :  { %2836 = vrot.lane.b32.xlu0 %v5428_v41, %s3981_s1 }
 0x6d4   :  { %2906 = vrot.lane.b32.xlu0 %v5415_v38, %s3982_s6 }
 0x6d5   :  { %v5515_v34 = vpop.permute.xlu0 %2663 }
 0x6d6   :  { %7383 = vst [vmem:[#allocation226_spill] sm:$0xff] %v5515_v34  ;;  %v7481_v34 = vld [vmem:[#allocation12_spill] sm:$0xff] }
 0x6d8   :  { %2910 = vrot.lane.b32.xlu0 %v5445_v57, %s3982_s6 }
 0x6da   :  { %v5511_v51 = vpop.permute.xlu1 %2658 }
 0x6db   :  { %7382 = vst [vmem:[#allocation225_spill] sm:$0xff] %v5511_v51 }
 0x6dc   :  { %2914 = vrot.lane.b32.xlu0 %v5451_v39, %s3982_s6 }
 0x6de   :  { %v5517_v35 = vpop.permute.xlu1 %2668 }
 0x6df   :  { %7384 = vst [vmem:[#allocation227_spill] sm:$0xff] %v5517_v35 }
 0x6e0   :  { %2918 = vrot.lane.b32.xlu0 %v5457_v59, %s3982_s6 }
 0x6e2   :  { %v5521_v2 = vpop.permute.xlu1 %2673  ;;  %v5523_v58 = vpop.permute.xlu0 %2678 }
 0x6e3   :  { %7385 = vst [vmem:[#allocation228_spill] sm:$0xff] %v5521_v2  ;;  %7386 = vst [vmem:[#allocation229_spill] sm:$0xff] %v5523_v58 }
 0x6e6   :  { %v5525_v43 = vpop.permute.xlu1 %2683  ;;  %v5527_v18 = vpop.permute.xlu0 %2688 }
 0x6e7   :  { %7387 = vst [vmem:[#allocation230_spill] sm:$0xff] %v5525_v43  ;;  %7388 = vst [vmem:[#allocation231_spill] sm:$0xff] %v5527_v18 }
 0x6ea   :  { %v5529_v45 = vpop.permute.xlu1 %2693 }
 0x6eb   :  { %7389 = vst [vmem:[#allocation232_spill] sm:$0xff] %v5529_v45  ;;  %v5531_v48 = vpop.permute.xlu0 %481 }
 0x6ec   :  { %7390 = vst [vmem:[#allocation233_spill] sm:$0xff] %v5531_v48  ;;  %v7475_v48 = vld [vmem:[#allocation26_spill] sm:$0xff] }
 0x6ef   :  { %v5533_v37 = vpop.permute.xlu0 %493  ;;  %v5535_v47 = vpop.permute.xlu1 %2719 }
 0x6f0   :  { %7391 = vst [vmem:[#allocation234_spill] sm:$0xff] %v5533_v37  ;;  %7392 = vst [vmem:[#allocation235_spill] sm:$0xff] %v5535_v47 }
 0x6f3   :  { %v5537_v19 = vpop.permute.xlu0 %501  ;;  %v5539_v62 = vpop.permute.xlu1 %2724 }
 0x6f4   :  { %7393 = vst [vmem:[#allocation236_spill] sm:$0xff] %v5537_v19  ;;  %7394 = vst [vmem:[#allocation237_spill] sm:$0xff] %v5539_v62 }
 0x6f7   :  { %v5541_v50 = vpop.permute.xlu0 %509  ;;  %v5543_v5 = vpop.permute.xlu1 %2734 }
 0x6f8   :  { %7395 = vst [vmem:[#allocation238_spill] sm:$0xff] %v5541_v50  ;;  %7396 = vst [vmem:[#allocation239_spill] sm:$0xff] %v5543_v5 }
 0x6fb   :  { %v5545_v40 = vpop.permute.xlu0 %1097  ;;  %v5547_v30 = vpop.permute.xlu1 %2744 }
 0x6fc   :  { %7397 = vst [vmem:[#allocation240_spill] sm:$0xff] %v5545_v40  ;;  %7398 = vst [vmem:[#allocation241_spill] sm:$0xff] %v5547_v30 }
 0x6ff   :  { %v5549_v27 = vpop.permute.xlu0 %1109 }
 0x700   :  { %7399 = vst [vmem:[#allocation242_spill] sm:$0xff] %v5549_v27  ;;  %v5551_v33 = vpop.permute.xlu1 %2777 }
 0x701   :  { %7400 = vst [vmem:[#allocation243_spill] sm:$0xff] %v5551_v33 }
 0x703   :  { %v5553_v46 = vpop.permute.xlu0 %1117 }
 0x704   :  { %7401 = vst [vmem:[#allocation244_spill] sm:$0xff] %v5553_v46  ;;  %v5555_v0 = vpop.permute.xlu1 %2785 }
 0x705   :  { %7402 = vst [vmem:[#allocation245_spill] sm:$0xff] %v5555_v0 }
 0x707   :  { %v5557_v36 = vpop.permute.xlu0 %1125 }
 0x708   :  { %7403 = vst [vmem:[#allocation246_spill] sm:$0xff] %v5557_v36  ;;  %v5559_v11 = vpop.permute.xlu1 %2789 }
 0x709   :  { %7404 = vst [vmem:[#allocation247_spill] sm:$0xff] %v5559_v11 }
 0x70b   :  { %v5561_v12 = vpop.permute.xlu0 %1621 }
 0x70c   :  { %7405 = vst [vmem:[#allocation248_spill] sm:$0xff] %v5561_v12  ;;  %v5563_v29 = vpop.permute.xlu1 %2797 }
 0x70d   :  { %7406 = vst [vmem:[#allocation249_spill] sm:$0xff] %v5563_v29 }
 0x70f   :  { %v5565_v4 = vpop.permute.xlu0 %1633 }
 0x710   :  { %7407 = vst [vmem:[#allocation250_spill] sm:$0xff] %v5565_v4  ;;  %v5567_v9 = vpop.permute.xlu1 %2805 }
 0x711   :  { %7408 = vst [vmem:[#allocation251_spill] sm:$0xff] %v5567_v9 }
 0x713   :  { %v5569_v30 = vpop.permute.xlu0 %1641 }
 0x714   :  { %7409 = vst [vmem:[#allocation252_spill] sm:$0xff] %v5569_v30  ;;  %v2827_v5 = vpop.permute.xlu1 %2826 }
 0x717   :  { %v5571_v33 = vpop.permute.xlu0 %2061 }
 0x718   :  { %7410 = vst [vmem:[#allocation253_spill] sm:$0xff] %v5571_v33  ;;  %v2831_v62 = vpop.permute.xlu1 %2830 }
 0x719   :  { %v2851_v53 = vadd.f32 %v2831_v62, %v5445_v57 }
 0x71b   :  { %v5573_v47 = vpop.permute.xlu0 %2073 }
 0x71c   :  { %7411 = vst [vmem:[#allocation254_spill] sm:$0xff] %v5573_v47  ;;  %v2835_v55 = vpop.permute.xlu1 %2834 }
 0x71f   :  { %v5575_v0 = vpop.permute.xlu0 %2081 }
 0x720   :  { %7412 = vst [vmem:[#allocation255_spill] sm:$0xff] %v5575_v0  ;;  %v2839_v12 = vpop.permute.xlu1 %2838 }
 0x723   :  { %v5577_v11 = vpop.permute.xlu0 %2417 }
 0x724   :  { %7413 = vst [vmem:[#allocation256_spill] sm:$0xff] %v5577_v11  ;;  %v5583_v4 = vpop.permute.xlu1 %2861 }
 0x725   :  { %7416 = vst [vmem:[#allocation259_spill] sm:$0xff] %v5583_v4 }
 0x727   :  { %v5579_v16 = vpop.permute.xlu0 %2429 }
 0x728   :  { %7414 = vst [vmem:[#allocation257_spill] sm:$0xff] %v5579_v16  ;;  %v5587_v30 = vpop.permute.xlu1 %2865 }
 0x729   :  { %7418 = vst [vmem:[#allocation261_spill] sm:$0xff] %v5587_v30 }
 0x72b   :  { %v5581_v29 = vpop.permute.xlu0 %2437 }
 0x72c   :  { %7415 = vst [vmem:[#allocation258_spill] sm:$0xff] %v5581_v29  ;;  %v5593_v47 = vpop.permute.xlu1 %2873 }
 0x72d   :  { %7421 = vst [vmem:[#allocation264_spill] sm:$0xff] %v5593_v47 }
 0x72f   :  { %v5585_v9 = vpop.permute.xlu0 %2445 }
 0x730   :  { %7417 = vst [vmem:[#allocation260_spill] sm:$0xff] %v5585_v9  ;;  %v5597_v11 = vpop.permute.xlu1 %2881 }
 0x731   :  { %7423 = vst [vmem:[#allocation266_spill] sm:$0xff] %v5597_v11 }
 0x733   :  { %v5589_v33 = vpop.permute.xlu0 %2714 }
 0x734   :  { %7419 = vst [vmem:[#allocation262_spill] sm:$0xff] %v5589_v33  ;;  %v2905_v16 = vpop.permute.xlu1 %2904 }
 0x737   :  { %v5591_v36 = vpop.permute.xlu0 %2729 }
 0x738   :  { %7420 = vst [vmem:[#allocation263_spill] sm:$0xff] %v5591_v36  ;;  %v2909_v63 = vpop.permute.xlu1 %2908 }
 0x73b   :  { %v5595_v0 = vpop.permute.xlu0 %2739 }
 0x73c   :  { %7422 = vst [vmem:[#allocation265_spill] sm:$0xff] %v5595_v0  ;;  %v2849_v0 = vadd.f32 %v2827_v5, %v5415_v38  ;;  %v2913_v40 = vpop.permute.xlu1 %2912 }
 0x73f   :  { %v5599_v46 = vpop.permute.xlu0 %2749 }
 0x740   :  { %7424 = vst [vmem:[#allocation267_spill] sm:$0xff] %v5599_v46 }
 0x743   :  { %v2825_v29 = vpop.permute.xlu0 %2824 }
 0x744   :  { %v2848_v4 = vadd.f32 %v2825_v29, %v5434_v28 }
 0x746   :  { %v2928_v27 = vadd.f32 %v2905_v16, %v2848_v4 }
 0x747   :  { %v2829_v9 = vpop.permute.xlu0 %2828 }
 0x748   :  { %v2850_v30 = vadd.f32 %v2829_v9, %v5420_v17  ;;  %2938 = vperm.xlu1 %3805, %v2928_v27   ;;  %v2917_v27 = vpop.permute.xlu1 %2916  ;;  %v2855_v9 = vadd.f32 %v2839_v12, %v5457_v59  ;;  %v3840_v12 = vld [vmem:[#allocation2 + $0x2] sm:$0x1] }
 0x74a   :  { %v2930_v33 = vadd.f32 %v2909_v63, %v2850_v30  ;;  %v2853_v63 = vadd.f32 %v2835_v55, %v5451_v39  ;;  %v3838_v55 = vld [vmem:[#allocation2 + $0x20] sm:$0x1] }
 0x74b   :  { %v2833_v36 = vpop.permute.xlu0 %2832 }
 0x74c   :  { %2948 = vperm.xlu1 %3805, %v2930_v33   ;;  %v2852_v46 = vadd.f32 %v2833_v36, %v5424_v14  ;;  %v5624_v36 = vld [vmem:[#allocation2 + $0x2e] sm:$0x1] }
 0x74e   :  { %v2932_v29 = vadd.f32 %v2913_v40, %v2852_v46  ;;  %v3839_v40 = vld [vmem:[#allocation2 + $0x30] sm:$0x1]  ;;  %v5619_v46 = vld [vmem:[#allocation2 + $0x1e] sm:$0x1] }
 0x74f   :  { %v2837_v47 = vpop.permute.xlu0 %2836 }
 0x750   :  { %v2854_v4 = vadd.f32 %v2837_v47, %v5428_v41  ;;  %v5614_v47 = vld [vmem:[#allocation2 + $0x16] sm:$0x1] }
 0x752   :  { %v2934_v5 = vadd.f32 %v2917_v27, %v2854_v4  ;;  %v5641_v4 = vld [vmem:[#allocation2 + $0x6] sm:$0x1]  ;;  %v3845_v27 = vld [vmem:[#allocation2 + $0x1b] sm:$0x1] }
 0x753   :  { %v2907_v11 = vpop.permute.xlu0 %2906 }
 0x754   :  { %v2929_v50 = vadd.f32 %v2907_v11, %v2849_v0  ;;  %v5629_v11 = vld [vmem:[#allocation2 + $0x3e] sm:$0x1] }
 0x756   :  { %2943 = vperm.xlu0 %3801, %v2929_v50   ;;  %v3837_v50 = vld [vmem:[#allocation2 + $0x8] sm:$0x1] }
 0x757   :  { %v2911_v16 = vpop.permute.xlu0 %2910 }
 0x758   :  { %v2931_v17 = vadd.f32 %v2911_v16, %v2851_v53  ;;  %v5610_v53 = vld [vmem:[#allocation2 + $0xe] sm:$0x1]  ;;  %v5635_v16 = vld [vmem:[#allocation2 + $0x26] sm:$0x1] }
 0x759   :  { %7425 = vst [vmem:[#allocation268_spill] sm:$0xff] %v5610_v53 }
 0x75a   :  { %2958 = vperm.xlu0 %3801, %v2932_v29   ;;  %2953 = vperm.xlu1 %3805, %v2931_v17   ;;  %v5638_v29 = vld [vmem:[#allocation2 + $0x36] sm:$0x1]  ;;  %v3844_v17 = vld [vmem:[#allocation2 + $0x3] sm:$0x1] }
 0x75b   :  { %v2915_v30 = vpop.permute.xlu0 %2914 }
 0x75c   :  { %v2933_v33 = vadd.f32 %v2915_v30, %v2853_v63  ;;  %v3846_v63 = vld [vmem:[#allocation2 + $0x2b] sm:$0x1]  ;;  %v3847_v30 = vld [vmem:[#allocation2 + $0x3b] sm:$0x1] }
 0x75e   :  { %2968 = vperm.xlu0 %3801, %v2934_v5   ;;  %2963 = vperm.xlu1 %3805, %v2933_v33   ;;  %v5671_v33 = vld [vmem:[#allocation5 + $0x5] sm:$0x1] }
 0x75f   :  { %v2919_v0 = vpop.permute.xlu0 %2918  ;;  %7426 = vst [vmem:[#allocation269_spill] sm:$0xff] %v5671_v33 }
 0x760   :  { %v2935_v62 = vadd.f32 %v2919_v0, %v2855_v9 }
 0x762   :  { %3806 = vset.pattern.permute.xlu0 %v7216_v26  ;;  %2973 = vperm.xlu1 %3805, %v2935_v62   ;;  %v5674_v62 = vld [vmem:[#allocation5 + $0x25] sm:$0x1] }
 0x763   :  { %573 = vperm.xlu0 %3806, %v3837_v50   ;;  %v5676_v50 = vld [vmem:[#allocation5 + $0x1d] sm:$0x1] }
 0x764   :  { %7427 = vst [vmem:[#allocation270_spill] sm:$0xff] %v5676_v50 }
 0x766   :  { %3106 = vrot.lane.b32.xlu1 %v5610_v53, %s3981_s1 }
 0x767   :  { %585 = vperm.xlu0 %3806, %v3838_v55   ;;  %3807 = vset.pattern.permute.xlu1 %v7216_v26 }
 0x76a   :  { %3108 = vrot.lane.b32.xlu1 %v5614_v47, %s3981_s1 }
 0x76b   :  { %593 = vperm.xlu0 %3806, %v3839_v40  }
 0x76e   :  { %3110 = vrot.lane.b32.xlu1 %v5619_v46, %s3981_s1 }
 0x76f   :  { %1181 = vperm.xlu0 %3806, %v5224_v23   ;;  %v3841_v23 = vld [vmem:[#allocation2 + $0x1a] sm:$0x1] }
 0x772   :  { %3114 = vrot.lane.b32.xlu1 %v5624_v36, %s3981_s1 }
 0x773   :  { %1193 = vperm.xlu0 %3806, %v5230_v49   ;;  %v3842_v49 = vld [vmem:[#allocation2 + $0x2a] sm:$0x1] }
 0x776   :  { %3118 = vrot.lane.b32.xlu1 %v5629_v11, %s3981_s1 }
 0x777   :  { %1201 = vperm.xlu0 %3806, %v5236_v25   ;;  %v3843_v25 = vld [vmem:[#allocation2 + $0x3a] sm:$0x1] }
 0x77a   :  { %3004 = vperm.xlu1 %3807, %v5614_v47  }
 0x77b   :  { %1697 = vperm.xlu0 %3806, %v3840_v12  }
 0x77e   :  { %3014 = vperm.xlu1 %3807, %v5635_v16  }
 0x77f   :  { %1709 = vperm.xlu0 %3806, %v3841_v23  }
 0x782   :  { %3024 = vperm.xlu1 %3807, %v5638_v29  }
 0x783   :  { %1717 = vperm.xlu0 %3806, %v3842_v49  }
 0x786   :  { %3808 = vset.pattern.permute.xlu1 %v7229_v56 }
 0x787   :  { %1725 = vperm.xlu0 %3806, %v3843_v25   ;;  %3057 = vperm.xlu1 %3808, %v5641_v4  }
 0x78b   :  { %2137 = vperm.xlu0 %3806, %v3844_v17   ;;  %3065 = vperm.xlu1 %3808, %v5614_v47  }
 0x78f   :  { %2149 = vperm.xlu0 %3806, %v3845_v27   ;;  %3069 = vperm.xlu1 %3808, %v5619_v46  }
 0x793   :  { %2157 = vperm.xlu0 %3806, %v3846_v63   ;;  %3809 = vset.pattern.permute.xlu1 %v7216_v26  ;;  %v5682_v63 = vld [vmem:[#allocation5 + $0x35] sm:$0x1] }
 0x794   :  { %7428 = vst [vmem:[#allocation271_spill] sm:$0xff] %v5682_v63 }
 0x797   :  { %2165 = vperm.xlu0 %3806, %v3847_v30   ;;  %v5684_v30 = vld [vmem:[#allocation5 + $0x2d] sm:$0x1] }
 0x798   :  { %7429 = vst [vmem:[#allocation272_spill] sm:$0xff] %v5684_v30 }
 0x79b   :  { %2501 = vperm.xlu0 %3806, %v5234_v20  }
 0x79f   :  { %2513 = vperm.xlu0 %3806, %v5243_v42  }
 0x7a3   :  { %2521 = vperm.xlu0 %3806, %v5247_v44   ;;  %v5665_v44 = vld [vmem:[#allocation5 + $0x15] sm:$0x1] }
 0x7a7   :  { %2781 = vperm.xlu0 %3806, %v5415_v38   ;;  %v5667_v38 = vld [vmem:[#allocation5 + $0xd] sm:$0x1] }
 0x7ab   :  { %2793 = vperm.xlu0 %3806, %v5424_v14  }
 0x7af   :  { %2801 = vperm.xlu0 %3806, %v5428_v41  }
 0x7b3   :  { %2994 = vperm.xlu0 %3806, %v5641_v4  }
 0x7b7   :  { %3104 = vrot.lane.b32.xlu0 %v5641_v4, %s3981_s1 }
 0x7bb   :  { %3112 = vrot.lane.b32.xlu0 %v5635_v16, %s3981_s1 }
 0x7bf   :  { %3116 = vrot.lane.b32.xlu0 %v5638_v29, %s3981_s1 }
 0x7c3   :  { %2999 = vperm.xlu0 %3806, %v5610_v53  }
 0x7c7   :  { %3009 = vperm.xlu0 %3806, %v5619_v46   ;;  %v2939_v20 = vpop.permute.xlu1 %2938 }
 0x7c8   :  { %v2976_v9 = vmul.f32 %v2939_v20, %v5671_v33  ;;  %v5937_v33 = vld [vmem:[#allocation5 + $0x1c] sm:$0x1] }
 0x7cb   :  { %3019 = vperm.xlu0 %3806, %v5624_v36   ;;  %v2949_v42 = vpop.permute.xlu1 %2948 }
 0x7cc   :  { %v2978_v14 = vmul.f32 %v2949_v42, %v5665_v44 }
 0x7ce   :  { %v3590_v55 = vrot.slane %v2978_v14, 6 }
 0x7cf   :  { %3029 = vperm.xlu0 %3806, %v5629_v11  }
 0x7d5   :  { %v2944_v41 = vpop.permute.xlu0 %2943 }
 0x7d6   :  { %v2977_v5 = vmul.f32 %v2944_v41, %v5667_v38 }
 0x7d8   :  { %v3588_v0 = vrot.slane %v2977_v5, 7 }
 0x7d9   :  { %v2954_v40 = vpop.permute.xlu1 %2953  ;;  %v2959_v12 = vpop.permute.xlu0 %2958 }
 0x7da   :  { %v3589_v23 = vsel %vm3313_vm0, %v3588_v0, %v2976_v9  ;;  %v2979_v49 = vmul.f32 %v2954_v40, %v5676_v50  ;;  %v2980_v25 = vmul.f32 %v2959_v12, %v5674_v62  ;;  %v5689_v40 = vld [vmem:[#allocation5 + $0x3d] sm:$0x1] }
 0x7db   :  { %v3591_v17 = vsel %vm3316_vm1, %v3590_v55, %v3589_v23  ;;  %7430 = vst [vmem:[#allocation273_spill] sm:$0xff] %v5689_v40 }
 0x7dc   :  { %v3592_v27 = vrot.slane %v2979_v49, 5  ;;  %v3594_v20 = vrot.slane %v2980_v25, 4 }
 0x7dd   :  { %v2964_v42 = vpop.permute.xlu1 %2963  ;;  %v2969_v14 = vpop.permute.xlu0 %2968 }
 0x7de   :  { %v3593_v41 = vsel %vm3319_vm2, %v3592_v27, %v3591_v17  ;;  %v2981_v5 = vmul.f32 %v2964_v42, %v5684_v30  ;;  %v2982_v9 = vmul.f32 %v2969_v14, %v5682_v63  ;;  %v7495_v30 = vld [vmem:[#allocation53_spill] sm:$0xff] }
 0x7df   :  { %v3595_v55 = vsel %vm3322_vm3, %v3594_v20, %v3593_v41 }
 0x7e0   :  { %v3596_v0 = vrot.slane %v2981_v5, 3  ;;  %v3598_v12 = vrot.slane %v2982_v9, 2 }
 0x7e1   :  { %v2974_v23 = vpop.permute.xlu1 %2973 }
 0x7e2   :  { %v3597_v49 = vsel %vm3325_vm4, %v3596_v0, %v3595_v55  ;;  %v2983_v25 = vmul.f32 %v2974_v23, %v5689_v40  ;;  %v5694_v19 = vpop.permute.xlu0 %573 }
 0x7e3   :  { %7431 = vst [vmem:[#allocation274_spill] sm:$0xff] %v5694_v19  ;;  %v3599_v42 = vsel %vm3328_vm5, %v3598_v12, %v3597_v49  ;;  %v55_v19 = vld [vmem:[#allocation5 + $0x38] sm:$0x1] }
 0x7e4   :  { %v3600_v17 = vrot.slane %v2983_v25, 1  ;;  %v3185_v25 = vld [vmem:[#allocation2 + $0xf] sm:$0x1] }
 0x7e5   :  { %v3107_v27 = vpop.permute.xlu1 %3106 }
 0x7e6   :  { %v3129_v14 = vadd.f32 %v3107_v27, %v5610_v53  ;;  %v5698_v5 = vpop.permute.xlu0 %585  ;;  %v5701_v20 = vsel %vm3331_vm6, %v3600_v17, %v3599_v42  ;;  %v7534_v53 = vld [vmem:[#allocation62_spill] sm:$0xff] }
 0x7e7   :  { %7432 = vst [vmem:[#allocation275_spill] sm:$0xff] %v5698_v5  ;;  %7433 = vst [vmem:[#allocation276_spill] sm:$0xff] %v5701_v20 }
 0x7e8   :  { %3143 = vperm.xlu0 %3806, %v3129_v14  }
 0x7e9   :  { %v3109_v41 = vpop.permute.xlu1 %3108 }
 0x7ea   :  { %v5703_v9 = vpop.permute.xlu0 %593  ;;  %v3130_v0 = vadd.f32 %v3109_v41, %v5614_v47 }
 0x7eb   :  { %7434 = vst [vmem:[#allocation277_spill] sm:$0xff] %v5703_v9 }
 0x7ec   :  { %3148 = vperm.xlu1 %3809, %v3130_v0  }
 0x7ed   :  { %v3111_v55 = vpop.permute.xlu1 %3110 }
 0x7ee   :  { %v5706_v23 = vpop.permute.xlu0 %1181  ;;  %v3131_v17 = vadd.f32 %v3111_v55, %v5619_v46 }
 0x7ef   :  { %7435 = vst [vmem:[#allocation278_spill] sm:$0xff] %v5706_v23 }
 0x7f0   :  { %3810 = vset.pattern.permute.xlu1 %v7229_v56 }
 0x7f1   :  { %v3115_v12 = vpop.permute.xlu1 %3114  ;;  %3199 = vperm.xlu1 %3810, %v3185_v25  }
 0x7f2   :  { %v5709_v49 = vpop.permute.xlu0 %1193 }
 0x7f3   :  { %7436 = vst [vmem:[#allocation279_spill] sm:$0xff] %v5709_v49  ;;  %v5732_v49 = vld [vmem:[#allocation5 + $0x17] sm:$0x1] }
 0x7f5   :  { %v3119_v27 = vpop.permute.xlu1 %3118  ;;  %3811 = vset.pattern.permute.xlu1 %v7216_v26 }
 0x7f6   :  { %v5713_v42 = vpop.permute.xlu0 %1201  ;;  %3153 = vperm.xlu1 %3811, %v3131_v17   ;;  %v5729_v17 = vld [vmem:[#allocation5 + $0x16] sm:$0x1] }
 0x7f7   :  { %7437 = vst [vmem:[#allocation280_spill] sm:$0xff] %v5713_v42 }
 0x7f9   :  { %v3005_v47 = vpop.permute.xlu1 %3004 }
 0x7fa   :  { %v5715_v14 = vpop.permute.xlu0 %1697  ;;  %3812 = vset.pattern.permute.xlu1 %v7229_v56 }
 0x7fb   :  { %7438 = vst [vmem:[#allocation281_spill] sm:$0xff] %v5715_v14  ;;  %3263 = vperm.xlu1 %3812, %v3185_v25   ;;  %v3034_v14 = vmul.f32 %v3005_v47, %v5729_v17 }
 0x7fd   :  { %v5718_v41 = vpop.permute.xlu1 %3014 }
 0x7fe   :  { %7439 = vst [vmem:[#allocation282_spill] sm:$0xff] %v5718_v41  ;;  %v5720_v0 = vpop.permute.xlu0 %1709 }
 0x7ff   :  { %7440 = vst [vmem:[#allocation283_spill] sm:$0xff] %v5720_v0  ;;  %3813 = vset.pattern.permute.xlu1 %v7216_v26 }
 0x801   :  { %v5723_v20 = vpop.permute.xlu1 %3024 }
 0x802   :  { %7441 = vst [vmem:[#allocation284_spill] sm:$0xff] %v5723_v20  ;;  %v5725_v46 = vpop.permute.xlu0 %1717 }
 0x803   :  { %7442 = vst [vmem:[#allocation285_spill] sm:$0xff] %v5725_v46 }
 0x806   :  { %v5727_v55 = vpop.permute.xlu0 %1725  ;;  %v3058_v42 = vpop.permute.xlu1 %3057 }
 0x807   :  { %7443 = vst [vmem:[#allocation286_spill] sm:$0xff] %v5727_v55 }
 0x80a   :  { %v5734_v25 = vpop.permute.xlu0 %2137  ;;  %v3066_v41 = vpop.permute.xlu1 %3065 }
 0x80b   :  { %7444 = vst [vmem:[#allocation287_spill] sm:$0xff] %v5734_v25  ;;  %v3090_v0 = vmul.f32 %v3066_v41, %v5732_v49 }
 0x80d   :  { %v5737_v23 = vadd.f32 %v3090_v0, %v3034_v14  ;;  %v5757_v14 = vld [vmem:[#allocation5 + $0x7] sm:$0x1]  ;;  %v5760_v0 = vld [vmem:[#allocation5 + $0x6] sm:$0x1] }
 0x80e   :  { %v5739_v9 = vpop.permute.xlu0 %2149  ;;  %7455 = vst [vmem:[#allocation298_spill] sm:$0xff] %v5757_v14  ;;  %v3088_v41 = vmul.f32 %v3058_v42, %v5757_v14  ;;  %7456 = vst [vmem:[#allocation299_spill] sm:$0xff] %v5760_v0  ;;  %v3851_v42 = vld [vmem:[#allocation2 + $0x38] sm:$0x1] }
 0x80f   :  { %7445 = vst [vmem:[#allocation288_spill] sm:$0xff] %v5737_v23  ;;  %7446 = vst [vmem:[#allocation289_spill] sm:$0xff] %v5739_v9 }
 0x812   :  { %v5741_v20 = vpop.permute.xlu0 %2157 }
 0x813   :  { %7447 = vst [vmem:[#allocation290_spill] sm:$0xff] %v5741_v20  ;;  %v5768_v20 = vld [vmem:[#allocation2 + $0x1f] sm:$0x1] }
 0x814   :  { %7458 = vst [vmem:[#allocation301_spill] sm:$0xff] %v5768_v20 }
 0x816   :  { %v5743_v46 = vpop.permute.xlu0 %2165 }
 0x817   :  { %7448 = vst [vmem:[#allocation291_spill] sm:$0xff] %v5743_v46 }
 0x81a   :  { %v5745_v55 = vpop.permute.xlu0 %2501 }
 0x81b   :  { %7449 = vst [vmem:[#allocation292_spill] sm:$0xff] %v5745_v55 }
 0x81e   :  { %v5747_v5 = vpop.permute.xlu0 %2513 }
 0x81f   :  { %7450 = vst [vmem:[#allocation293_spill] sm:$0xff] %v5747_v5 }
 0x822   :  { %v5749_v47 = vpop.permute.xlu0 %2521 }
 0x823   :  { %7451 = vst [vmem:[#allocation294_spill] sm:$0xff] %v5749_v47 }
 0x826   :  { %v5751_v37 = vpop.permute.xlu0 %2781 }
 0x827   :  { %7452 = vst [vmem:[#allocation295_spill] sm:$0xff] %v5751_v37  ;;  %v3135_v37 = vadd.f32 %v3119_v27, %v5629_v11 }
 0x82a   :  { %v5753_v25 = vpop.permute.xlu0 %2793 }
 0x82b   :  { %7453 = vst [vmem:[#allocation296_spill] sm:$0xff] %v5753_v25 }
 0x82e   :  { %v5755_v45 = vpop.permute.xlu0 %2801 }
 0x82f   :  { %7454 = vst [vmem:[#allocation297_spill] sm:$0xff] %v5755_v45 }
 0x832   :  { %v2995_v23 = vpop.permute.xlu0 %2994 }
 0x833   :  { %v3032_v46 = vmul.f32 %v2995_v23, %v5760_v0  ;;  %v3848_v23 = vld [vmem:[#allocation2] sm:$0x1] }
 0x835   :  { %v5763_v55 = vadd.f32 %v3088_v41, %v3032_v46  ;;  %v3190_v46 = vld [vmem:[#allocation2 + $0x37] sm:$0x1] }
 0x836   :  { %v3105_v5 = vpop.permute.xlu0 %3104 }
 0x837   :  { %7457 = vst [vmem:[#allocation300_spill] sm:$0xff] %v5763_v55  ;;  %v3128_v47 = vadd.f32 %v3105_v5, %v5641_v4  ;;  %v3133_v4 = vadd.f32 %v3115_v12, %v5624_v36  ;;  %v3849_v5 = vld [vmem:[#allocation2 + $0x18] sm:$0x1]  ;;  %v5782_v12 = vld [vmem:[#allocation2 + $0x27] sm:$0x1] }
 0x838   :  { %7460 = vst [vmem:[#allocation303_spill] sm:$0xff] %v5782_v12 }
 0x839   :  { %3138 = vperm.xlu0 %3806, %v3128_v47  }
 0x83a   :  { %v3113_v25 = vpop.permute.xlu0 %3112 }
 0x83b   :  { %v3132_v45 = vadd.f32 %v3113_v25, %v5635_v16  ;;  %v5775_v16 = vld [vmem:[#allocation2 + $0x7] sm:$0x1]  ;;  %v5790_v25 = vld [vmem:[#allocation5 + $0xa] sm:$0x1] }
 0x83c   :  { %7459 = vst [vmem:[#allocation302_spill] sm:$0xff] %v5775_v16  ;;  %7462 = vst [vmem:[#allocation305_spill] sm:$0xff] %v5790_v25 }
 0x83d   :  { %3173 = vperm.xlu0 %3806, %v3135_v37   ;;  %3158 = vperm.xlu1 %3813, %v3132_v45   ;;  %v3850_v45 = vld [vmem:[#allocation2 + $0x28] sm:$0x1] }
 0x83e   :  { %v3117_v37 = vpop.permute.xlu0 %3116 }
 0x83f   :  { %v3134_v27 = vadd.f32 %v3117_v37, %v5638_v29  ;;  %v5788_v29 = vld [vmem:[#allocation2 + $0x2f] sm:$0x1] }
 0x840   :  { %7461 = vst [vmem:[#allocation304_spill] sm:$0xff] %v5788_v29 }
 0x841   :  { %3819 = vset.pattern.permute.xlu0 %v7229_v56  ;;  %3814 = vset.pattern.permute.xlu1 %v7229_v56 }
 0x842   :  { %657 = vperm.xlu0 %3819, %v3848_v23   ;;  %3209 = vperm.xlu1 %3814, %v5768_v20   ;;  %v5806_v23 = vld [vmem:[#allocation5 + $0x2] sm:$0x1] }
 0x846   :  { %669 = vperm.xlu0 %3819, %v3849_v5   ;;  %3815 = vset.pattern.permute.xlu1 %v7216_v26  ;;  %v5815_v5 = vld [vmem:[#allocation5 + $0x2a] sm:$0x1] }
 0x847   :  { %3163 = vperm.xlu1 %3815, %v3133_v4  }
 0x84a   :  { %677 = vperm.xlu0 %3819, %v3850_v45   ;;  %v5817_v45 = vld [vmem:[#allocation5 + $0x32] sm:$0x1] }
 0x84b   :  { %3816 = vset.pattern.permute.xlu1 %v7229_v56  ;;  %7465 = vst [vmem:[#allocation308_spill] sm:$0xff] %v5817_v45 }
 0x84c   :  { %3258 = vperm.xlu1 %3816, %v5775_v16  }
 0x84e   :  { %685 = vperm.xlu0 %3819, %v3851_v42  }
 0x850   :  { %3817 = vset.pattern.permute.xlu1 %v7216_v26  ;;  %v5792_v26 = vld [vmem:[#allocation5 + $0x12] sm:$0x1] }
 0x851   :  { %3168 = vperm.xlu1 %3817, %v3134_v27   ;;  %v7466_v27 = vld [vmem:[#allocation142_spill] sm:$0xff]  ;;  %v250_v18 = vmul.f32 %v7473_v52, %v5792_v26 }
 0x852   :  { %1257 = vperm.xlu0 %3819, %v5430_v54   ;;  %v1897_v54 = vmul.f32 %v5090_v1, %v5790_v25  ;;  %v1901_v42 = vmul.f32 %v7466_v27, %v5815_v5  ;;  %v7536_v25 = vld [vmem:[#allocation64_spill] sm:$0xff] }
 0x854   :  { %v3440_v47 = vrot.slane %v1897_v54, 7  ;;  %v3448_v55 = vrot.slane %v1901_v42, 3  ;;  %v3853_v42 = vld [vmem:[#allocation2 + $0x23] sm:$0x1] }
 0x855   :  { %3818 = vset.pattern.permute.xlu1 %v7229_v56  ;;  %v1898_v56 = vmul.f32 %v5096_v7, %v5792_v26  ;;  %v1896_v7 = vmul.f32 %v5088_v3, %v5806_v23  ;;  %v5827_v3 = vld [vmem:[#allocation5 + $0x3a] sm:$0x1] }
 0x856   :  { %1269 = vperm.xlu0 %3819, %v5436_v31   ;;  %3278 = vperm.xlu1 %3818, %v5782_v12   ;;  %v5800_v31 = vld [vmem:[#allocation5 + $0x1a] sm:$0x1] }
 0x857   :  { %v1899_v41 = vmul.f32 %v5098_v60, %v5800_v31  ;;  %v3442_v4 = vrot.slane %v1898_v56, 6  ;;  %v3441_v60 = vsel %vm3313_vm0, %v3440_v47, %v1896_v7  ;;  %v7468_v47 = vld [vmem:[#allocation144_spill] sm:$0xff]  ;;  %v7485_v12 = vld [vmem:[#allocation14_spill] sm:$0xff] }
 0x858   :  { %v5884_v14 = vmul.f32 %v7485_v12, %v55_v19  ;;  %v7491_v12 = vld [vmem:[#allocation41_spill] sm:$0xff] }
 0x859   :  { %v3444_v37 = vrot.slane %v1899_v41, 5  ;;  %v1903_v41 = vmul.f32 %v7468_v47, %v5827_v3  ;;  %v5848_v47 = vld [vmem:[#allocation5 + $0x21] sm:$0x1] }
 0x85a   :  { %1277 = vperm.xlu0 %3819, %v5441_v22   ;;  %3224 = vperm.xlu1 %3818, %v3190_v46   ;;  %v5802_v22 = vld [vmem:[#allocation5 + $0x22] sm:$0x1] }
 0x85b   :  { %7463 = vst [vmem:[#allocation306_spill] sm:$0xff] %v5802_v22  ;;  %v1900_v1 = vmul.f32 %v5104_v13, %v5802_v22  ;;  %v3443_v13 = vsel %vm3316_vm1, %v3442_v4, %v3441_v60 }
 0x85c   :  { %v3445_v56 = vsel %vm3319_vm2, %v3444_v37, %v3443_v13  ;;  %v5840_v13 = vld [vmem:[#allocation5 + $0x11] sm:$0x1] }
 0x85d   :  { %v3446_v54 = vrot.slane %v1900_v1, 4  ;;  %v3852_v1 = vld [vmem:[#allocation2 + $0xb] sm:$0x1] }
 0x85e   :  { %1285 = vperm.xlu0 %3819, %v5447_v8   ;;  %3283 = vperm.xlu1 %3818, %v5788_v29   ;;  %v5813_v8 = vld [vmem:[#allocation2 + $0x3f] sm:$0x1] }
 0x85f   :  { %7464 = vst [vmem:[#allocation307_spill] sm:$0xff] %v5813_v8  ;;  %v3447_v7 = vsel %vm3322_vm3, %v3446_v54, %v3445_v56  ;;  %v52_v54 = vld [vmem:[#allocation5 + $0x20] sm:$0x1] }
 0x860   :  { %v3449_v4 = vsel %vm3325_vm4, %v3448_v55, %v3447_v7  ;;  %v49_v55 = vld [vmem:[#allocation5 + $0x8] sm:$0x1]  ;;  %v48_v7 = vld [vmem:[#allocation5] sm:$0x1]  ;;  %v100_v6 = vmul.f32 %v7474_v61, %v52_v54 }
 0x861   :  { %v7480_v61 = vld [vmem:[#allocation51_spill] sm:$0xff] }
 0x862   :  { %1781 = vperm.xlu0 %3819, %v5453_v24   ;;  %3288 = vperm.xlu1 %3818, %v3190_v46   ;;  %v7467_v24 = vld [vmem:[#allocation143_spill] sm:$0xff] }
 0x863   :  { %v1902_v46 = vmul.f32 %v7467_v24, %v5817_v45  ;;  %v5842_v24 = vld [vmem:[#allocation5 + $0x9] sm:$0x1] }
 0x865   :  { %v3450_v27 = vrot.slane %v1902_v46, 2  ;;  %v5844_v46 = vld [vmem:[#allocation5 + $0x30] sm:$0x1] }
 0x866   :  { %1793 = vperm.xlu0 %3819, %v5459_v15   ;;  %3293 = vperm.xlu1 %3818, %v5813_v8   ;;  %v3452_v15 = vrot.slane %v1903_v41, 1  ;;  %v5850_v41 = vld [vmem:[#allocation5 + $0x31] sm:$0x1]  ;;  %v102_v43 = vmul.f32 %v7475_v48, %v5844_v46 }
 0x867   :  { %v3451_v60 = vsel %vm3328_vm5, %v3450_v27, %v3449_v4  ;;  %v5852_v27 = vld [vmem:[#allocation5 + $0x13] sm:$0x1]  ;;  %v7470_v4 = vld [vmem:[#allocation11_spill] sm:$0xff] }
 0x868   :  { %v3453_v37 = vsel %vm3331_vm6, %v3452_v15, %v3451_v60  ;;  %v7471_v60 = vld [vmem:[#allocation21_spill] sm:$0xff] }
 0x869   :  { %v7482_v48 = vld [vmem:[#allocation13_spill] sm:$0xff] }
 0x86a   :  { %1801 = vperm.xlu0 %3819, %v5463_v21   ;;  %3077 = vperm.xlu1 %3818, %v5624_v36   ;;  %v50_v21 = vld [vmem:[#allocation5 + $0x10] sm:$0x1]  ;;  %v3854_v36 = vld [vmem:[#allocation2 + $0x33] sm:$0x1] }
 0x86b   :  { %v98_v15 = vmul.f32 %v7470_v4, %v50_v21  ;;  %v7476_v4 = vld [vmem:[#allocation17_spill] sm:$0xff]  ;;  %v778_v2 = vmul.f32 %v7480_v61, %v50_v21  ;;  %v3856_v21 = vld [vmem:[#allocation2 + $0x1c] sm:$0x1] }
 0x86c   :  { %v164_v58 = vmul.f32 %v7476_v4, %v5848_v47  ;;  %v7483_v4 = vld [vmem:[#allocation55_spill] sm:$0xff] }
 0x86d   :  { %v777_v29 = vmul.f32 %v7483_v4, %v49_v55  ;;  %v776_v4 = vmul.f32 %v7491_v12, %v48_v7 }
 0x86e   :  { %2221 = vperm.xlu0 %3819, %v3852_v1   ;;  %3085 = vperm.xlu1 %3818, %v5629_v11   ;;  %v7469_v11 = vld [vmem:[#allocation16_spill] sm:$0xff]  ;;  %v51_v1 = vld [vmem:[#allocation5 + $0x18] sm:$0x1] }
 0x86f   :  { %v162_v56 = vmul.f32 %v7469_v11, %v5840_v13  ;;  %v3855_v11 = vld [vmem:[#allocation2 + $0x4] sm:$0x1]  ;;  %v5876_v35 = vmul.f32 %v7481_v34, %v51_v1  ;;  %v5890_v34 = vadd.f32 %v164_v58, %v100_v6  ;;  %v3344_v6 = vrot.slane %v778_v2, 6  ;;  %v7493_v58 = vld [vmem:[#allocation57_spill] sm:$0xff] }
 0x871   :  { %v170_v52 = vadd.f32 %v162_v56, %v98_v15  ;;  %v7487_v15 = vld [vmem:[#allocation33_spill] sm:$0xff]  ;;  %7488 = vst [vmem:[#allocation143_spill] sm:$0xff] %v5890_v34 }
 0x872   :  { %2233 = vperm.xlu0 %3819, %v3853_v42   ;;  %3454 = vrot.lane.b32.xlu1 %v3453_v37, %s3994_s12  ;;  %v97_v37 = vmul.f32 %v7471_v60, %v49_v55  ;;  %v53_v42 = vld [vmem:[#allocation5 + $0x28] sm:$0x1]  ;;  %v7477_v60 = vld [vmem:[#allocation18_spill] sm:$0xff] }
 0x873   :  { %v166_v51 = vmul.f32 %v7477_v60, %v5850_v41  ;;  %v5879_v10 = vmul.f32 %v7482_v48, %v53_v42  ;;  %v7484_v60 = vld [vmem:[#allocation52_spill] sm:$0xff]  ;;  %v258_v56 = vadd.f32 %v250_v18, %v170_v52  ;;  %v5903_v18 = vld [vmem:[#allocation5 + $0x33] sm:$0x1]  ;;  %v7492_v52 = vld [vmem:[#allocation38_spill] sm:$0xff]  ;;  %v781_v50 = vmul.f32 %v7495_v30, %v53_v42 }
 0x874   :  { %v779_v20 = vmul.f32 %v7484_v60, %v51_v1  ;;  %v7490_v48 = vld [vmem:[#allocation20_spill] sm:$0xff]  ;;  %v514_v60 = vmul.f32 %v7492_v52, %v5665_v44  ;;  %v5921_v52 = vld [vmem:[#allocation5 + $0x4] sm:$0x1]  ;;  %v7501_v30 = vld [vmem:[#allocation30_spill] sm:$0xff] }
 0x875   :  { %v5892_v61 = vadd.f32 %v166_v51, %v102_v43  ;;  %v5896_v55 = vmul.f32 %v7490_v48, %v5806_v23  ;;  %v5898_v1 = vld [vmem:[#allocation5 + $0xb] sm:$0x1]  ;;  %v780_v51 = vmul.f32 %v7493_v58, %v52_v54  ;;  %v7494_v43 = vld [vmem:[#allocation23_spill] sm:$0xff]  ;;  %v3350_v34 = vrot.slane %v781_v50, 3 }
 0x876   :  { %2241 = vperm.xlu0 %3819, %v3854_v36   ;;  %v7472_v36 = vld [vmem:[#allocation15_spill] sm:$0xff]  ;;  %v3346_v48 = vrot.slane %v779_v20, 5  ;;  %v7499_v20 = vld [vmem:[#allocation28_spill] sm:$0xff] }
 0x877   :  { %v161_v9 = vmul.f32 %v7472_v36, %v5842_v24  ;;  %v7478_v36 = vld [vmem:[#allocation19_spill] sm:$0xff]  ;;  %7489 = vst [vmem:[#allocation144_spill] sm:$0xff] %v5892_v61 }
 0x878   :  { %v5870_v8 = vmul.f32 %v7478_v36, %v48_v7  ;;  %v7498_v54 = vld [vmem:[#allocation43_spill] sm:$0xff] }
 0x879   :  { %v5886_v36 = vadd.f32 %v161_v9, %v97_v37  ;;  %v5901_v37 = vld [vmem:[#allocation5 + $0x23] sm:$0x1]  ;;  %v602_v58 = vmul.f32 %v7498_v54, %v5729_v17  ;;  %v5942_v54 = vld [vmem:[#allocation5 + $0x3c] sm:$0x1] }
 0x87a   :  { %2577 = vperm.xlu0 %3819, %v3855_v11   ;;  %v7479_v11 = vld [vmem:[#allocation29_spill] sm:$0xff]  ;;  %v5931_v42 = vmul.f32 %v7501_v30, %v5901_v37  ;;  %7505 = vst [vmem:[#allocation15_spill] sm:$0xff] %v5942_v54  ;;  %v3348_v30 = vrot.slane %v780_v51, 4 }
 0x87b   :  { %v338_v40 = vmul.f32 %v7479_v11, %v5852_v27  ;;  %7486 = vst [vmem:[#allocation142_spill] sm:$0xff] %v5886_v36  ;;  %v426_v11 = vmul.f32 %v7487_v15, %v5867_v32  ;;  %v5910_v15 = vmul.f32 %v7494_v43, %v5800_v31  ;;  %v3857_v43 = vld [vmem:[#allocation2 + $0x2c] sm:$0x1]  ;;  %v3858_v36 = vld [vmem:[#allocation2 + $0x3c] sm:$0x1] }
 0x87c   :  { %7502 = vst [vmem:[#allocation11_spill] sm:$0xff] %v5931_v42  ;;  %v7507_v42 = vld [vmem:[#allocation32_spill] sm:$0xff] }
 0x87d   :  { %v346_v9 = vadd.f32 %v338_v40, %v258_v56  ;;  %v7496_v40 = vld [vmem:[#allocation25_spill] sm:$0xff]  ;;  %v7497_v56 = vld [vmem:[#allocation27_spill] sm:$0xff]  ;;  %v5949_v61 = vmul.f32 %v7507_v42, %v5921_v52 }
 0x87e   :  { %2589 = vperm.xlu0 %3819, %v3856_v21   ;;  %v3342_v21 = vrot.slane %v777_v29, 7  ;;  %v5915_v7 = vmul.f32 %v7496_v40, %v5815_v5  ;;  %v5919_v12 = vmul.f32 %v7497_v56, %v5827_v3  ;;  %v5927_v29 = vmul.f32 %v7499_v20, %v5898_v1  ;;  %v7503_v40 = vld [vmem:[#allocation31_spill] sm:$0xff]  ;;  %v7506_v20 = vld [vmem:[#allocation48_spill] sm:$0xff] }
 0x87f   :  { %v434_v2 = vadd.f32 %v426_v11, %v346_v9  ;;  %v5935_v56 = vmul.f32 %v7503_v40, %v5903_v18  ;;  %v5939_v11 = vld [vmem:[#allocation5 + $0x2c] sm:$0x1]  ;;  %v690_v16 = vmul.f32 %v7506_v20, %v5732_v49  ;;  %7508 = vst [vmem:[#allocation22_spill] sm:$0xff] %v5949_v61  ;;  %v5951_v40 = vld [vmem:[#allocation5 + $0x1e] sm:$0x1]  ;;  %v7513_v20 = vld [vmem:[#allocation35_spill] sm:$0xff] }
 0x880   :  { %7500 = vst [vmem:[#allocation16_spill] sm:$0xff] %v5927_v29  ;;  %v3343_v9 = vsel %vm3313_vm0, %v3342_v21, %v776_v4  ;;  %7509 = vst [vmem:[#allocation24_spill] sm:$0xff] %v5951_v40  ;;  %v7510_v4 = vld [vmem:[#allocation59_spill] sm:$0xff] }
 0x881   :  { %7504 = vst [vmem:[#allocation21_spill] sm:$0xff] %v5935_v56  ;;  %v3345_v29 = vsel %vm3316_vm1, %v3344_v6, %v3343_v9  ;;  %v782_v21 = vmul.f32 %v7510_v4, %v5844_v46  ;;  %v5962_v6 = vmul.f32 %v7513_v20, %v5939_v11  ;;  %v7515_v9 = vld [vmem:[#allocation54_spill] sm:$0xff]  ;;  %v120_v61 = vld [vmem:[#allocation5 + $0x1] sm:$0x1]  ;;  %v7518_v46 = vld [vmem:[#allocation37_spill] sm:$0xff] }
 0x882   :  { %2597 = vperm.xlu0 %3819, %v3857_v43   ;;  %v522_v43 = vadd.f32 %v514_v60, %v434_v2  ;;  %v3347_v56 = vsel %vm3319_vm2, %v3346_v48, %v3345_v29  ;;  %v7511_v60 = vld [vmem:[#allocation34_spill] sm:$0xff]  ;;  %v783_v42 = vmul.f32 %v7515_v9, %v55_v19  ;;  %v7516_v48 = vld [vmem:[#allocation36_spill] sm:$0xff]  ;;  %v5971_v29 = vmul.f32 %v7518_v46, %v5667_v38  ;;  %v7520_v4 = vld [vmem:[#allocation39_spill] sm:$0xff] }
 0x883   :  { %v5958_v2 = vmul.f32 %v7511_v60, %v5937_v33  ;;  %7514 = vst [vmem:[#allocation17_spill] sm:$0xff] %v5962_v6  ;;  %v5967_v50 = vmul.f32 %v7516_v48, %v5942_v54  ;;  %v5975_v60 = vmul.f32 %v7520_v4, %v5674_v62  ;;  %v7522_v20 = vld [vmem:[#allocation40_spill] sm:$0xff]  ;;  %v123_v19 = vld [vmem:[#allocation5 + $0x19] sm:$0x1] }
 0x884   :  { %v610_v51 = vadd.f32 %v602_v58, %v522_v43  ;;  %7519 = vst [vmem:[#allocation19_spill] sm:$0xff] %v5971_v29  ;;  %v5979_v58 = vmul.f32 %v7522_v20, %v5682_v63  ;;  %v125_v43 = vld [vmem:[#allocation5 + $0x29] sm:$0x1]  ;;  %v127_v9 = vld [vmem:[#allocation5 + $0x39] sm:$0x1]  ;;  %v3349_v20 = vsel %vm3322_vm3, %v3348_v30, %v3347_v56  ;;  %v3354_v22 = vrot.slane %v783_v42, 1 }
 0x885   :  { %7512 = vst [vmem:[#allocation26_spill] sm:$0xff] %v5958_v2  ;;  %7517 = vst [vmem:[#allocation18_spill] sm:$0xff] %v5967_v50  ;;  %v7526_v48 = vld [vmem:[#allocation44_spill] sm:$0xff]  ;;  %v5991_v29 = vld [vmem:[#allocation5 + $0x3e] sm:$0x1] }
 0x886   :  { %2605 = vperm.xlu0 %3819, %v3858_v36   ;;  %7521 = vst [vmem:[#allocation29_spill] sm:$0xff] %v5975_v60  ;;  %7523 = vst [vmem:[#allocation51_spill] sm:$0xff] %v5979_v58  ;;  %v7524_v36 = vld [vmem:[#allocation42_spill] sm:$0xff]  ;;  %v5987_v50 = vmul.f32 %v7526_v48, %v5951_v40  ;;  %v5989_v46 = vld [vmem:[#allocation5 + $0x2e] sm:$0x1]  ;;  %v5995_v60 = vadd.f32 %v690_v16, %v610_v51  ;;  %v160_v48 = vmul.f32 %v7534_v53, %v120_v61 }
 0x887   :  { %v5983_v6 = vmul.f32 %v7524_v36, %v5760_v0  ;;  %7528 = vst [vmem:[#allocation55_spill] sm:$0xff] %v5989_v46  ;;  %7529 = vst [vmem:[#allocation52_spill] sm:$0xff] %v5991_v29  ;;  %v5993_v4 = vld [vmem:[#allocation5 + $0xf] sm:$0x1]  ;;  %v5998_v58 = vld [vmem:[#allocation5 + $0x27] sm:$0x1]  ;;  %v3351_v36 = vsel %vm3325_vm4, %v3350_v34, %v3349_v20  ;;  %v163_v40 = vmul.f32 %v7536_v25, %v123_v19 }
 0x888   :  { %7527 = vst [vmem:[#allocation13_spill] sm:$0xff] %v5987_v50  ;;  %7530 = vst [vmem:[#allocation14_spill] sm:$0xff] %v5993_v4  ;;  %v6000_v2 = vld [vmem:[#allocation5 + $0x37] sm:$0x1]  ;;  %v7537_v0 = vld [vmem:[#allocation66_spill] sm:$0xff] }
 0x889   :  { %7525 = vst [vmem:[#allocation12_spill] sm:$0xff] %v5983_v6  ;;  %7531 = vst [vmem:[#allocation33_spill] sm:$0xff] %v5995_v60  ;;  %v3352_v6 = vrot.slane %v782_v21, 2  ;;  %v7535_v50 = vld [vmem:[#allocation65_spill] sm:$0xff]  ;;  %v165_v16 = vmul.f32 %v7537_v0, %v125_v43  ;;  %v7541_v34 = vld [vmem:[#allocation46_spill] sm:$0xff] }
 0x88a   :  { %7532 = vst [vmem:[#allocation20_spill] sm:$0xff] %v5998_v58  ;;  %7533 = vst [vmem:[#allocation41_spill] sm:$0xff] %v6000_v2  ;;  %v890_v45 = vmul.f32 %v7535_v50, %v5792_v26  ;;  %v7538_v51 = vld [vmem:[#allocation69_spill] sm:$0xff]  ;;  %2857 = vperm.xlu0 %3819, %v5434_v28   ;;  %v6016_v21 = vmul.f32 %v7541_v34, %v5991_v29  ;;  %v7543_v53 = vld [vmem:[#allocation58_spill] sm:$0xff] }
 0x88b   :  { %v167_v63 = vmul.f32 %v7538_v51, %v127_v9  ;;  %v7539_v56 = vld [vmem:[#allocation45_spill] sm:$0xff]  ;;  %v834_v50 = vmul.f32 %v7543_v53, %v5840_v13  ;;  %v7544_v42 = vld [vmem:[#allocation76_spill] sm:$0xff]  ;;  %v7545_v0 = vld [vmem:[#allocation47_spill] sm:$0xff]  ;;  %v3353_v29 = vsel %vm3328_vm5, %v3352_v6, %v3351_v36  ;;  %v173_v28 = vadd.f32 %v165_v16, %v5879_v10 }
 0x88c   :  { %v6012_v30 = vmul.f32 %v7539_v56, %v5989_v46  ;;  %7542 = vst [vmem:[#allocation57_spill] sm:$0xff] %v6016_v21  ;;  %v970_v25 = vmul.f32 %v7544_v42, %v5852_v27  ;;  %v6024_v20 = vmul.f32 %v7545_v0, %v5993_v4  ;;  %v7547_v51 = vld [vmem:[#allocation49_spill] sm:$0xff]  ;;  %v168_v21 = vadd.f32 %v160_v48, %v5870_v8  ;;  %v7551_v53 = vld [vmem:[#allocation80_spill] sm:$0xff]  ;;  %v7556_v6 = vld [vmem:[#allocation63_spill] sm:$0xff] }
 0x88d   :  { %v6029_v56 = vmul.f32 %v7547_v51, %v5998_v58  ;;  %v898_v13 = vadd.f32 %v890_v45, %v834_v50  ;;  %v1050_v42 = vmul.f32 %v7551_v53, %v5867_v32  ;;  %v171_v0 = vadd.f32 %v163_v40, %v5876_v35  ;;  %v7554_v8 = vld [vmem:[#allocation72_spill] sm:$0xff]  ;;  %v7555_v50 = vld [vmem:[#allocation85_spill] sm:$0xff] }
 0x88e   :  { %7540 = vst [vmem:[#allocation38_spill] sm:$0xff] %v6012_v30  ;;  %7546 = vst [vmem:[#allocation23_spill] sm:$0xff] %v6024_v20  ;;  %v7549_v30 = vld [vmem:[#allocation50_spill] sm:$0xff]  ;;  %v175_v60 = vadd.f32 %v167_v63, %v5884_v14  ;;  %2869 = vperm.xlu0 %3819, %v5445_v57   ;;  %v6044_v51 = vsel %vm3331_vm6, %v3354_v22, %v3353_v29  ;;  %v835_v45 = vmul.f32 %v7554_v8, %v123_v19  ;;  %v7557_v40 = vld [vmem:[#allocation73_spill] sm:$0xff] }
 0x88f   :  { %7548 = vst [vmem:[#allocation53_spill] sm:$0xff] %v6029_v56  ;;  %v6033_v34 = vmul.f32 %v7549_v30, %v6000_v2  ;;  %7552 = vst [vmem:[#allocation27_spill] sm:$0xff] %v6044_v51  ;;  %v7553_v30 = vld [vmem:[#allocation71_spill] sm:$0xff]  ;;  %v978_v48 = vadd.f32 %v970_v25, %v898_v13  ;;  %v1130_v53 = vmul.f32 %v7555_v50, %v5665_v44  ;;  %v7559_v57 = vld [vmem:[#allocation68_spill] sm:$0xff]  ;;  %v6201_v51 = vpop.permute.xlu0 %2999 }
 0x890   :  { %v888_v35 = vmul.f32 %v7556_v6, %v5806_v23  ;;  %v837_v10 = vmul.f32 %v7557_v40, %v125_v43  ;;  %v7558_v63 = vld [vmem:[#allocation67_spill] sm:$0xff]  ;;  %v893_v22 = vmul.f32 %v7559_v57, %v5815_v5  ;;  %v7562_v25 = vld [vmem:[#allocation89_spill] sm:$0xff]  ;;  %v7564_v43 = vld [vmem:[#allocation60_spill] sm:$0xff]  ;;  %v6067_v6 = vadd.f32 %v5896_v55, %v168_v21  ;;  %7618 = vst [vmem:[#allocation37_spill] sm:$0xff] %v6201_v51 }
 0x891   :  { %7550 = vst [vmem:[#allocation25_spill] sm:$0xff] %v6033_v34  ;;  %v832_v34 = vmul.f32 %v7553_v30, %v120_v61  ;;  %v891_v14 = vmul.f32 %v7558_v63, %v5800_v31  ;;  %v7560_v29 = vld [vmem:[#allocation75_spill] sm:$0xff]  ;;  %v7561_v61 = vld [vmem:[#allocation70_spill] sm:$0xff]  ;;  %v1058_v16 = vadd.f32 %v1050_v42, %v978_v48  ;;  %v1210_v13 = vmul.f32 %v7562_v25, %v5729_v17  ;;  %v7563_v30 = vld [vmem:[#allocation56_spill] sm:$0xff] }
 0x892   :  { %v839_v36 = vmul.f32 %v7560_v29, %v127_v9  ;;  %v895_v19 = vmul.f32 %v7561_v61, %v5827_v3  ;;  %v833_v8 = vmul.f32 %v7563_v30, %v5842_v24  ;;  %v836_v50 = vmul.f32 %v7564_v43, %v5848_v47  ;;  %2877 = vperm.xlu0 %3819, %v5451_v39   ;;  %v7565_v3 = vld [vmem:[#allocation61_spill] sm:$0xff]  ;;  %v7566_v48 = vld [vmem:[#allocation94_spill] sm:$0xff]  ;;  %v7580_v30 = vld [vmem:[#allocation87_spill] sm:$0xff] }
 0x893   :  { %v6070_v40 = vadd.f32 %v5910_v15, %v171_v0  ;;  %v838_v9 = vmul.f32 %v7565_v3, %v5850_v41  ;;  %v1138_v42 = vadd.f32 %v1130_v53, %v1058_v16  ;;  %v1290_v63 = vmul.f32 %v7566_v48, %v5732_v49  ;;  %v7567_v41 = vld [vmem:[#allocation74_spill] sm:$0xff]  ;;  %v7568_v0 = vld [vmem:[#allocation77_spill] sm:$0xff]  ;;  %v7582_v3 = vld [vmem:[#allocation299_spill] sm:$0xff] }
 0x894   :  { %v6078_v24 = vadd.f32 %v5915_v7, %v173_v28  ;;  %v6080_v57 = vadd.f32 %v888_v35, %v832_v34  ;;  %v6082_v47 = vadd.f32 %v891_v14, %v835_v45  ;;  %v6084_v55 = vadd.f32 %v893_v22, %v837_v10  ;;  %v7569_v28 = vld [vmem:[#allocation78_spill] sm:$0xff]  ;;  %v7570_v45 = vld [vmem:[#allocation79_spill] sm:$0xff]  ;;  %v7585_v48 = vld [vmem:[#allocation24_spill] sm:$0xff] }
 0x895   :  { %v6087_v15 = vadd.f32 %v5919_v12, %v175_v60  ;;  %v6089_v39 = vadd.f32 %v895_v19, %v839_v36  ;;  %v6093_v21 = vmul.f32 %v7567_v41, %v5898_v1  ;;  %v6097_v53 = vmul.f32 %v7568_v0, %v5901_v37  ;;  %v7571_v12 = vld [vmem:[#allocation81_spill] sm:$0xff]  ;;  %v7572_v10 = vld [vmem:[#allocation82_spill] sm:$0xff]  ;;  %v7573_v22 = vld [vmem:[#allocation83_spill] sm:$0xff] }
 0x896   :  { %v1218_v7 = vadd.f32 %v1210_v13, %v1138_v42  ;;  %v6101_v34 = vmul.f32 %v7569_v28, %v5903_v18  ;;  %v6105_v35 = vmul.f32 %v7570_v45, %v5921_v52  ;;  %v6109_v60 = vmul.f32 %v7571_v12, %v5937_v33  ;;  %2885 = vperm.xlu0 %3819, %v5457_v59   ;;  %v7574_v36 = vld [vmem:[#allocation84_spill] sm:$0xff]  ;;  %v7576_v19 = vld [vmem:[#allocation86_spill] sm:$0xff]  ;;  %v7579_v13 = vld [vmem:[#allocation271_spill] sm:$0xff] }
 0x897   :  { %v6113_v14 = vmul.f32 %v7572_v10, %v5939_v11  ;;  %v6118_v29 = vmul.f32 %v7573_v22, %v5942_v54  ;;  %v6122_v61 = vmul.f32 %v7574_v36, %v5667_v38  ;;  %v6126_v16 = vmul.f32 %v7576_v19, %v5674_v62  ;;  %v7583_v59 = vld [vmem:[#allocation88_spill] sm:$0xff]  ;;  %v7586_v41 = vld [vmem:[#allocation90_spill] sm:$0xff]  ;;  %v7589_v62 = vld [vmem:[#allocation91_spill] sm:$0xff] }
 0x898   :  { %v6128_v25 = vadd.f32 %v1290_v63, %v1218_v7  ;;  %v6132_v43 = vmul.f32 %v7580_v30, %v7579_v13  ;;  %v6136_v42 = vmul.f32 %v7583_v59, %v7582_v3  ;;  %v6140_v0 = vmul.f32 %v7586_v41, %v7585_v48  ;;  %v7588_v38 = vld [vmem:[#allocation116_spill] sm:$0xff]  ;;  %v7591_v63 = vld [vmem:[#allocation305_spill] sm:$0xff]  ;;  %v7593_v10 = vld [vmem:[#allocation306_spill] sm:$0xff] }
 0x899   :  { %7575 = vst [vmem:[#allocation43_spill] sm:$0xff] %v6122_v61  ;;  %7577 = vst [vmem:[#allocation28_spill] sm:$0xff] %v6126_v16  ;;  %v1490_v28 = vmul.f32 %v7588_v38, %v5852_v27  ;;  %v6146_v45 = vmul.f32 %v7589_v62, %v5989_v46  ;;  %v7592_v7 = vld [vmem:[#allocation105_spill] sm:$0xff]  ;;  %v7594_v22 = vld [vmem:[#allocation107_spill] sm:$0xff] }
 0x89a   :  { %7578 = vst [vmem:[#allocation30_spill] sm:$0xff] %v6128_v25  ;;  %7581 = vst [vmem:[#allocation31_spill] sm:$0xff] %v6132_v43  ;;  %v249_v12 = vmul.f32 %v7592_v7, %v7591_v63  ;;  %v252_v36 = vmul.f32 %v7594_v22, %v7593_v10  ;;  %v7595_v19 = vld [vmem:[#allocation308_spill] sm:$0xff]  ;;  %v7596_v13 = vld [vmem:[#allocation109_spill] sm:$0xff] }
 0x89b   :  { %7584 = vst [vmem:[#allocation48_spill] sm:$0xff] %v6136_v42  ;;  %7587 = vst [vmem:[#allocation32_spill] sm:$0xff] %v6140_v0  ;;  %v254_v30 = vmul.f32 %v7596_v13, %v7595_v19  ;;  %v7597_v59 = vld [vmem:[#allocation108_spill] sm:$0xff]  ;;  %v7598_v43 = vld [vmem:[#allocation111_spill] sm:$0xff] }
 0x89c   :  { %7590 = vst [vmem:[#allocation59_spill] sm:$0xff] %v6146_v45  ;;  %v1434_v41 = vmul.f32 %v7597_v59, %v5792_v26  ;;  %v889_v0 = vmul.f32 %v7598_v43, %v7591_v63  ;;  %v7599_v38 = vld [vmem:[#allocation113_spill] sm:$0xff]  ;;  %v7601_v46 = vld [vmem:[#allocation268_spill] sm:$0xff]  ;;  %v7607_v43 = vld [vmem:[#allocation114_spill] sm:$0xff] }
 0x89d   :  { %v892_v42 = vmul.f32 %v7599_v38, %v7593_v10  ;;  %v7600_v62 = vld [vmem:[#allocation125_spill] sm:$0xff]  ;;  %3061 = vperm.xlu0 %3819, %v7601_v46   ;;  %v7602_v7 = vld [vmem:[#allocation52_spill] sm:$0xff]  ;;  %v894_v59 = vmul.f32 %v7607_v43, %v7595_v19  ;;  %v7608_v38 = vld [vmem:[#allocation95_spill] sm:$0xff] }
 0x89e   :  { %v1570_v45 = vmul.f32 %v7600_v62, %v5867_v32  ;;  %v7603_v48 = vld [vmem:[#allocation92_spill] sm:$0xff]  ;;  %v7605_v13 = vld [vmem:[#allocation93_spill] sm:$0xff]  ;;  %v6178_v62 = vmul.f32 %v7608_v38, %v5998_v58  ;;  %v7613_v26 = vld [vmem:[#allocation142_spill] sm:$0xff] }
 0x89f   :  { %v6165_v22 = vmul.f32 %v7603_v48, %v7602_v7  ;;  %v6169_v56 = vmul.f32 %v7605_v13, %v5993_v4  ;;  %v6174_v3 = vld [vmem:[#allocation2 + $0x17] sm:$0x1]  ;;  %v7610_v46 = vld [vmem:[#allocation96_spill] sm:$0xff]  ;;  %v1498_v48 = vadd.f32 %v1490_v28, %v1434_v41  ;;  %v257_v25 = vadd.f32 %v249_v12, %v7613_v26  ;;  %v7614_v43 = vld [vmem:[#allocation106_spill] sm:$0xff] }
 0x8a0   :  { %7609 = vst [vmem:[#allocation54_spill] sm:$0xff] %v6178_v62  ;;  %v6182_v16 = vmul.f32 %v7610_v46, %v6000_v2  ;;  %v7612_v13 = vld [vmem:[#allocation129_spill] sm:$0xff]  ;;  %v7615_v7 = vld [vmem:[#allocation143_spill] sm:$0xff]  ;;  %v7616_v38 = vld [vmem:[#allocation144_spill] sm:$0xff]  ;;  %v897_v46 = vadd.f32 %v889_v0, %v833_v8  ;;  %v900_v2 = vadd.f32 %v892_v42, %v836_v50 }
 0x8a1   :  { %7604 = vst [vmem:[#allocation34_spill] sm:$0xff] %v6165_v22  ;;  %7606 = vst [vmem:[#allocation35_spill] sm:$0xff] %v6169_v56  ;;  %v6184_v22 = vld [vmem:[#allocation5 + $0x1b] sm:$0x1]  ;;  %v1650_v4 = vmul.f32 %v7612_v13, %v5665_v44  ;;  %v6191_v56 = vmul.f32 %v7614_v43, %v7591_v63  ;;  %v260_v61 = vadd.f32 %v252_v36, %v7615_v7  ;;  %v6195_v62 = vld [vmem:[#allocation5 + $0x2b] sm:$0x1]  ;;  %3204 = vperm.xlu0 %3819, %v6174_v3  }
 0x8a2   :  { %7611 = vst [vmem:[#allocation36_spill] sm:$0xff] %v6182_v16  ;;  %v262_v58 = vadd.f32 %v254_v30, %v7616_v38  ;;  %v6197_v28 = vld [vmem:[#allocation5 + $0x3] sm:$0x1]  ;;  %v1578_v41 = vadd.f32 %v1570_v45, %v1498_v48  ;;  %v7617_v16 = vld [vmem:[#allocation134_spill] sm:$0xff]  ;;  %v902_v63 = vadd.f32 %v894_v59, %v838_v9  ;;  %v7619_v12 = vld [vmem:[#allocation117_spill] sm:$0xff] }
 0x8a3   :  { %v1730_v13 = vmul.f32 %v7617_v16, %v5729_v17  ;;  %v1432_v36 = vmul.f32 %v7619_v12, %v5806_v23  ;;  %v7620_v30 = vld [vmem:[#allocation119_spill] sm:$0xff]  ;;  %v7621_v8 = vld [vmem:[#allocation118_spill] sm:$0xff]  ;;  %v7623_v45 = vld [vmem:[#allocation120_spill] sm:$0xff] }
 0x8a4   :  { %v1435_v7 = vmul.f32 %v7620_v30, %v5800_v31  ;;  %v1491_v50 = vmul.f32 %v7621_v8, %v6184_v22  ;;  %v7622_v42 = vld [vmem:[#allocation122_spill] sm:$0xff]  ;;  %v1493_v16 = vmul.f32 %v7623_v45, %v6195_v62  ;;  %v1658_v26 = vadd.f32 %v1650_v4, %v1578_v41  ;;  %v7626_v23 = vld [vmem:[#allocation115_spill] sm:$0xff]  ;;  %v6222_v38 = vld [vmem:[#allocation5 + $0xc] sm:$0x1] }
 0x8a5   :  { %v1437_v0 = vmul.f32 %v7622_v42, %v5815_v5  ;;  %v7624_v48 = vld [vmem:[#allocation138_spill] sm:$0xff]  ;;  %v1488_v31 = vmul.f32 %v7626_v23, %v6197_v28  ;;  %7627 = vst [vmem:[#allocation39_spill] sm:$0xff] %v6222_v38  ;;  %v7628_v12 = vld [vmem:[#allocation16_spill] sm:$0xff]  ;;  %v7629_v5 = vld [vmem:[#allocation11_spill] sm:$0xff]  ;;  %v6230_v42 = vpop.permute.xlu1 %3069 }
 0x8a6   :  { %v1810_v43 = vmul.f32 %v7624_v48, %v5732_v49  ;;  %v7625_v9 = vld [vmem:[#allocation110_spill] sm:$0xff]  ;;  %v6225_v30 = vadd.f32 %v7628_v12, %v257_v25  ;;  %v6228_v8 = vadd.f32 %v7629_v5, %v260_v61  ;;  %7630 = vst [vmem:[#allocation40_spill] sm:$0xff] %v6230_v42  ;;  %v7631_v4 = vld [vmem:[#allocation112_spill] sm:$0xff]  ;;  %v6236_v45 = vld [vmem:[#allocation5 + $0x24] sm:$0x1]  ;;  %v1738_v48 = vadd.f32 %v1730_v13, %v1658_v26 }
 0x8a7   :  { %v6218_v59 = vmul.f32 %v7625_v9, %v7593_v10  ;;  %v6234_v41 = vmul.f32 %v7631_v4, %v7595_v19  ;;  %7632 = vst [vmem:[#allocation42_spill] sm:$0xff] %v6236_v45  ;;  %v6238_v10 = vld [vmem:[#allocation5 + $0x34] sm:$0x1]  ;;  %v6244_v25 = vadd.f32 %v6093_v21, %v897_v46  ;;  %v7636_v12 = vld [vmem:[#allocation302_spill] sm:$0xff]  ;;  %v6247_v61 = vadd.f32 %v1488_v31, %v1432_v36  ;;  %v6251_v51 = vld [vmem:[#allocation5 + $0xe] sm:$0x1] }
 0x8a8   :  { %v7633_v9 = vld [vmem:[#allocation21_spill] sm:$0xff]  ;;  %3194 = vperm.xlu0 %3819, %v7636_v12   ;;  %v6249_v5 = vadd.f32 %v1491_v50, %v1435_v7  ;;  %v6254_v19 = vadd.f32 %v6097_v53, %v900_v2  ;;  %v6257_v4 = vadd.f32 %v6101_v34, %v902_v63  ;;  %v6259_v13 = vadd.f32 %v1493_v16, %v1437_v0  ;;  %v6265_v46 = vld [vmem:[#allocation5 + $0x26] sm:$0x1]  ;;  %v7644_v50 = vld [vmem:[#allocation146_spill] sm:$0xff]  ;;  %v6273_v2 = vpop.permute.xlu0 %3009 }
 0x8a9   :  { %v6241_v23 = vadd.f32 %v7633_v9, %v262_v58  ;;  %7635 = vst [vmem:[#allocation62_spill] sm:$0xff] %v6244_v25  ;;  %7637 = vst [vmem:[#allocation65_spill] sm:$0xff] %v6247_v61  ;;  %v7642_v58 = vld [vmem:[#allocation124_spill] sm:$0xff]  ;;  %v6267_v36 = vld [vmem:[#allocation5 + $0x36] sm:$0x1]  ;;  %v6269_v7 = vadd.f32 %v1810_v43, %v1738_v48  ;;  %v336_v26 = vmul.f32 %v7644_v50, %v6197_v28  ;;  %v6289_v12 = vpop.permute.xlu1 %3148 }
 0x8aa   :  { %7638 = vst [vmem:[#allocation64_spill] sm:$0xff] %v6249_v5  ;;  %7639 = vst [vmem:[#allocation66_spill] sm:$0xff] %v6254_v19  ;;  %v6263_v21 = vmul.f32 %v7642_v58, %v6222_v38  ;;  %v7646_v53 = vld [vmem:[#allocation126_spill] sm:$0xff]  ;;  %v7647_v63 = vld [vmem:[#allocation127_spill] sm:$0xff] }
 0x8ab   :  { %7634 = vst [vmem:[#allocation44_spill] sm:$0xff] %v6241_v23  ;;  %7640 = vst [vmem:[#allocation69_spill] sm:$0xff] %v6257_v4  ;;  %v6277_v34 = vmul.f32 %v7646_v53, %v6236_v45  ;;  %v6281_v0 = vmul.f32 %v7647_v63, %v6238_v10  ;;  %v7648_v16 = vld [vmem:[#allocation269_spill] sm:$0xff]  ;;  %v7649_v31 = vld [vmem:[#allocation128_spill] sm:$0xff] }
 0x8ac   :  { %7641 = vst [vmem:[#allocation45_spill] sm:$0xff] %v6259_v13  ;;  %7643 = vst [vmem:[#allocation46_spill] sm:$0xff] %v6269_v7  ;;  %v6285_v9 = vmul.f32 %v7649_v31, %v7648_v16  ;;  %v7651_v43 = vld [vmem:[#allocation148_spill] sm:$0xff]  ;;  %v303_v58 = vld [vmem:[#allocation5 + $0x3b] sm:$0x1]  ;;  %3268 = vperm.xlu0 %3819, %v6174_v3  }
 0x8ad   :  { %7645 = vst [vmem:[#allocation58_spill] sm:$0xff] %v6273_v2  ;;  %v339_v48 = vmul.f32 %v7651_v43, %v6184_v22  ;;  %7652 = vst [vmem:[#allocation47_spill] sm:$0xff] %v6289_v12  ;;  %v7653_v50 = vld [vmem:[#allocation270_spill] sm:$0xff]  ;;  %v7656_v53 = vld [vmem:[#allocation272_spill] sm:$0xff] }
 0x8ae   :  { %7650 = vst [vmem:[#allocation76_spill] sm:$0xff] %v6285_v9  ;;  %v7654_v2 = vld [vmem:[#allocation130_spill] sm:$0xff]  ;;  %v7657_v13 = vld [vmem:[#allocation131_spill] sm:$0xff]  ;;  %v7659_v63 = vld [vmem:[#allocation133_spill] sm:$0xff] }
 0x8af   :  { %v6293_v42 = vmul.f32 %v7654_v2, %v7653_v50  ;;  %v6297_v61 = vmul.f32 %v7657_v13, %v7656_v53  ;;  %v6301_v5 = vmul.f32 %v7659_v63, %v6251_v51  ;;  %v6303_v31 = vld [vmem:[#allocation5 + $0x1f] sm:$0x1]  ;;  %v6305_v9 = vld [vmem:[#allocation5 + $0x2f] sm:$0x1]  ;;  %v7664_v2 = vld [vmem:[#allocation135_spill] sm:$0xff] }
 0x8b0   :  { %7661 = vst [vmem:[#allocation71_spill] sm:$0xff] %v6303_v31  ;;  %7662 = vst [vmem:[#allocation72_spill] sm:$0xff] %v6305_v9  ;;  %v7663_v43 = vld [vmem:[#allocation150_spill] sm:$0xff]  ;;  %v7666_v13 = vld [vmem:[#allocation136_spill] sm:$0xff] }
 0x8b1   :  { %7655 = vst [vmem:[#allocation49_spill] sm:$0xff] %v6293_v42  ;;  %7658 = vst [vmem:[#allocation50_spill] sm:$0xff] %v6297_v61  ;;  %v341_v12 = vmul.f32 %v7663_v43, %v6195_v62  ;;  %v6312_v42 = vmul.f32 %v7664_v2, %v6265_v46  ;;  %v6316_v61 = vmul.f32 %v7666_v13, %v6267_v36  ;;  %v7668_v4 = vld [vmem:[#allocation298_spill] sm:$0xff]  ;;  %v7669_v63 = vld [vmem:[#allocation137_spill] sm:$0xff] }
 0x8b2   :  { %7660 = vst [vmem:[#allocation80_spill] sm:$0xff] %v6301_v5  ;;  %v6320_v5 = vmul.f32 %v7669_v63, %v7668_v4  ;;  %v7671_v20 = vld [vmem:[#allocation152_spill] sm:$0xff]  ;;  %v344_v43 = vadd.f32 %v336_v26, %v6067_v6  ;;  %v7672_v3 = vld [vmem:[#allocation154_spill] sm:$0xff]  ;;  %v7673_v2 = vld [vmem:[#allocation155_spill] sm:$0xff] }
 0x8b3   :  { %7665 = vst [vmem:[#allocation85_spill] sm:$0xff] %v6312_v42  ;;  %7667 = vst [vmem:[#allocation63_spill] sm:$0xff] %v6316_v61  ;;  %v343_v19 = vmul.f32 %v7671_v20, %v303_v58  ;;  %v968_v23 = vmul.f32 %v7672_v3, %v6197_v28  ;;  %v971_v42 = vmul.f32 %v7673_v2, %v6184_v22  ;;  %v7674_v54 = vld [vmem:[#allocation139_spill] sm:$0xff]  ;;  %v7676_v61 = vld [vmem:[#allocation140_spill] sm:$0xff] }
 0x8b4   :  { %7670 = vst [vmem:[#allocation73_spill] sm:$0xff] %v6320_v5  ;;  %v6331_v13 = vmul.f32 %v7674_v54, %v6303_v31  ;;  %v6335_v63 = vmul.f32 %v7676_v61, %v6305_v9  ;;  %v347_v20 = vadd.f32 %v339_v48, %v6070_v40  ;;  %v7678_v25 = vld [vmem:[#allocation157_spill] sm:$0xff]  ;;  %v349_v3 = vadd.f32 %v341_v12, %v6078_v24  ;;  %v7681_v2 = vld [vmem:[#allocation159_spill] sm:$0xff]  ;;  %v6348_v31 = vpop.permute.xlu0 %3019  ;;  %v6358_v12 = vpop.permute.xlu1 %3199 }
 0x8b5   :  { %v973_v7 = vmul.f32 %v7678_v25, %v6195_v62  ;;  %v7679_v6 = vld [vmem:[#allocation145_spill] sm:$0xff]  ;;  %v975_v5 = vmul.f32 %v7681_v2, %v303_v58  ;;  %7683 = vst [vmem:[#allocation70_spill] sm:$0xff] %v6348_v31  ;;  %v7684_v61 = vld [vmem:[#allocation303_spill] sm:$0xff]  ;;  %v351_v25 = vadd.f32 %v343_v19, %v6087_v15  ;;  %7688 = vst [vmem:[#allocation89_spill] sm:$0xff] %v6358_v12 }
 0x8b6   :  { %7675 = vst [vmem:[#allocation67_spill] sm:$0xff] %v6331_v13  ;;  %7677 = vst [vmem:[#allocation68_spill] sm:$0xff] %v6335_v63  ;;  %v6342_v26 = vmul.f32 %v7679_v6, %v6197_v28  ;;  %v7682_v54 = vld [vmem:[#allocation161_spill] sm:$0xff]  ;;  %3214 = vperm.xlu0 %3819, %v7684_v61   ;;  %v7685_v40 = vld [vmem:[#allocation147_spill] sm:$0xff]  ;;  %v976_v31 = vadd.f32 %v968_v23, %v6080_v57  ;;  %v979_v61 = vadd.f32 %v971_v42, %v6082_v47 }
 0x8b7   :  { %v1489_v13 = vmul.f32 %v7682_v54, %v5898_v1  ;;  %v1954_v48 = vmul.f32 %v7685_v40, %v5852_v27  ;;  %v7686_v63 = vld [vmem:[#allocation163_spill] sm:$0xff]  ;;  %v7687_v6 = vld [vmem:[#allocation164_spill] sm:$0xff]  ;;  %v7689_v2 = vld [vmem:[#allocation149_spill] sm:$0xff]  ;;  %v983_v57 = vadd.f32 %v975_v5, %v6089_v39 }
 0x8b8   :  { %7680 = vst [vmem:[#allocation75_spill] sm:$0xff] %v6342_v26  ;;  %v1492_v28 = vmul.f32 %v7686_v63, %v5901_v37  ;;  %v1494_v24 = vmul.f32 %v7687_v6, %v5903_v18  ;;  %v6362_v54 = vmul.f32 %v7689_v2, %v6184_v22  ;;  %v7690_v26 = vld [vmem:[#allocation22_spill] sm:$0xff]  ;;  %v7691_v15 = vld [vmem:[#allocation151_spill] sm:$0xff]  ;;  %v981_v63 = vadd.f32 %v973_v7, %v6084_v55  ;;  %v7694_v22 = vld [vmem:[#allocation153_spill] sm:$0xff] }
 0x8b9   :  { %v6367_v27 = vadd.f32 %v7690_v26, %v344_v43  ;;  %v6371_v19 = vmul.f32 %v7691_v15, %v6195_v62  ;;  %v7692_v40 = vld [vmem:[#allocation158_spill] sm:$0xff]  ;;  %v6380_v2 = vmul.f32 %v7694_v22, %v303_v58  ;;  %v1497_v47 = vadd.f32 %v1489_v13, %v6191_v56  ;;  %v7696_v42 = vld [vmem:[#allocation17_spill] sm:$0xff]  ;;  %v7700_v58 = vld [vmem:[#allocation156_spill] sm:$0xff] }
 0x8ba   :  { %v2010_v6 = vmul.f32 %v7692_v40, %v5867_v32  ;;  %v7693_v12 = vld [vmem:[#allocation26_spill] sm:$0xff]  ;;  %v6385_v23 = vadd.f32 %v7696_v42, %v349_v3  ;;  %v7697_v62 = vld [vmem:[#allocation301_spill] sm:$0xff]  ;;  %v1500_v55 = vadd.f32 %v1492_v28, %v6218_v59  ;;  %v1502_v7 = vadd.f32 %v1494_v24, %v6234_v41  ;;  %v6405_v59 = vpop.permute.xlu0 %3029  ;;  %v6414_v40 = vpop.permute.xlu1 %3153 }
 0x8bb   :  { %v6377_v9 = vadd.f32 %v7693_v12, %v347_v20  ;;  %7695 = vst [vmem:[#allocation56_spill] sm:$0xff] %v6380_v2  ;;  %3273 = vperm.xlu0 %3819, %v7697_v62   ;;  %v7698_v43 = vld [vmem:[#allocation165_spill] sm:$0xff]  ;;  %v7699_v26 = vld [vmem:[#allocation18_spill] sm:$0xff]  ;;  %v2009_v39 = vmul.f32 %v7700_v58, %v6222_v38  ;;  %v6400_v13 = vadd.f32 %v6105_v35, %v976_v31  ;;  %7702 = vst [vmem:[#allocation60_spill] sm:$0xff] %v6405_v59 }
 0x8bc   :  { %v1953_v20 = vmul.f32 %v7698_v43, %v5898_v1  ;;  %v6393_v12 = vadd.f32 %v7699_v26, %v351_v25  ;;  %v7701_v56 = vld [vmem:[#allocation166_spill] sm:$0xff]  ;;  %v6403_v3 = vadd.f32 %v6109_v60, %v979_v61  ;;  %v2018_v41 = vadd.f32 %v2010_v6, %v1954_v48  ;;  %v7703_v1 = vld [vmem:[#allocation167_spill] sm:$0xff]  ;;  %v7704_v25 = vld [vmem:[#allocation169_spill] sm:$0xff] }
 0x8bd   :  { %v1956_v5 = vmul.f32 %v7701_v56, %v5901_v37  ;;  %v1958_v28 = vmul.f32 %v7703_v1, %v5903_v18  ;;  %v2090_v24 = vmul.f32 %v7704_v25, %v5665_v44  ;;  %v6412_v15 = vadd.f32 %v6113_v14, %v981_v63  ;;  %v7705_v37 = vld [vmem:[#allocation160_spill] sm:$0xff]  ;;  %v7706_v60 = vld [vmem:[#allocation162_spill] sm:$0xff]  ;;  %v7708_v14 = vld [vmem:[#allocation191_spill] sm:$0xff] }
 0x8be   :  { %v2012_v35 = vmul.f32 %v7705_v37, %v6236_v45  ;;  %v2014_v31 = vmul.f32 %v7706_v60, %v6238_v10  ;;  %v6421_v61 = vadd.f32 %v6118_v29, %v983_v57  ;;  %v6424_v48 = vadd.f32 %v6263_v21, %v1497_v47  ;;  %v7707_v18 = vld [vmem:[#allocation304_spill] sm:$0xff]  ;;  %v7711_v21 = vld [vmem:[#allocation174_spill] sm:$0xff]  ;;  %v7712_v62 = vld [vmem:[#allocation227_spill] sm:$0xff] }
 0x8bf   :  { %3219 = vperm.xlu0 %3819, %v7707_v18   ;;  %v6427_v44 = vadd.f32 %v2009_v39, %v1953_v20  ;;  %v425_v63 = vmul.f32 %v7708_v14, %v6222_v38  ;;  %v6432_v6 = vadd.f32 %v6277_v34, %v1500_v55  ;;  %v6435_v22 = vadd.f32 %v6281_v0, %v1502_v7  ;;  %v7710_v29 = vld [vmem:[#allocation168_spill] sm:$0xff]  ;;  %v6447_v20 = vpop.permute.xlu0 %3143  ;;  %v7714_v0 = vld [vmem:[#allocation226_spill] sm:$0xff]  ;;  %v7719_v25 = vld [vmem:[#allocation273_spill] sm:$0xff] }
 0x8c0   :  { %v6437_v42 = vadd.f32 %v2012_v35, %v1956_v5  ;;  %v6441_v57 = vmul.f32 %v7710_v29, %v7648_v16  ;;  %v2170_v47 = vmul.f32 %v7711_v21, %v5729_v17  ;;  %v2698_v43 = vmul.f32 %v7712_v62, %v5867_v32  ;;  %v7715_v7 = vld [vmem:[#allocation228_spill] sm:$0xff]  ;;  %v7716_v39 = vld [vmem:[#allocation170_spill] sm:$0xff]  ;;  %v7717_v5 = vld [vmem:[#allocation171_spill] sm:$0xff]  ;;  %v6479_v62 = vpop.permute.xlu1 %3263 }
 0x8c1   :  { %v6449_v26 = vadd.f32 %v2014_v31, %v1958_v28  ;;  %v2098_v34 = vadd.f32 %v2090_v24, %v2018_v41  ;;  %v2697_v55 = vmul.f32 %v7714_v0, %v6222_v38  ;;  %v2699_v58 = vmul.f32 %v7715_v7, %v5937_v33  ;;  %v7720_v37 = vld [vmem:[#allocation172_spill] sm:$0xff]  ;;  %v7722_v41 = vld [vmem:[#allocation178_spill] sm:$0xff]  ;;  %v7723_v24 = vld [vmem:[#allocation307_spill] sm:$0xff]  ;;  %7728 = vst [vmem:[#allocation79_spill] sm:$0xff] %v6479_v62 }
 0x8c2   :  { %7709 = vst [vmem:[#allocation61_spill] sm:$0xff] %v6437_v42  ;;  %v6457_v56 = vmul.f32 %v7716_v39, %v7653_v50  ;;  %v6461_v1 = vmul.f32 %v7717_v5, %v7656_v53  ;;  %v6465_v35 = vmul.f32 %v7720_v37, %v7719_v25  ;;  %v2250_v28 = vmul.f32 %v7722_v41, %v5732_v49  ;;  %v7724_v60 = vld [vmem:[#allocation173_spill] sm:$0xff]  ;;  %v7729_v7 = vld [vmem:[#allocation175_spill] sm:$0xff] }
 0x8c3   :  { %7713 = vst [vmem:[#allocation94_spill] sm:$0xff] %v6449_v26  ;;  %3229 = vperm.xlu0 %3819, %v7723_v24   ;;  %v6472_v31 = vmul.f32 %v7724_v60, %v6251_v51  ;;  %v433_v50 = vadd.f32 %v425_v63, %v6225_v30  ;;  %v7726_v18 = vld [vmem:[#allocation193_spill] sm:$0xff]  ;;  %v2178_v0 = vadd.f32 %v2170_v47, %v2098_v34  ;;  %v3540_v39 = vrot.slane %v2698_v43, 6  ;;  %v6487_v37 = vpop.permute.xlu0 %3138  ;;  %v7732_v30 = vld [vmem:[#allocation176_spill] sm:$0xff]  ;;  %v7734_v60 = vld [vmem:[#allocation230_spill] sm:$0xff] }
 0x8c4   :  { %7718 = vst [vmem:[#allocation74_spill] sm:$0xff] %v6461_v1  ;;  %7721 = vst [vmem:[#allocation77_spill] sm:$0xff] %v6465_v35  ;;  %v428_v14 = vmul.f32 %v7726_v18, %v6236_v45  ;;  %v7727_v29 = vld [vmem:[#allocation225_spill] sm:$0xff]  ;;  %v6483_v49 = vmul.f32 %v7729_v7, %v6265_v46  ;;  %v6491_v63 = vmul.f32 %v7732_v30, %v6267_v36  ;;  %v3538_v41 = vrot.slane %v2697_v55, 7  ;;  %v3859_v62 = vld [vmem:[#allocation2 + $0x26] sm:$0x1] }
 0x8c5   :  { %7725 = vst [vmem:[#allocation78_spill] sm:$0xff] %v6472_v31  ;;  %v2696_v21 = vmul.f32 %v7727_v29, %v5921_v52  ;;  %v7731_v5 = vld [vmem:[#allocation229_spill] sm:$0xff]  ;;  %v3542_v24 = vrot.slane %v2699_v58, 5  ;;  %v2701_v18 = vmul.f32 %v7734_v60, %v5939_v11  ;;  %v6499_v29 = vadd.f32 %v2250_v28, %v2178_v0  ;;  %v7740_v58 = vld [vmem:[#allocation195_spill] sm:$0xff]  ;;  %v7754_v1 = vld [vmem:[#allocation44_spill] sm:$0xff] }
 0x8c6   :  { %7730 = vst [vmem:[#allocation81_spill] sm:$0xff] %v6483_v49  ;;  %v2700_v25 = vmul.f32 %v7731_v5, %v6236_v45  ;;  %7733 = vst [vmem:[#allocation82_spill] sm:$0xff] %v6491_v63  ;;  %v7735_v47 = vld [vmem:[#allocation177_spill] sm:$0xff]  ;;  %v7739_v5 = vld [vmem:[#allocation274_spill] sm:$0xff]  ;;  %v436_v55 = vadd.f32 %v428_v14, %v6228_v8  ;;  %v430_v30 = vmul.f32 %v7740_v58, %v6238_v10 }
 0x8c7   :  { %v6497_v34 = vmul.f32 %v7735_v47, %v7668_v4  ;;  %7737 = vst [vmem:[#allocation84_spill] sm:$0xff] %v6499_v29  ;;  %v7738_v43 = vld [vmem:[#allocation233_spill] sm:$0xff]  ;;  %v601_v59 = vmul.f32 %v7739_v5, %v6251_v51  ;;  %3073 = vperm.xlu0 %3819, %v3859_v62   ;;  %v3539_v60 = vsel %vm3313_vm0, %v3538_v41, %v2696_v21  ;;  %v7741_v63 = vld [vmem:[#allocation19_spill] sm:$0xff]  ;;  %v6515_v49 = vpop.permute.xlu0 %3173  ;;  %v3546_v58 = vrot.slane %v2701_v18, 3  ;;  %v7746_v41 = vld [vmem:[#allocation232_spill] sm:$0xff] }
 0x8c8   :  { %v512_v7 = vmul.f32 %v7738_v43, %v7648_v16  ;;  %v521_v47 = vadd.f32 %v7741_v63, %v433_v50  ;;  %v7742_v28 = vld [vmem:[#allocation197_spill] sm:$0xff]  ;;  %v3544_v16 = vrot.slane %v2700_v25, 4  ;;  %v7743_v43 = vld [vmem:[#allocation231_spill] sm:$0xff]  ;;  %v6522_v63 = vpop.permute.xlu1 %3158  ;;  %v6526_v25 = vld [vmem:[#allocation5 + $0x1d] sm:$0x1] }
 0x8c9   :  { %7736 = vst [vmem:[#allocation83_spill] sm:$0xff] %v6497_v34  ;;  %v1049_v0 = vmul.f32 %v7742_v28, %v6222_v38  ;;  %v3541_v34 = vsel %vm3316_vm1, %v3540_v39, %v3539_v60  ;;  %v2702_v5 = vmul.f32 %v7743_v43, %v6238_v10  ;;  %v7744_v8 = vld [vmem:[#allocation199_spill] sm:$0xff]  ;;  %v7747_v60 = vld [vmem:[#allocation234_spill] sm:$0xff]  ;;  %v3861_v26 = vld [vmem:[#allocation2 + $0x36] sm:$0x1]  ;;  %v438_v28 = vadd.f32 %v430_v30, %v7754_v1 }
 0x8ca   :  { %v1052_v14 = vmul.f32 %v7744_v8, %v6236_v45  ;;  %v3543_v62 = vsel %vm3319_vm2, %v3542_v24, %v3541_v34  ;;  %v7745_v21 = vld [vmem:[#allocation15_spill] sm:$0xff]  ;;  %v520_v39 = vadd.f32 %v512_v7, %v6367_v27  ;;  %v515_v43 = vmul.f32 %v6526_v25, %v7747_v60  ;;  %v7751_v34 = vld [vmem:[#allocation72_spill] sm:$0xff]  ;;  %v7756_v29 = vld [vmem:[#allocation62_spill] sm:$0xff] }
 0x8cb   :  { %v2703_v50 = vmul.f32 %v7746_v41, %v7745_v21  ;;  %v609_v35 = vadd.f32 %v601_v59, %v521_v47  ;;  %3081 = vperm.xlu0 %3819, %v3861_v26   ;;  %v7748_v8 = vld [vmem:[#allocation71_spill] sm:$0xff]  ;;  %v7752_v41 = vld [vmem:[#allocation180_spill] sm:$0xff]  ;;  %v1057_v38 = vadd.f32 %v1049_v0, %v7756_v29  ;;  %v3545_v60 = vsel %vm3322_vm3, %v3544_v16, %v3543_v62  ;;  %v7757_v47 = vld [vmem:[#allocation29_spill] sm:$0xff]  ;;  %v658_v2 = vpop.permute.xlu0 %657 }
 0x8cc   :  { %v7749_v24 = vld [vmem:[#allocation179_spill] sm:$0xff]  ;;  %v6536_v45 = vmul.f32 %v7752_v41, %v7751_v34  ;;  %v7755_v27 = vld [vmem:[#allocation236_spill] sm:$0xff]  ;;  %v3548_v59 = vrot.slane %v2702_v5, 2  ;;  %v524_v26 = vadd.f32 %v7757_v47, %v436_v55  ;;  %v7758_v31 = vld [vmem:[#allocation66_spill] sm:$0xff]  ;;  %v6548_v1 = vpop.permute.xlu1 %3209  ;;  %v688_v5 = vmul.f32 %v658_v2, %v7668_v4 }
 0x8cd   :  { %v6532_v18 = vmul.f32 %v7749_v24, %v7748_v8  ;;  %v517_v7 = vmul.f32 %v7755_v27, %v7656_v53  ;;  %v1060_v42 = vadd.f32 %v1052_v14, %v7758_v31  ;;  %v3547_v24 = vsel %vm3325_vm4, %v3546_v58, %v3545_v60  ;;  %v7759_v41 = vld [vmem:[#allocation275_spill] sm:$0xff]  ;;  %7760 = vst [vmem:[#allocation87_spill] sm:$0xff] %v6548_v1  ;;  %v7762_v0 = vld [vmem:[#allocation12_spill] sm:$0xff]  ;;  %v6559_v58 = vld [vmem:[#allocation5 + $0x3d] sm:$0x1] }
 0x8ce   :  { %7753 = vst [vmem:[#allocation271_spill] sm:$0xff] %v6536_v45  ;;  %v604_v45 = vmul.f32 %v7759_v41, %v6265_v46  ;;  %v523_v53 = vadd.f32 %v515_v43, %v6377_v9  ;;  %v7761_v30 = vld [vmem:[#allocation23_spill] sm:$0xff]  ;;  %v608_v16 = vadd.f32 %v7762_v0, %v520_v39  ;;  %v7764_v31 = vld [vmem:[#allocation200_spill] sm:$0xff]  ;;  %v3549_v41 = vsel %vm3328_vm5, %v3548_v59, %v3547_v24 }
 0x8cf   :  { %7750 = vst [vmem:[#allocation86_spill] sm:$0xff] %v6532_v18  ;;  %v3550_v18 = vrot.slane %v2703_v50, 1  ;;  %v697_v29 = vadd.f32 %v7761_v30, %v609_v35  ;;  %v7763_v55 = vld [vmem:[#allocation27_spill] sm:$0xff]  ;;  %v1054_v14 = vmul.f32 %v7764_v31, %v6238_v10  ;;  %v525_v62 = vadd.f32 %v517_v7, %v6385_v23  ;;  %v7765_v50 = vld [vmem:[#allocation238_spill] sm:$0xff]  ;;  %v7767_v39 = vld [vmem:[#allocation240_spill] sm:$0xff]  ;;  %v670_v31 = vpop.permute.xlu0 %669 }
 0x8d0   :  { %3356 = vrot.lane.b32.xlu0 %v7763_v55, %s3994_s12  ;;  %v519_v27 = vmul.f32 %v6559_v58, %v7765_v50  ;;  %v7766_v9 = vld [vmem:[#allocation51_spill] sm:$0xff]  ;;  %v696_v47 = vadd.f32 %v688_v5, %v608_v16  ;;  %v612_v30 = vadd.f32 %v604_v45, %v524_v26  ;;  %v7769_v23 = vld [vmem:[#allocation277_spill] sm:$0xff]  ;;  %v7770_v0 = vld [vmem:[#allocation28_spill] sm:$0xff] }
 0x8d1   :  { %v526_v43 = vadd.f32 %v7766_v9, %v438_v28  ;;  %v6564_v35 = vld [vmem:[#allocation5 + $0x5] sm:$0x1]  ;;  %v606_v7 = vmul.f32 %v7769_v23, %v6267_v36  ;;  %v6573_v55 = vadd.f32 %v7770_v0, %v1060_v42  ;;  %v3551_v28 = vsel %vm3331_vm6, %v3550_v18, %v3549_v41  ;;  %v7772_v45 = vld [vmem:[#allocation69_spill] sm:$0xff]  ;;  %v7773_v26 = vld [vmem:[#allocation204_spill] sm:$0xff]  ;;  %v3164_v18 = vpop.permute.xlu1 %3163 }
 0x8d2   :  { %v1128_v4 = vmul.f32 %v6564_v35, %v7767_v39  ;;  %v7768_v2 = vld [vmem:[#allocation43_spill] sm:$0xff]  ;;  %v3312_v50 = vrot.slane %v697_v29, 7  ;;  %v3177_v9 = vmul.f32 %v6447_v20, %v6251_v51  ;;  %v7771_v39 = vld [vmem:[#allocation13_spill] sm:$0xff]  ;;  %v6582_v59 = vadd.f32 %v1054_v14, %v7772_v45  ;;  %v7774_v29 = vld [vmem:[#allocation38_spill] sm:$0xff] }
 0x8d3   :  { %v1137_v60 = vadd.f32 %v7768_v2, %v1057_v38  ;;  %v611_v1 = vadd.f32 %v7771_v39, %v523_v53  ;;  %v691_v38 = vmul.f32 %v670_v31, %v7748_v8  ;;  %v6586_v42 = vmul.f32 %v7773_v26, %v5937_v33  ;;  %v7775_v5 = vld [vmem:[#allocation299_spill] sm:$0xff]  ;;  %v7776_v23 = vld [vmem:[#allocation242_spill] sm:$0xff]  ;;  %v7777_v0 = vld [vmem:[#allocation53_spill] sm:$0xff] }
 0x8d4   :  { %3552 = vrot.lane.b32.xlu0 %v3551_v28, %s3994_s12  ;;  %v527_v24 = vadd.f32 %v519_v27, %v6393_v12  ;;  %v613_v16 = vadd.f32 %v7774_v29, %v525_v62  ;;  %v1136_v20 = vadd.f32 %v1128_v4, %v6400_v13  ;;  %v3176_v53 = vmul.f32 %v6487_v37, %v7775_v5  ;;  %v7778_v39 = vld [vmem:[#allocation47_spill] sm:$0xff]  ;;  %v678_v27 = vpop.permute.xlu0 %677  ;;  %v7779_v62 = vld [vmem:[#allocation278_spill] sm:$0xff]  ;;  %v7780_v26 = vld [vmem:[#allocation24_spill] sm:$0xff] }
 0x8d5   :  { %v3314_v2 = vsel %vm3313_vm0, %v3312_v50, %v696_v47  ;;  %v699_v41 = vadd.f32 %v691_v38, %v611_v1  ;;  %v1131_v14 = vmul.f32 %v6526_v25, %v7776_v23  ;;  %v700_v31 = vadd.f32 %v7777_v0, %v612_v30  ;;  %v7781_v50 = vld [vmem:[#allocation33_spill] sm:$0xff]  ;;  %v7785_v5 = vld [vmem:[#allocation55_spill] sm:$0xff]  ;;  %v6615_v0 = vld [vmem:[#allocation5 + $0x3f] sm:$0x1] }
 0x8d6   :  { %v614_v28 = vadd.f32 %v606_v7, %v526_v43  ;;  %v3178_v12 = vmul.f32 %v7778_v39, %v5729_v17  ;;  %v1209_v45 = vmul.f32 %v7779_v62, %v6251_v51  ;;  %v3636_v13 = vrot.slane %v3177_v9, 7  ;;  %v6609_v7 = vpop.permute.xlu1 %3258  ;;  %v7784_v17 = vld [vmem:[#allocation57_spill] sm:$0xff]  ;;  %7786 = vst [vmem:[#allocation90_spill] sm:$0xff] %v6615_v0 }
 0x8d7   :  { %v3318_v4 = vrot.slane %v699_v41, 5  ;;  %v693_v37 = vmul.f32 %v678_v27, %v7751_v34  ;;  %v3179_v1 = vmul.f32 %v6414_v40, %v7780_v26  ;;  %v3180_v47 = vmul.f32 %v6522_v63, %v6265_v46  ;;  %7783 = vst [vmem:[#allocation88_spill] sm:$0xff] %v6609_v7  ;;  %v7787_v39 = vld [vmem:[#allocation25_spill] sm:$0xff] }
 0x8d8   :  { %v7782_v30 = vrot.slane %v7781_v50, 6  ;;  %v615_v38 = vadd.f32 %v7784_v17, %v527_v24  ;;  %v3637_v29 = vsel %vm3313_vm0, %v3636_v13, %v3176_v53  ;;  %v3181_v41 = vmul.f32 %v3164_v18, %v7785_v5  ;;  %v686_v62 = vpop.permute.xlu0 %685  ;;  %v7788_v50 = vld [vmem:[#allocation48_spill] sm:$0xff] }
 0x8d9   :  { %v701_v23 = vadd.f32 %v693_v37, %v613_v16  ;;  %v3321_v40 = vrot.slane %v700_v31, 4  ;;  %v702_v63 = vadd.f32 %v7787_v39, %v614_v28  ;;  %v3638_v27 = vrot.slane %v3178_v12, 6  ;;  %v7789_v37 = vld [vmem:[#allocation52_spill] sm:$0xff] }
 0x8da   :  { %v3317_v43 = vsel %vm3316_vm1, %v7782_v30, %v3314_v2  ;;  %v1216_v2 = vadd.f32 %v7788_v50, %v1136_v20  ;;  %v1139_v30 = vadd.f32 %v1131_v14, %v6403_v3  ;;  %v1217_v7 = vadd.f32 %v1209_v45, %v1137_v60  ;;  %v3169_v20 = vpop.permute.xlu1 %3168  ;;  %v6626_v17 = vld [vmem:[#allocation5 + $0x2d] sm:$0x1]  ;;  %v7791_v45 = vld [vmem:[#allocation279_spill] sm:$0xff] }
 0x8db   :  { %v3320_v9 = vsel %vm3319_vm2, %v3318_v4, %v3317_v43  ;;  %v3324_v24 = vrot.slane %v701_v23, 3  ;;  %v695_v53 = vmul.f32 %v686_v62, %v6615_v0  ;;  %v3640_v13 = vrot.slane %v3179_v1, 5  ;;  %v7790_v3 = vld [vmem:[#allocation244_spill] sm:$0xff] }
 0x8dc   :  { %v3639_v4 = vsel %vm3316_vm1, %v3638_v27, %v3637_v29  ;;  %v3642_v18 = vrot.slane %v3180_v47, 4  ;;  %v3323_v16 = vsel %vm3322_vm3, %v3321_v40, %v3320_v9  ;;  %v3183_v31 = vmul.f32 %v6515_v49, %v7789_v37  ;;  %v1258_v29 = vpop.permute.xlu0 %1257  ;;  %v7792_v9 = vld [vmem:[#allocation35_spill] sm:$0xff]  ;;  %v7793_v62 = vld [vmem:[#allocation32_spill] sm:$0xff] }
 0x8dd   :  { %v3644_v28 = vrot.slane %v3181_v41, 3  ;;  %v3326_v12 = vsel %vm3325_vm4, %v3324_v24, %v3323_v16  ;;  %v703_v43 = vadd.f32 %v695_v53, %v615_v38  ;;  %v1133_v60 = vmul.f32 %v6626_v17, %v7790_v3  ;;  %v6635_v40 = vld [vmem:[#allocation5 + $0x7] sm:$0x1] }
 0x8de   :  { %v3327_v14 = vrot.slane %v702_v63, 2  ;;  %v1212_v1 = vmul.f32 %v7791_v45, %v6265_v46  ;;  %v3182_v47 = vmul.f32 %v3169_v20, %v6267_v36  ;;  %v1297_v23 = vadd.f32 %v7792_v9, %v1217_v7  ;;  %v7796_v20 = vld [vmem:[#allocation280_spill] sm:$0xff]  ;;  %v7800_v9 = vld [vmem:[#allocation31_spill] sm:$0xff] }
 0x8df   :  { %v3641_v49 = vsel %vm3319_vm2, %v3640_v13, %v3639_v4  ;;  %v3330_v41 = vrot.slane %v703_v43, 1  ;;  %v1288_v38 = vmul.f32 %v6635_v40, %v1258_v29  ;;  %v1219_v63 = vadd.f32 %v7793_v62, %v1139_v30  ;;  %v7795_v13 = vld [vmem:[#allocation246_spill] sm:$0xff]  ;;  %v6675_v62 = vld [vmem:[#allocation5 + $0xd] sm:$0x1] }
 0x8e0   :  { %v3643_v39 = vsel %vm3322_vm3, %v3642_v18, %v3641_v49  ;;  %v3646_v27 = vrot.slane %v3182_v47, 2  ;;  %v3329_v50 = vsel %vm3328_vm5, %v3327_v14, %v3326_v12  ;;  %v3648_v24 = vrot.slane %v3183_v31, 1  ;;  %v1270_v30 = vpop.permute.xlu0 %1269  ;;  %v7797_v14 = vld [vmem:[#allocation181_spill] sm:$0xff]  ;;  %v7798_v47 = vld [vmem:[#allocation190_spill] sm:$0xff] }
 0x8e1   :  { %v3645_v53 = vsel %vm3325_vm4, %v3644_v28, %v3643_v39  ;;  %v1296_v16 = vadd.f32 %v1288_v38, %v1216_v2  ;;  %v6643_v7 = vsel %vm3331_vm6, %v3330_v41, %v3329_v50  ;;  %v1135_v4 = vmul.f32 %v6559_v58, %v7795_v13  ;;  %v7803_v50 = vld [vmem:[#allocation248_spill] sm:$0xff] }
 0x8e2   :  { %7794 = vst [vmem:[#allocation116_spill] sm:$0xff] %v6643_v7  ;;  %v1220_v43 = vadd.f32 %v1212_v1, %v6573_v55  ;;  %v1214_v18 = vmul.f32 %v7796_v20, %v6267_v36  ;;  %v3647_v3 = vsel %vm3328_vm5, %v3646_v27, %v3645_v53  ;;  %v1141_v12 = vadd.f32 %v1133_v60, %v6412_v15  ;;  %v7799_v1 = vld [vmem:[#allocation202_spill] sm:$0xff]  ;;  %v7801_v15 = vld [vmem:[#allocation192_spill] sm:$0xff] }
 0x8e3   :  { %v3367_v31 = vrot.slane %v1297_v23, 7  ;;  %v1291_v28 = vmul.f32 %v1270_v30, %v7748_v8  ;;  %v3649_v2 = vsel %vm3331_vm6, %v3648_v24, %v3647_v3  ;;  %v6656_v45 = vmul.f32 %v7797_v14, %v6615_v0  ;;  %v7802_v23 = vld [vmem:[#allocation64_spill] sm:$0xff] }
 0x8e4   :  { %v6660_v55 = vmul.f32 %v7798_v47, %v5921_v52  ;;  %v1568_v29 = vmul.f32 %v7799_v1, %v5921_v52  ;;  %v1142_v49 = vadd.f32 %v7800_v9, %v6582_v59  ;;  %3650 = vrot.lane.b32.xlu1 %v3649_v2, %s3994_s12  ;;  %v6669_v60 = vmul.f32 %v7801_v15, %v5867_v32  ;;  %v7804_v59 = vld [vmem:[#allocation54_spill] sm:$0xff]  ;;  %v1278_v20 = vpop.permute.xlu0 %1277  ;;  %v7812_v1 = vld [vmem:[#allocation49_spill] sm:$0xff] }
 0x8e5   :  { %v1579_v41 = vadd.f32 %v6586_v42, %v7802_v23  ;;  %v3368_v38 = vsel %vm3313_vm0, %v3367_v31, %v1296_v16  ;;  %v1299_v39 = vadd.f32 %v1291_v28, %v1219_v63  ;;  %v1143_v27 = vadd.f32 %v1135_v4, %v6421_v61  ;;  %v7805_v32 = vld [vmem:[#allocation194_spill] sm:$0xff]  ;;  %v7806_v42 = vld [vmem:[#allocation59_spill] sm:$0xff]  ;;  %v7807_v61 = vld [vmem:[#allocation196_spill] sm:$0xff] }
 0x8e6   :  { %v1649_v24 = vmul.f32 %v6675_v62, %v7803_v50  ;;  %v1300_v53 = vadd.f32 %v7804_v59, %v1220_v43  ;;  %v1222_v13 = vadd.f32 %v1214_v18, %v1142_v49  ;;  %v6682_v3 = vmul.f32 %v7805_v32, %v5937_v33  ;;  %v7808_v4 = vld [vmem:[#allocation65_spill] sm:$0xff]  ;;  %v7809_v28 = vld [vmem:[#allocation206_spill] sm:$0xff]  ;;  %v7813_v49 = vld [vmem:[#allocation283_spill] sm:$0xff] }
 0x8e7   :  { %v3371_v30 = vrot.slane %v1299_v39, 5  ;;  %v1221_v2 = vadd.f32 %v7806_v42, %v1141_v12  ;;  %v1293_v63 = vmul.f32 %v1278_v20, %v7751_v34  ;;  %v6688_v16 = vmul.f32 %v7807_v61, %v5939_v11  ;;  %v7810_v18 = vld [vmem:[#allocation30_spill] sm:$0xff]  ;;  %v7814_v59 = vld [vmem:[#allocation36_spill] sm:$0xff]  ;;  %v6703_v61 = vld [vmem:[#allocation5 + $0x25] sm:$0x1] }
 0x8e8   :  { %v1576_v31 = vadd.f32 %v1568_v29, %v7808_v4  ;;  %v1573_v43 = vmul.f32 %v7809_v28, %v5939_v11  ;;  %v7811_v14 = vrot.slane %v7810_v18, 6  ;;  %v1659_v9 = vadd.f32 %v7812_v1, %v1579_v41  ;;  %v7815_v20 = vld [vmem:[#allocation34_spill] sm:$0xff]  ;;  %v1286_v42 = vpop.permute.xlu0 %1285  ;;  %v6707_v41 = vld [vmem:[#allocation5 + $0x6] sm:$0x1]  ;;  %v7817_v28 = vld [vmem:[#allocation281_spill] sm:$0xff] }
 0x8e9   :  { %v1731_v12 = vmul.f32 %v7813_v49, %v7780_v26  ;;  %v1301_v23 = vadd.f32 %v1293_v63, %v1221_v2  ;;  %v1657_v39 = vadd.f32 %v1649_v24, %v6424_v48  ;;  %v3373_v50 = vrot.slane %v1300_v53, 4  ;;  %v7816_v4 = vld [vmem:[#allocation250_spill] sm:$0xff]  ;;  %v7818_v48 = vld [vmem:[#allocation45_spill] sm:$0xff]  ;;  %v7820_v63 = vld [vmem:[#allocation252_spill] sm:$0xff] }
 0x8ea   :  { %v3370_v47 = vsel %vm3316_vm1, %v7811_v14, %v3368_v38  ;;  %v1302_v29 = vadd.f32 %v7814_v59, %v1222_v13  ;;  %v1223_v32 = vadd.f32 %v7815_v20, %v1143_v27  ;;  %v1652_v38 = vmul.f32 %v6703_v61, %v7816_v4  ;;  %v7819_v53 = vld [vmem:[#allocation210_spill] sm:$0xff]  ;;  %v6715_v27 = vld [vmem:[#allocation5 + $0x35] sm:$0x1]  ;;  %v7821_v1 = vld [vmem:[#allocation76_spill] sm:$0xff] }
 0x8eb   :  { %v3372_v15 = vsel %vm3319_vm2, %v3371_v30, %v3370_v47  ;;  %v1728_v18 = vmul.f32 %v6707_v41, %v7817_v28  ;;  %v3375_v30 = vrot.slane %v1301_v23, 3  ;;  %v1295_v2 = vmul.f32 %v1286_v42, %v6615_v0  ;;  %v7822_v42 = vld [vmem:[#allocation209_spill] sm:$0xff] }
 0x8ec   :  { %v1581_v24 = vadd.f32 %v1573_v43, %v7818_v48  ;;  %v2011_v13 = vmul.f32 %v7819_v53, %v5937_v33  ;;  %v1654_v14 = vmul.f32 %v6715_v27, %v7820_v63  ;;  %v3374_v47 = vsel %vm3322_vm3, %v3373_v50, %v3372_v15  ;;  %v7823_v28 = vld [vmem:[#allocation285_spill] sm:$0xff]  ;;  %v7824_v48 = vld [vmem:[#allocation80_spill] sm:$0xff]  ;;  %v1782_v7 = vpop.permute.xlu0 %1781  ;;  %v7825_v50 = vld [vmem:[#allocation14_spill] sm:$0xff] }
 0x8ed   :  { %v1656_v49 = vadd.f32 %v7821_v1, %v1576_v31  ;;  %v1739_v59 = vadd.f32 %v1731_v12, %v1659_v9  ;;  %v3376_v20 = vsel %vm3325_vm4, %v3375_v30, %v3374_v47  ;;  %v1303_v23 = vadd.f32 %v1295_v2, %v1223_v32  ;;  %v7826_v32 = vld [vmem:[#allocation50_spill] sm:$0xff] }
 0x8ee   :  { %v2008_v4 = vmul.f32 %v7822_v42, %v5921_v52  ;;  %v3377_v43 = vrot.slane %v1302_v29, 2  ;;  %v1733_v33 = vmul.f32 %v7823_v28, %v7785_v5  ;;  %v1737_v53 = vadd.f32 %v7824_v48, %v1657_v39  ;;  %v7827_v29 = vld [vmem:[#allocation201_spill] sm:$0xff]  ;;  %v7828_v39 = vld [vmem:[#allocation67_spill] sm:$0xff]  ;;  %v7834_v28 = vld [vmem:[#allocation20_spill] sm:$0xff] }
 0x8ef   :  { %v1660_v63 = vadd.f32 %v1652_v38, %v6432_v6  ;;  %v1736_v0 = vadd.f32 %v1728_v18, %v1656_v49  ;;  %v3379_v15 = vrot.slane %v1303_v23, 1  ;;  %v1809_v31 = vmul.f32 %v1782_v7, %v7825_v50  ;;  %v6739_v38 = vld [vmem:[#allocation5 + $0x15] sm:$0x1]  ;;  %v7829_v7 = vld [vmem:[#allocation203_spill] sm:$0xff] }
 0x8f0   :  { %v2019_v9 = vadd.f32 %v2011_v13, %v6362_v54  ;;  %v1662_v12 = vadd.f32 %v1654_v14, %v6435_v22  ;;  %v1661_v30 = vadd.f32 %v7826_v32, %v1581_v24  ;;  %v3378_v52 = vsel %vm3328_vm5, %v3377_v43, %v3376_v20  ;;  %v7830_v18 = vld [vmem:[#allocation75_spill] sm:$0xff]  ;;  %v7831_v13 = vld [vmem:[#allocation253_spill] sm:$0xff]  ;;  %v1794_v49 = vpop.permute.xlu0 %1793 }
 0x8f1   :  { %v6735_v2 = vmul.f32 %v6675_v62, %v7827_v29  ;;  %v1819_v47 = vadd.f32 %v7828_v39, %v1739_v59  ;;  %v1817_v1 = vadd.f32 %v1809_v31, %v1737_v53  ;;  %v3380_v6 = vsel %vm3331_vm6, %v3379_v15, %v3378_v52  ;;  %v7832_v20 = vld [vmem:[#allocation73_spill] sm:$0xff]  ;;  %v7835_v53 = vld [vmem:[#allocation211_spill] sm:$0xff] }
 0x8f2   :  { %v2450_v54 = vmul.f32 %v6739_v38, %v7829_v7  ;;  %v2016_v22 = vadd.f32 %v2008_v4, %v7830_v18  ;;  %v2089_v24 = vmul.f32 %v6675_v62, %v7831_v13  ;;  %v1741_v14 = vadd.f32 %v1733_v33, %v1661_v30  ;;  %3381 = vrot.lane.b32.xlu0 %v3380_v6, %s3995_s13  ;;  %v7833_v42 = vld [vmem:[#allocation85_spill] sm:$0xff]  ;;  %v7836_v4 = vld [vmem:[#allocation212_spill] sm:$0xff]  ;;  %v7837_v33 = vld [vmem:[#allocation63_spill] sm:$0xff] }
 0x8f3   :  { %v1816_v59 = vadd.f32 %v7832_v20, %v1736_v0  ;;  %v3417_v23 = vrot.slane %v1817_v1, 7  ;;  %v1740_v43 = vadd.f32 %v7833_v42, %v1660_v63  ;;  %v1812_v48 = vmul.f32 %v1794_v49, %v7834_v28  ;;  %v7838_v29 = vld [vmem:[#allocation289_spill] sm:$0xff]  ;;  %v7839_v6 = vld [vmem:[#allocation254_spill] sm:$0xff] }
 0x8f4   :  { %v2013_v15 = vmul.f32 %v7835_v53, %v5939_v11  ;;  %v2015_v31 = vmul.f32 %v7836_v4, %v7745_v21  ;;  %v2099_v32 = vadd.f32 %v6457_v56, %v2019_v9  ;;  %v1742_v30 = vadd.f32 %v7837_v33, %v1662_v12  ;;  %v7840_v11 = vld [vmem:[#allocation68_spill] sm:$0xff]  ;;  %v7841_v13 = vld [vmem:[#allocation46_spill] sm:$0xff]  ;;  %v1802_v9 = vpop.permute.xlu0 %1801  ;;  %v7843_v12 = vld [vmem:[#allocation287_spill] sm:$0xff] }
 0x8f5   :  { %v3421_v52 = vrot.slane %v1819_v47, 5  ;;  %v2171_v39 = vmul.f32 %v7838_v29, %v7780_v26  ;;  %v3418_v0 = vsel %vm3313_vm0, %v3417_v23, %v1816_v59  ;;  %v1820_v1 = vadd.f32 %v1812_v48, %v1740_v43  ;;  %v7844_v20 = vld [vmem:[#allocation41_spill] sm:$0xff]  ;;  %v7846_v43 = vld [vmem:[#allocation255_spill] sm:$0xff] }
 0x8f6   :  { %v2097_v63 = vadd.f32 %v2089_v24, %v6427_v44  ;;  %v2092_v7 = vmul.f32 %v6703_v61, %v7839_v6  ;;  %v1821_v18 = vadd.f32 %v7840_v11, %v1741_v14  ;;  %v7842_v21 = vrot.slane %v7841_v13, 6  ;;  %v7845_v24 = vld [vmem:[#allocation205_spill] sm:$0xff] }
 0x8f7   :  { %v2168_v47 = vmul.f32 %v6707_v41, %v7843_v12  ;;  %v3423_v49 = vrot.slane %v1820_v1, 4  ;;  %v1814_v59 = vmul.f32 %v1802_v9, %v7844_v20  ;;  %v2458_v44 = vadd.f32 %v2450_v54, %v6669_v60  ;;  %v7849_v54 = vld [vmem:[#allocation290_spill] sm:$0xff] }
 0x8f8   :  { %v3420_v56 = vsel %vm3316_vm1, %v7842_v21, %v3418_v0  ;;  %v6773_v23 = vmul.f32 %v6703_v61, %v7845_v24  ;;  %v2021_v14 = vadd.f32 %v2013_v15, %v6371_v19  ;;  %v2096_v42 = vadd.f32 %v6441_v57, %v2016_v22  ;;  %v7848_v0 = vld [vmem:[#allocation61_spill] sm:$0xff]  ;;  %v2222_v11 = vpop.permute.xlu0 %2221  ;;  %v7850_v15 = vld [vmem:[#allocation78_spill] sm:$0xff]  ;;  %v7851_v21 = vld [vmem:[#allocation39_spill] sm:$0xff] }
 0x8f9   :  { %v3422_v26 = vsel %vm3319_vm2, %v3421_v52, %v3420_v56  ;;  %v2094_v48 = vmul.f32 %v6715_v27, %v7846_v43  ;;  %v2179_v53 = vadd.f32 %v2171_v39, %v2099_v32  ;;  %v1822_v33 = vadd.f32 %v1814_v59, %v1742_v30  ;;  %v7847_v52 = vld [vmem:[#allocation56_spill] sm:$0xff]  ;;  %v7852_v32 = vld [vmem:[#allocation214_spill] sm:$0xff]  ;;  %v7858_v24 = vld [vmem:[#allocation77_spill] sm:$0xff] }
 0x8fa   :  { %v3424_v4 = vsel %vm3322_vm3, %v3423_v49, %v3422_v26  ;;  %v2023_v29 = vadd.f32 %v2015_v31, %v7847_v52  ;;  %v2100_v1 = vadd.f32 %v2092_v7, %v7848_v0  ;;  %v3425_v60 = vrot.slane %v1821_v18, 3  ;;  %v7853_v56 = vld [vmem:[#allocation74_spill] sm:$0xff]  ;;  %v7854_v31 = vld [vmem:[#allocation291_spill] sm:$0xff] }
 0x8fb   :  { %v2173_v6 = vmul.f32 %v7849_v54, %v7785_v5  ;;  %v2176_v13 = vadd.f32 %v2168_v47, %v2096_v42  ;;  %v3427_v19 = vrot.slane %v1822_v33, 2  ;;  %v2177_v57 = vadd.f32 %v7850_v15, %v2097_v63  ;;  %v7855_v18 = vld [vmem:[#allocation94_spill] sm:$0xff]  ;;  %v7857_v63 = vld [vmem:[#allocation256_spill] sm:$0xff] }
 0x8fc   :  { %v2249_v22 = vmul.f32 %v2222_v11, %v7825_v50  ;;  %v2393_v39 = vmul.f32 %v7852_v32, %v7851_v21  ;;  %v2101_v30 = vadd.f32 %v7853_v56, %v2021_v14  ;;  %v2175_v9 = vmul.f32 %v7854_v31, %v7789_v37  ;;  %v7856_v5 = vld [vmem:[#allocation86_spill] sm:$0xff]  ;;  %v7859_v14 = vld [vmem:[#allocation81_spill] sm:$0xff]  ;;  %v2234_v33 = vpop.permute.xlu0 %2233  ;;  %v7860_v37 = vld [vmem:[#allocation83_spill] sm:$0xff] }
 0x8fd   :  { %v3426_v7 = vsel %vm3325_vm4, %v3425_v60, %v3424_v4  ;;  %v2102_v12 = vadd.f32 %v2094_v48, %v7855_v18  ;;  %v2259_v26 = vadd.f32 %v7856_v5, %v2179_v53  ;;  %v2448_v50 = vmul.f32 %v6564_v35, %v7857_v63  ;;  %v7861_v4 = vld [vmem:[#allocation292_spill] sm:$0xff]  ;;  %v7862_v60 = vld [vmem:[#allocation213_spill] sm:$0xff] }
 0x8fe   :  { %v2257_v47 = vadd.f32 %v2249_v22, %v2177_v57  ;;  %v6795_v49 = vsel %vm3328_vm5, %v3427_v19, %v3426_v7  ;;  %v2181_v59 = vadd.f32 %v2173_v6, %v2101_v30  ;;  %v2103_v42 = vadd.f32 %v7858_v24, %v2023_v29  ;;  %v6808_v19 = vld [vmem:[#allocation5 + $0x16] sm:$0x1]  ;;  %v7863_v6 = vld [vmem:[#allocation215_spill] sm:$0xff]  ;;  %v7864_v22 = vld [vmem:[#allocation82_spill] sm:$0xff] }
 0x8ff   :  { %v2180_v43 = vadd.f32 %v7859_v14, %v2100_v1  ;;  %v2256_v52 = vadd.f32 %v7860_v37, %v2176_v13  ;;  %v2529_v48 = vmul.f32 %v7861_v4, %v6251_v51  ;;  %v2252_v53 = vmul.f32 %v2234_v33, %v7834_v28  ;;  %v7865_v28 = vld [vmem:[#allocation257_spill] sm:$0xff]  ;;  %v7866_v30 = vld [vmem:[#allocation271_spill] sm:$0xff]  ;;  %v7870_v24 = vld [vmem:[#allocation216_spill] sm:$0xff] }
 0x900   :  { %v3465_v0 = vrot.slane %v2257_v47, 7  ;;  %v2528_v54 = vmul.f32 %v6707_v41, %v7862_v60  ;;  %v2457_v11 = vadd.f32 %v6735_v2, %v2393_v39  ;;  %v2530_v29 = vmul.f32 %v6808_v19, %v7863_v6  ;;  %v7867_v2 = vld [vmem:[#allocation84_spill] sm:$0xff]  ;;  %v2242_v18 = vpop.permute.xlu0 %2241  ;;  %v7872_v33 = vld [vmem:[#allocation221_spill] sm:$0xff]  ;;  %v7873_v4 = vld [vmem:[#allocation222_spill] sm:$0xff] }
 0x901   :  { %v2183_v1 = vadd.f32 %v2175_v9, %v2103_v42  ;;  %v3469_v15 = vrot.slane %v2259_v26, 5  ;;  %v2260_v57 = vadd.f32 %v2252_v53, %v2180_v43  ;;  %v2182_v21 = vadd.f32 %v7864_v22, %v2102_v12  ;;  %v7869_v12 = vld [vmem:[#allocation42_spill] sm:$0xff]  ;;  %v7871_v42 = vld [vmem:[#allocation217_spill] sm:$0xff]  ;;  %v6830_v43 = vld [vmem:[#allocation5 + $0xf] sm:$0x1] }
 0x902   :  { %v3466_v13 = vsel %vm3313_vm0, %v3465_v0, %v2256_v52  ;;  %v2456_v32 = vadd.f32 %v2448_v50, %v6660_v55  ;;  %v2451_v56 = vmul.f32 %v6526_v25, %v7865_v28  ;;  %v2261_v31 = vadd.f32 %v7866_v30, %v2181_v59  ;;  %v6825_v50 = vld [vmem:[#allocation5 + $0x1e] sm:$0x1]  ;;  %v6834_v52 = vld [vmem:[#allocation5 + $0x17] sm:$0x1] }
 0x903   :  { %v7868_v39 = vrot.slane %v7867_v2, 6  ;;  %v2537_v5 = vadd.f32 %v2529_v48, %v2457_v11  ;;  %v3471_v26 = vrot.slane %v2260_v57, 4  ;;  %v2254_v47 = vmul.f32 %v2242_v18, %v7844_v20  ;;  %v7874_v60 = vld [vmem:[#allocation293_spill] sm:$0xff]  ;;  %v7876_v28 = vld [vmem:[#allocation218_spill] sm:$0xff] }
 0x904   :  { %v2538_v63 = vadd.f32 %v2530_v29, %v2458_v44  ;;  %v2396_v55 = vmul.f32 %v7870_v24, %v7869_v12  ;;  %v2531_v59 = vmul.f32 %v6825_v50, %v7871_v42  ;;  %v2263_v14 = vadd.f32 %v6656_v45, %v2183_v1  ;;  %v2578_v6 = vpop.permute.xlu0 %2577  ;;  %v7875_v29 = vld [vmem:[#allocation258_spill] sm:$0xff] }
 0x905   :  { %v3468_v7 = vsel %vm3316_vm1, %v7868_v39, %v3466_v13  ;;  %v2609_v37 = vmul.f32 %v6830_v43, %v7872_v33  ;;  %v2610_v20 = vmul.f32 %v6834_v52, %v7873_v4  ;;  %v2262_v48 = vadd.f32 %v2254_v47, %v2182_v21  ;;  %v7881_v33 = vld [vmem:[#allocation223_spill] sm:$0xff] }
 0x906   :  { %v3470_v9 = vsel %vm3319_vm2, %v3469_v15, %v3468_v7  ;;  %v2459_v0 = vadd.f32 %v2451_v56, %v6682_v3  ;;  %v3473_v53 = vrot.slane %v2261_v31, 3  ;;  %v2532_v11 = vmul.f32 %v7874_v60, %v6265_v46  ;;  %v7877_v56 = vld [vmem:[#allocation207_spill] sm:$0xff]  ;;  %v7878_v7 = vld [vmem:[#allocation294_spill] sm:$0xff] }
 0x907   :  { %v3472_v44 = vsel %vm3322_vm3, %v3471_v26, %v3470_v9  ;;  %v2536_v45 = vadd.f32 %v2528_v54, %v2456_v32  ;;  %v2453_v1 = vmul.f32 %v6626_v17, %v7875_v29  ;;  %v2617_v15 = vadd.f32 %v2609_v37, %v2537_v5  ;;  %v7879_v26 = vld [vmem:[#allocation260_spill] sm:$0xff]  ;;  %v7882_v4 = vld [vmem:[#allocation219_spill] sm:$0xff] }
 0x908   :  { %v3475_v13 = vrot.slane %v2262_v48, 2  ;;  %v2608_v57 = vmul.f32 %v6635_v40, %v2578_v6  ;;  %v2460_v22 = vadd.f32 %v6773_v23, %v2396_v55  ;;  %v2398_v21 = vmul.f32 %v7876_v28, %v6238_v10  ;;  %v2590_v9 = vpop.permute.xlu0 %2589  ;;  %v7880_v55 = vld [vmem:[#allocation198_spill] sm:$0xff]  ;;  %v6878_v28 = vld [vmem:[#allocation5 + $0x37] sm:$0x1] }
 0x909   :  { %v3477_v30 = vrot.slane %v2263_v14, 1  ;;  %v3474_v3 = vsel %vm3325_vm4, %v3473_v53, %v3472_v44  ;;  %v2454_v31 = vmul.f32 %v6715_v27, %v7877_v56  ;;  %v2618_v54 = vadd.f32 %v2610_v20, %v2538_v63  ;;  %v6860_v63 = vld [vmem:[#allocation5 + $0x3c] sm:$0x1]  ;;  %v7883_v44 = vld [vmem:[#allocation295_spill] sm:$0xff]  ;;  %v7887_v56 = vld [vmem:[#allocation245_spill] sm:$0xff] }
 0x90a   :  { %v2616_v32 = vadd.f32 %v2608_v57, %v2536_v45  ;;  %v3476_v2 = vsel %vm3328_vm5, %v3475_v13, %v3474_v3  ;;  %v2540_v39 = vadd.f32 %v2532_v11, %v2460_v22  ;;  %v2534_v18 = vmul.f32 %v7878_v7, %v6267_v36  ;;  %v7884_v11 = vld [vmem:[#allocation235_spill] sm:$0xff] }
 0x90b   :  { %v2539_v5 = vadd.f32 %v2531_v59, %v2459_v0  ;;  %v3478_v23 = vsel %vm3331_vm6, %v3477_v30, %v3476_v2  ;;  %v2461_v10 = vadd.f32 %v2453_v1, %v6688_v16  ;;  %v2455_v47 = vmul.f32 %v6559_v58, %v7879_v26  ;;  %v6864_v59 = vld [vmem:[#allocation5 + $0x27] sm:$0x1]  ;;  %v6868_v16 = vld [vmem:[#allocation5 + $0x2e] sm:$0x1]  ;;  %v7886_v30 = vld [vmem:[#allocation237_spill] sm:$0xff] }
 0x90c   :  { %v3515_v12 = vrot.slane %v2617_v15, 7  ;;  %v2611_v24 = vmul.f32 %v2590_v9, %v7748_v8  ;;  %3479 = vrot.lane.b32.xlu1 %v3478_v23, %s3995_s13  ;;  %v2399_v42 = vmul.f32 %v6860_v63, %v7880_v55  ;;  %v2462_v14 = vadd.f32 %v2454_v31, %v2398_v21  ;;  %v2598_v1 = vpop.permute.xlu0 %2597  ;;  %v7885_v21 = vld [vmem:[#allocation224_spill] sm:$0xff]  ;;  %v7890_v23 = vld [vmem:[#allocation261_spill] sm:$0xff] }
 0x90d   :  { %v2612_v37 = vmul.f32 %v6864_v59, %v7881_v33  ;;  %v2533_v20 = vmul.f32 %v6868_v16, %v7882_v4  ;;  %v2809_v48 = vmul.f32 %v7883_v44, %v6251_v51  ;;  %v3517_v60 = vrot.slane %v2618_v54, 6  ;;  %v6887_v54 = vld [vmem:[#allocation5 + $0x3e] sm:$0x1]  ;;  %v7894_v44 = vld [vmem:[#allocation243_spill] sm:$0xff] }
 0x90e   :  { %v3516_v0 = vsel %vm3313_vm0, %v3515_v12, %v2616_v32  ;;  %v2619_v53 = vadd.f32 %v2611_v24, %v2539_v5  ;;  %v2753_v45 = vmul.f32 %v6675_v62, %v7884_v11  ;;  %v2542_v29 = vadd.f32 %v2534_v18, %v2462_v14  ;;  %v7888_v32 = vld [vmem:[#allocation220_spill] sm:$0xff]  ;;  %v7889_v5 = vld [vmem:[#allocation259_spill] sm:$0xff] }
 0x90f   :  { %v2620_v6 = vadd.f32 %v2612_v37, %v2540_v39  ;;  %v2463_v15 = vadd.f32 %v2455_v47, %v2399_v42  ;;  %v2541_v57 = vadd.f32 %v2533_v20, %v2461_v10  ;;  %v2613_v22 = vmul.f32 %v2598_v1, %v7751_v34  ;;  %v7891_v47 = vld [vmem:[#allocation262_spill] sm:$0xff]  ;;  %v7893_v37 = vld [vmem:[#allocation296_spill] sm:$0xff] }
 0x910   :  { %v3519_v13 = vrot.slane %v2619_v53, 5  ;;  %v2614_v51 = vmul.f32 %v6878_v28, %v7885_v21  ;;  %v2754_v3 = vmul.f32 %v6739_v38, %v7886_v30  ;;  %v2810_v31 = vmul.f32 %v6808_v19, %v7887_v56  ;;  %v2606_v19 = vpop.permute.xlu0 %2605  ;;  %v7892_v42 = vld [vmem:[#allocation90_spill] sm:$0xff]  ;;  %v3880_v11 = vld [vmem:[#allocation5 + $0x9] sm:$0x1]  ;;  %v7898_v30 = vld [vmem:[#allocation99_spill] sm:$0xff] }
 0x911   :  { %v3518_v62 = vsel %vm3316_vm1, %v3517_v60, %v3516_v0  ;;  %v2535_v2 = vmul.f32 %v6887_v54, %v7888_v32  ;;  %v2817_v39 = vadd.f32 %v2809_v48, %v2753_v45  ;;  %v2621_v18 = vadd.f32 %v2613_v22, %v2541_v57  ;;  %v7895_v45 = vld [vmem:[#allocation98_spill] sm:$0xff] }
 0x912   :  { %v3520_v7 = vsel %vm3319_vm2, %v3519_v13, %v3518_v62  ;;  %v2889_v9 = vmul.f32 %v6830_v43, %v7889_v5  ;;  %v2890_v38 = vmul.f32 %v6834_v52, %v7890_v23  ;;  %v3521_v10 = vrot.slane %v2620_v6, 4  ;;  %v7896_v6 = vld [vmem:[#allocation239_spill] sm:$0xff]  ;;  %v7901_v5 = vld [vmem:[#allocation100_spill] sm:$0xff]  ;;  %v7902_v23 = vld [vmem:[#allocation241_spill] sm:$0xff] }
 0x913   :  { %v2622_v26 = vadd.f32 %v2614_v51, %v2542_v29  ;;  %v2752_v12 = vmul.f32 %v6564_v35, %v7891_v47  ;;  %v3523_v24 = vrot.slane %v2621_v18, 3  ;;  %v2543_v55 = vadd.f32 %v2535_v2, %v2463_v15  ;;  %v3881_v51 = vld [vmem:[#allocation5 + $0x11] sm:$0x1] }
 0x914   :  { %v2615_v14 = vmul.f32 %v2606_v19, %v7892_v42  ;;  %v2818_v33 = vadd.f32 %v2810_v31, %v2754_v3  ;;  %v2812_v4 = vmul.f32 %v7893_v37, %v6265_v46  ;;  %v3522_v20 = vsel %vm3322_vm3, %v3521_v10, %v3520_v7  ;;  %v2858_v13 = vpop.permute.xlu0 %2857  ;;  %v7897_v46 = vld [vmem:[#allocation263_spill] sm:$0xff]  ;;  %v7899_v31 = vld [vmem:[#allocation297_spill] sm:$0xff] }
 0x915   :  { %v2808_v48 = vmul.f32 %v6707_v41, %v7894_v44  ;;  %v2897_v0 = vadd.f32 %v2889_v9, %v2817_v39  ;;  %v3524_v53 = vsel %vm3325_vm4, %v3523_v24, %v3522_v20  ;;  %v1377_v35 = vmul.f32 %v3880_v11, %v7895_v45  ;;  %v3883_v44 = vld [vmem:[#allocation5 + $0x1] sm:$0x1] }
 0x916   :  { %v2623_v60 = vadd.f32 %v2615_v14, %v2543_v55  ;;  %v2756_v29 = vmul.f32 %v6703_v61, %v7896_v6  ;;  %v2898_v1 = vadd.f32 %v2890_v38, %v2818_v33  ;;  %v3525_v15 = vrot.slane %v2622_v26, 2  ;;  %v7900_v61 = vld [vmem:[#allocation247_spill] sm:$0xff]  ;;  %v7903_v26 = vld [vmem:[#allocation264_spill] sm:$0xff] }
 0x917   :  { %v2816_v57 = vadd.f32 %v2808_v48, %v2752_v12  ;;  %v2755_v22 = vmul.f32 %v6526_v25, %v7897_v46  ;;  %v2888_v41 = vmul.f32 %v6635_v40, %v2858_v13  ;;  %v1378_v3 = vmul.f32 %v3881_v51, %v7898_v30  ;;  %v3882_v25 = vld [vmem:[#allocation5 + $0x19] sm:$0x1]  ;;  %v7904_v12 = vld [vmem:[#allocation265_spill] sm:$0xff]  ;;  %v3884_v6 = vld [vmem:[#allocation5 + $0x21] sm:$0x1] }
 0x918   :  { %v3527_v21 = vrot.slane %v2623_v60, 1  ;;  %v2820_v56 = vadd.f32 %v2812_v4, %v2756_v29  ;;  %v2814_v62 = vmul.f32 %v7899_v31, %v6267_v36  ;;  %v3526_v32 = vsel %vm3328_vm5, %v3525_v15, %v3524_v53  ;;  %v2870_v19 = vpop.permute.xlu0 %2869  ;;  %v7909_v46 = vld [vmem:[#allocation267_spill] sm:$0xff]  ;;  %v7910_v51 = vld [vmem:[#allocation102_spill] sm:$0xff] }
 0x919   :  { %v2811_v2 = vmul.f32 %v6825_v50, %v7900_v61  ;;  %v3563_v39 = vrot.slane %v2897_v0, 7  ;;  %v2896_v7 = vadd.f32 %v2888_v41, %v2816_v57  ;;  %v1379_v9 = vmul.f32 %v3882_v25, %v7901_v5  ;;  %v7906_v0 = vld [vmem:[#allocation249_spill] sm:$0xff]  ;;  %v3885_v41 = vld [vmem:[#allocation5 + $0x29] sm:$0x1]  ;;  %v6943_v61 = vpop.permute.xlu1 %3278 }
 0x91a   :  { %v6918_v18 = vsel %vm3331_vm6, %v3527_v21, %v3526_v32  ;;  %v2758_v38 = vmul.f32 %v6715_v27, %v7902_v23  ;;  %v3565_v10 = vrot.slane %v2898_v1, 6  ;;  %v2892_v36 = vmul.f32 %v6864_v59, %v7903_v26  ;;  %v7905_v27 = vld [vmem:[#allocation97_spill] sm:$0xff]  ;;  %v7908_v1 = vld [vmem:[#allocation266_spill] sm:$0xff] }
 0x91b   :  { %v2819_v47 = vadd.f32 %v2811_v2, %v2755_v22  ;;  %v2757_v24 = vmul.f32 %v6626_v17, %v7904_v12  ;;  %v3564_v55 = vsel %vm3313_vm0, %v3563_v39, %v2896_v7  ;;  %v2891_v14 = vmul.f32 %v2870_v19, %v7748_v8  ;;  %v7907_v17 = vld [vmem:[#allocation101_spill] sm:$0xff]  ;;  %v7913_v12 = vld [vmem:[#allocation104_spill] sm:$0xff] }
 0x91c   :  { %v2900_v33 = vadd.f32 %v2892_v36, %v2820_v56  ;;  %v2822_v37 = vadd.f32 %v2814_v62, %v2758_v38  ;;  %v3566_v4 = vsel %vm3316_vm1, %v3565_v10, %v3564_v55  ;;  %v3392_v20 = vrot.slane %v1377_v35, 7  ;;  %v2878_v13 = vpop.permute.xlu0 %2877  ;;  %v7911_v62 = vld [vmem:[#allocation251_spill] sm:$0xff]  ;;  %v3886_v26 = vld [vmem:[#allocation5 + $0x31] sm:$0x1] }
 0x91d   :  { %v1376_v48 = vmul.f32 %v3883_v44, %v7905_v27  ;;  %v2813_v53 = vmul.f32 %v6868_v16, %v7906_v0  ;;  %v2899_v60 = vadd.f32 %v2891_v14, %v2819_v47  ;;  %v3394_v11 = vrot.slane %v1378_v3, 6  ;;  %v7912_v36 = vld [vmem:[#allocation103_spill] sm:$0xff]  ;;  %v3887_v47 = vld [vmem:[#allocation5 + $0x39] sm:$0x1]  ;;  %v7914_v14 = vld [vmem:[#allocation40_spill] sm:$0xff] }
 0x91e   :  { %v3396_v45 = vrot.slane %v1379_v9, 5  ;;  %v1380_v29 = vmul.f32 %v3884_v6, %v7907_v17  ;;  %v2894_v15 = vmul.f32 %v6878_v28, %v7908_v1  ;;  %v2759_v35 = vmul.f32 %v6559_v58, %v7909_v46  ;;  %v7917_v46 = vld [vmem:[#allocation89_spill] sm:$0xff] }
 0x91f   :  { %v2821_v57 = vadd.f32 %v2813_v53, %v2757_v24  ;;  %v3567_v22 = vrot.slane %v2899_v60, 5  ;;  %v2893_v21 = vmul.f32 %v2878_v13, %v7751_v34  ;;  %v1381_v30 = vmul.f32 %v3885_v41, %v7910_v51  ;;  %v3888_v53 = vld [vmem:[#allocation5 + $0xe] sm:$0x1]  ;;  %v7916_v60 = vld [vmem:[#allocation37_spill] sm:$0xff] }
 0x920   :  { %v3569_v56 = vrot.slane %v2900_v33, 4  ;;  %v2902_v3 = vadd.f32 %v2894_v15, %v2822_v37  ;;  %v3393_v31 = vsel %vm3313_vm0, %v3392_v20, %v1376_v48  ;;  %v2815_v32 = vmul.f32 %v6887_v54, %v7911_v62  ;;  %v2886_v25 = vpop.permute.xlu0 %2885  ;;  %v7915_v37 = vld [vmem:[#allocation58_spill] sm:$0xff] }
 0x921   :  { %v3568_v2 = vsel %vm3319_vm2, %v3567_v22, %v3566_v4  ;;  %v2901_v39 = vadd.f32 %v2893_v21, %v2821_v57  ;;  %v3395_v58 = vsel %vm3316_vm1, %v3394_v11, %v3393_v31  ;;  %v3398_v7 = vrot.slane %v1380_v29, 4  ;;  %v7918_v21 = vld [vmem:[#allocation288_spill] sm:$0xff]  ;;  %v7919_v31 = vld [vmem:[#allocation87_spill] sm:$0xff] }
 0x922   :  { %v3570_v34 = vsel %vm3322_vm3, %v3569_v56, %v3568_v2  ;;  %v3397_v5 = vsel %vm3319_vm2, %v3396_v45, %v3395_v58  ;;  %v2823_v9 = vadd.f32 %v2815_v32, %v2759_v35  ;;  %v2895_v38 = vmul.f32 %v2886_v25, %v7892_v42  ;;  %v6960_v45 = vpop.permute.xlu1 %3224  ;;  %v7920_v2 = vld [vmem:[#allocation300_spill] sm:$0xff] }
 0x923   :  { %v3571_v23 = vrot.slane %v2901_v39, 3  ;;  %v3400_v10 = vrot.slane %v1381_v30, 3  ;;  %v1382_v19 = vmul.f32 %v3886_v26, %v7912_v36  ;;  %v1383_v24 = vmul.f32 %v3887_v47, %v7913_v12  ;;  %v7921_v36 = vld [vmem:[#allocation276_spill] sm:$0xff] }
 0x924   :  { %v3573_v55 = vrot.slane %v2902_v3, 2  ;;  %v3091_v33 = vmul.f32 %v7914_v14, %v7748_v8  ;;  %v3035_v4 = vmul.f32 %v6825_v50, %v7915_v37  ;;  %v2903_v44 = vadd.f32 %v2895_v38, %v2823_v9  ;;  %v3062_v27 = vpop.permute.xlu0 %3061  ;;  %v3889_v3 = vld [vmem:[#allocation5 + $0x1f] sm:$0x1]  ;;  %v7923_v37 = vld [vmem:[#allocation184_spill] sm:$0xff] }
 0x925   :  { %v3572_v20 = vsel %vm3325_vm4, %v3571_v23, %v3570_v34  ;;  %v3399_v0 = vsel %vm3322_vm3, %v3398_v7, %v3397_v5  ;;  %v3033_v11 = vmul.f32 %v3888_v53, %v7916_v60  ;;  %v3089_v17 = vmul.f32 %v6830_v43, %v3062_v27  ;;  %v3892_v27 = vld [vmem:[#allocation5 + $0x1b] sm:$0x1]  ;;  %v7925_v60 = vld [vmem:[#allocation79_spill] sm:$0xff] }
 0x926   :  { %v3574_v48 = vsel %vm3328_vm5, %v3573_v55, %v3572_v20  ;;  %v3575_v6 = vrot.slane %v2903_v44, 1  ;;  %v3401_v8 = vsel %vm3325_vm4, %v3400_v10, %v3399_v0  ;;  %v3402_v29 = vrot.slane %v1382_v19, 2  ;;  %v6972_v32 = vpop.permute.xlu1 %3283  ;;  %v7922_v55 = vld [vmem:[#allocation183_spill] sm:$0xff] }
 0x927   :  { %v3404_v50 = vrot.slane %v1383_v24, 1  ;;  %v3099_v1 = vadd.f32 %v3091_v33, %v3035_v4  ;;  %v3097_v15 = vadd.f32 %v3089_v17, %v3033_v11  ;;  %v3233_v35 = vmul.f32 %v6830_v43, %v7917_v46  ;;  %v3890_v24 = vld [vmem:[#allocation5 + $0xb] sm:$0x1]  ;;  %v3891_v33 = vld [vmem:[#allocation5 + $0x13] sm:$0x1] }
 0x928   :  { %v3576_v13 = vsel %vm3331_vm6, %v3575_v6, %v3574_v48  ;;  %v3205_v57 = vpop.permute.xlu0 %3204  ;;  %v3615_v41 = vrot.slane %v7918_v21, 6  ;;  %v3403_v30 = vsel %vm3328_vm5, %v3402_v29, %v3401_v8  ;;  %v3235_v62 = vmul.f32 %v3889_v3, %v7919_v31  ;;  %v7924_v48 = vld [vmem:[#allocation185_spill] sm:$0xff]  ;;  %v3893_v17 = vld [vmem:[#allocation5 + $0x3] sm:$0x1]  ;;  %v7926_v8 = vld [vmem:[#allocation182_spill] sm:$0xff] }
 0x929   :  { %3577 = vrot.lane.b32.xlu0 %v3576_v13, %s3995_s13  ;;  %v3613_v22 = vrot.slane %v3097_v15, 7  ;;  %v3234_v51 = vmul.f32 %v6834_v52, %v3205_v57  ;;  %v3617_v56 = vrot.slane %v3099_v1, 5  ;;  %v3405_v58 = vsel %vm3331_vm6, %v3404_v50, %v3403_v30  ;;  %v3894_v50 = vld [vmem:[#allocation5 + $0x23] sm:$0x1]  ;;  %v7927_v1 = vld [vmem:[#allocation186_spill] sm:$0xff]  ;;  %v7929_v31 = vld [vmem:[#allocation88_spill] sm:$0xff] }
 0x92a   :  { %v3661_v25 = vrot.slane %v3233_v35, 7  ;;  %v3665_v38 = vrot.slane %v3235_v62, 5  ;;  %v6987_v47 = vpop.permute.xlu1 %3288  ;;  %v2337_v14 = vmul.f32 %v3890_v24, %v7922_v55  ;;  %v2338_v4 = vmul.f32 %v3891_v33, %v7923_v37  ;;  %v7931_v24 = vld [vmem:[#allocation189_spill] sm:$0xff] }
 0x92b   :  { %v3614_v39 = vsel %vm3313_vm0, %v3613_v22, %v7920_v2  ;;  %v3663_v23 = vrot.slane %v3234_v51, 6  ;;  %v2339_v0 = vmul.f32 %v3892_v27, %v7924_v48  ;;  %v3297_v11 = vmul.f32 %v6830_v43, %v7925_v60  ;;  %v3895_v43 = vld [vmem:[#allocation5 + $0x2b] sm:$0x1]  ;;  %v7928_v51 = vld [vmem:[#allocation187_spill] sm:$0xff] }
 0x92c   :  { %v3616_v7 = vsel %vm3316_vm1, %v3615_v41, %v3614_v39  ;;  %v3195_v34 = vpop.permute.xlu0 %3194  ;;  %v3490_v44 = vrot.slane %v2337_v14, 7  ;;  %v3492_v53 = vrot.slane %v2338_v4, 6  ;;  %v2336_v29 = vmul.f32 %v3893_v17, %v7926_v8 }
 0x92d   :  { %3406 = vrot.lane.b32.xlu0 %v3405_v58, %s3996_s14  ;;  %v3232_v5 = vmul.f32 %v6635_v40, %v3195_v34  ;;  %v6981_v9 = vsel %vm3319_vm2, %v3617_v56, %v3616_v7  ;;  %v2340_v15 = vmul.f32 %v3894_v50, %v7927_v1  ;;  %v3494_v21 = vrot.slane %v2339_v0, 5  ;;  %v7932_v1 = vld [vmem:[#allocation70_spill] sm:$0xff] }
 0x92e   :  { %v6995_v6 = vpop.permute.xlu1 %3293  ;;  %v3491_v22 = vsel %vm3313_vm0, %v3490_v44, %v2336_v29  ;;  %v2341_v30 = vmul.f32 %v3895_v43, %v7928_v51  ;;  %v3686_v56 = vrot.slane %v3297_v11, 7  ;;  %v3296_v62 = vmul.f32 %v6635_v40, %v7929_v31 }
 0x92f   :  { %v3662_v10 = vsel %vm3313_vm0, %v3661_v25, %v3232_v5  ;;  %v3493_v41 = vsel %vm3316_vm1, %v3492_v53, %v3491_v22  ;;  %v3496_v2 = vrot.slane %v2340_v15, 4  ;;  %v3896_v25 = vld [vmem:[#allocation5 + $0x2f] sm:$0x1] }
 0x930   :  { %v3664_v26 = vsel %vm3316_vm1, %v3663_v23, %v3662_v10  ;;  %v3269_v19 = vpop.permute.xlu0 %3268  ;;  %v3495_v23 = vsel %vm3319_vm2, %v3494_v21, %v3493_v41  ;;  %v7930_v10 = vld [vmem:[#allocation188_spill] sm:$0xff]  ;;  %v3498_v40 = vrot.slane %v2341_v30, 3  ;;  %v3687_v55 = vsel %vm3313_vm0, %v3686_v56, %v3296_v62 }
 0x931   :  { %3602 = vrot.lane.b32.xlu0 %v7921_v36, %s3996_s14  ;;  %v3666_v12 = vsel %vm3319_vm2, %v3665_v38, %v3664_v26  ;;  %v3298_v13 = vmul.f32 %v6834_v52, %v3269_v19  ;;  %v3300_v52 = vmul.f32 %v6864_v59, %v6943_v61  ;;  %v3897_v38 = vld [vmem:[#allocation5 + $0x33] sm:$0x1]  ;;  %v3238_v36 = vmul.f32 %v6878_v28, %v6960_v45  ;;  %v7012_v19 = vld [vmem:[#allocation5 + $0x3b] sm:$0x1]  ;;  %v7934_v62 = vld [vmem:[#allocation60_spill] sm:$0xff] }
 0x932   :  { %v2342_v26 = vmul.f32 %v3897_v38, %v7930_v10  ;;  %v2343_v61 = vmul.f32 %v7012_v19, %v7931_v24  ;;  %v3497_v33 = vsel %vm3322_vm3, %v3496_v2, %v3495_v23  ;;  %v3301_v27 = vmul.f32 %v3896_v25, %v6972_v32 }
 0x933   :  { %v3688_v39 = vrot.slane %v3298_v13, 6  ;;  %v3692_v37 = vrot.slane %v3300_v52, 4  ;;  %v3671_v60 = vrot.slane %v3238_v36, 2  ;;  %v3499_v17 = vsel %vm3325_vm4, %v3498_v40, %v3497_v33 }
 0x934   :  { %v3500_v53 = vrot.slane %v2342_v26, 2  ;;  %v3502_v8 = vrot.slane %v2343_v61, 1  ;;  %v3302_v32 = vmul.f32 %v6878_v28, %v6987_v47  ;;  %v3694_v21 = vrot.slane %v3301_v27, 3 }
 0x935   :  { %v3215_v20 = vpop.permute.xlu0 %3214  ;;  %v3689_v4 = vsel %vm3316_vm1, %v3688_v39, %v3687_v55  ;;  %v3303_v47 = vmul.f32 %v6995_v6, %v7892_v42  ;;  %v3039_v2 = vmul.f32 %v6887_v54, %v7934_v62  ;;  %v3900_v39 = vld [vmem:[#allocation5 + $0x36] sm:$0x1] }
 0x936   :  { %v3236_v57 = vmul.f32 %v6864_v59, %v3215_v20  ;;  %v3696_v52 = vrot.slane %v3302_v32, 2 }
 0x937   :  { %v3698_v38 = vrot.slane %v3303_v47, 1 }
 0x938   :  { %v3667_v58 = vrot.slane %v3236_v57, 4 }
 0x93a   :  { %v3274_v46 = vpop.permute.xlu0 %3273  ;;  %v3668_v20 = vsel %vm3322_vm3, %v3667_v58, %v3666_v12  ;;  %v3037_v12 = vmul.f32 %v6868_v16, %v7932_v1  ;;  %v3501_v16 = vsel %vm3328_vm5, %v3500_v53, %v3499_v17  ;;  %v7935_v58 = vld [vmem:[#allocation284_spill] sm:$0xff]  ;;  %v7937_v53 = vld [vmem:[#allocation123_spill] sm:$0xff] }
 0x93b   :  { %v3299_v35 = vmul.f32 %v3889_v3, %v3274_v46  ;;  %v3078_v3 = vpop.permute.xlu1 %3077  ;;  %v3899_v46 = vld [vmem:[#allocation5 + $0x26] sm:$0x1]  ;;  %v7939_v1 = vld [vmem:[#allocation208_spill] sm:$0xff] }
 0x93c   :  { %v3093_v11 = vmul.f32 %v3896_v25, %v3078_v3 }
 0x93d   :  { %v3690_v34 = vrot.slane %v3299_v35, 5  ;;  %v7933_v35 = vld [vmem:[#allocation282_spill] sm:$0xff] }
 0x93e   :  { %v3220_v7 = vpop.permute.xlu0 %3219  ;;  %v3036_v22 = vmul.f32 %v3899_v46, %v7933_v35  ;;  %v3101_v51 = vadd.f32 %v3093_v11, %v3037_v12  ;;  %v7938_v11 = vld [vmem:[#allocation121_spill] sm:$0xff]  ;;  %v1575_v12 = vmul.f32 %v6860_v63, %v7939_v1  ;;  %v7941_v46 = vld [vmem:[#allocation286_spill] sm:$0xff] }
 0x93f   :  { %v3237_v5 = vmul.f32 %v3896_v25, %v3220_v7  ;;  %v3691_v45 = vsel %vm3319_vm2, %v3690_v34, %v3689_v4  ;;  %v3086_v29 = vpop.permute.xlu1 %3085  ;;  %v3038_v7 = vmul.f32 %v3900_v39, %v7935_v58  ;;  %v3503_v25 = vsel %vm3331_vm6, %v3502_v8, %v3501_v16 }
 0x940   :  { %v3693_v15 = vsel %vm3322_vm3, %v3692_v37, %v3691_v45  ;;  %v3095_v30 = vmul.f32 %v3086_v29, %v7892_v42  ;;  %v1495_v17 = vmul.f32 %v7012_v19, %v7938_v11  ;;  %v1735_v35 = vmul.f32 %v6887_v54, %v7941_v46 }
 0x941   :  { %v3669_v14 = vrot.slane %v3237_v5, 3  ;;  %v3695_v31 = vsel %vm3325_vm4, %v3694_v21, %v3693_v15  ;;  %v3621_v5 = vrot.slane %v3101_v51, 3 }
 0x942   :  { %v3230_v44 = vpop.permute.xlu0 %3229  ;;  %v3103_v23 = vadd.f32 %v3095_v30, %v3039_v2  ;;  %v3697_v6 = vsel %vm3328_vm5, %v3696_v52, %v3695_v31 }
 0x943   :  { %v3670_v48 = vsel %vm3325_vm4, %v3669_v14, %v3668_v20  ;;  %v3239_v0 = vmul.f32 %v3230_v44, %v7892_v42  ;;  %v3699_v24 = vsel %vm3331_vm6, %v3698_v38, %v3697_v6  ;;  %v3455_v21 = vpop.permute.xlu1 %3454 }
 0x944   :  { %v3672_v57 = vsel %vm3328_vm5, %v3671_v60, %v3670_v48  ;;  %v3625_v61 = vrot.slane %v3103_v23, 1 }
 0x945   :  { %v3673_v50 = vrot.slane %v3239_v0, 1  ;;  %v3901_v0 = vld [vmem:[#allocation5 + $0x3a] sm:$0x1] }
 0x946   :  { %v3074_v13 = vpop.permute.xlu0 %3073  ;;  %v1439_v60 = vmul.f32 %v3901_v0, %v7937_v53 }
 0x947   :  { %v3092_v41 = vmul.f32 %v6864_v59, %v3074_v13  ;;  %v3674_v43 = vsel %vm3331_vm6, %v3673_v50, %v3672_v57  ;;  %v3902_v13 = vld [vmem:[#allocation5 + $0x3d] sm:$0x1]  ;;  %v7940_v57 = vld [vmem:[#allocation132_spill] sm:$0xff] }
 0x948   :  { %3675 = vrot.lane.b32.xlu1 %v3674_v43, %s3995_s13  ;;  %v1503_v32 = vadd.f32 %v1495_v17, %v1439_v60 }
 0x949   :  { %v3100_v56 = vadd.f32 %v3092_v41, %v3036_v22  ;;  %v7942_v41 = vld [vmem:[#allocation141_spill] sm:$0xff] }
 0x94a   :  { %v3082_v59 = vpop.permute.xlu0 %3081  ;;  %v1583_v15 = vadd.f32 %v1575_v12, %v1503_v32  ;;  %v1815_v43 = vmul.f32 %v7942_v41, %v7892_v42 }
 0x94b   :  { %v3619_v3 = vrot.slane %v3100_v56, 4  ;;  %v3094_v34 = vmul.f32 %v6878_v28, %v3082_v59 }
 0x94c   :  { %3504 = vrot.lane.b32.xlu1 %v3503_v25, %s3996_s14 }
 0x94d   :  { %v3620_v10 = vsel %vm3322_vm3, %v3619_v3, %v6981_v9  ;;  %v3102_v26 = vadd.f32 %v3094_v34, %v3038_v7  ;;  %v7936_v9 = vld [vmem:[#allocation116_spill] sm:$0xff] }
 0x94e   :  { %v3622_v36 = vsel %vm3325_vm4, %v3621_v5, %v3620_v10  ;;  %v3357_v14 = vpop.permute.xlu0 %3356 }
 0x94f   :  { %v3623_v40 = vrot.slane %v3102_v26, 2  ;;  %v3704_v20 = vsel %vm3703_vm8, %v7936_v9, %v3357_v14 }
 0x950   :  { %3700 = vrot.lane.b32.xlu1 %v3699_v24, %s3996_s14 }
 0x951   :  { %v3624_v28 = vsel %vm3328_vm5, %v3623_v40, %v3622_v36 }
 0x952   :  { %v3626_v55 = vsel %vm3331_vm6, %v3625_v61, %v3624_v28  ;;  %v3553_v33 = vpop.permute.xlu0 %3552 }
 0x953   :  { %v3712_v48 = vsel %vm3703_vm8, %v6918_v18, %v3553_v33  ;;  %v1655_v18 = vmul.f32 %v3902_v13, %v7940_v57 }
 0x955   :  { %v1663_v22 = vadd.f32 %v1655_v18, %v1583_v15 }
 0x956   :  { %v3651_v51 = vpop.permute.xlu1 %3650 }
 0x957   :  { %v1743_v19 = vadd.f32 %v1735_v35, %v1663_v22  ;;  %v3715_v42 = vsel %vm3703_vm8, %v3626_v55, %v3651_v51 }
 0x959   :  { %v1823_v30 = vadd.f32 %v1815_v43, %v1743_v19 }
 0x95b   :  { %v3429_v47 = vrot.slane %v1823_v30, 1 }
 0x95d   :  { %v3430_v63 = vsel %vm3331_vm6, %v3429_v47, %v6795_v49 }
 0x95e   :  { %v3709_v31 = vsel %vm3703_vm8, %v3430_v63, %v3455_v21 }
 0x964   :  { %v3382_v37 = vpop.permute.xlu0 %3381 }
 0x965   :  { %v3706_v44 = vsel %vm3705_vm7, %v3704_v20, %v3382_v37 }
 0x97e   :  { %v3480_v16 = vpop.permute.xlu1 %3479 }
 0x97f   :  { %v3710_v62 = vsel %vm3705_vm7, %v3709_v31, %v3480_v16 }
 0x99b   :  { %v3578_v4 = vpop.permute.xlu0 %3577 }
 0x99c   :  { %v3713_v8 = vsel %vm3705_vm7, %v3712_v48, %v3578_v4 }
 0x99f   :  { %v3407_v27 = vpop.permute.xlu0 %3406 }
 0x9a0   :  { %v3708_v45 = vsel %vm3707_vm9, %v3706_v44, %v3407_v27 }
 0x9a1   :  { %3718 = vst [vmem:[#allocation7] sm:$0xff] %v3708_v45 }
 0x9a3   :  { %v3603_v29 = vpop.permute.xlu0 %3602 }
 0x9a4   :  { %v3714_v50 = vsel %vm3707_vm9, %v3713_v8, %v3603_v29 }
 0x9a5   :  { %3720 = vst [vmem:[#allocation7 + $0x10] sm:$0xff] %v3714_v50 }
 0x9ba   :  { %v3676_v56 = vpop.permute.xlu1 %3675 }
 0x9bb   :  { %v3716_v52 = vsel %vm3705_vm7, %v3715_v42, %v3676_v56 }
 0x9be   :  { %v3505_v2 = vpop.permute.xlu1 %3504 }
 0x9bf   :  { %v3711_v54 = vsel %vm3707_vm9, %v3710_v62, %v3505_v2 }
 0x9c0   :  { %3719 = vst [vmem:[#allocation7 + $0x8] sm:$0xff] %v3711_v54 }
 0x9c2   :  { %v3701_v59 = vpop.permute.xlu1 %3700 }
 0x9c3   :  { %v3717_v39 = vsel %vm3707_vm9, %v3716_v52, %v3701_v59 }
 0x9c4   :  { %3721 = vst [vmem:[#allocation7 + $0x18] sm:$0xff] %v3717_v39 }
 0x9c5   :  { %3958 = shalt.err (!%p3955_p6)
}
 0x9c6   :  { %s3959_s20 = scalar_lea.hbm %s7094_s2, 512 }
 0x9c7   :  { %p3960_p7 = scmp.ne.s32.totalorder %s7094_s2, %s3959_s20  ;;  %p3963_p8 = scmp.lt.u32.totalorder %s3959_s20, %s7094_s2 }
 0x9c9   :  { %p3965_p9 = pnand %p3963_p8, %p3960_p7 }
 0x9cb   :  { %3968 = shalt.err (!%p3965_p9)
}
 0x9cc   :  { %3731 = dma.vmem_to_hbm [thread:$0]  %s3729_s16, 512, %s7094_s2, [#allocation4]  }
 0x9cd   :  { %3973 = dma.done.wait [#allocation4], 512  }
 0x9ce   :  { %3974 = vsyncadd [#allocation4], 4294966784 }
 0x9cf   :  { %3735 = vsyncpa [#allocation3], 1 }
 0x9d0   :  { %3736 = vsyncpa [#allocation6], 1 }
 0x9d1   :  { %3737 = vsyncpa [#allocation4], 1 }

</bundles_post_ra>
